<compile_context>
chip_gen: v7x
topology: tpu7x:2x2x1
jax: 0.10.0
libtpu: 0.0.40
codegen_flags: <defaults>
</compile_context>

<pallas_src>
import functools

import jax
import jax.numpy as jnp
from jax.experimental import pallas as pl
from jax.experimental.pallas import tpu as pltpu


_EPS = 1e-5
# Cap on scoped VMEM: generous for v5e/v6e (128 MiB physical), safely under
# v7x's 64 MiB physical once framework overhead is counted.  The demo uses <1 MiB.
_VMEM_LIMIT = 48 * 1024 * 1024


# ----------------------------------------------------------------------------
# Fused ResnetBlock kernel: one batch element per grid step, all in VMEM.
# ----------------------------------------------------------------------------
def _resnet_block_kernel(x_ref, w1_ref, b1_ref, w2_ref, b2_ref, o_ref, pad_ref,
                         *, H, W, C, eps):
    """Refs:
      x_ref  : (1, H, W, C)   f32   input block (NHWC)
      w*_ref : (9, C, C)      bf16  per-tap weights, w[t, ci, co] = W_pt[co, ci, ki, kj], t = ki*3+kj
      b*_ref : (1, C)         f32   conv biases
      o_ref  : (1, H, W, C)   f32   output block
      pad_ref: (H+2, W+2, C)  f32   scratch holding the reflect-padded activation
    """

    def reflect_pad(img):  # img: (H, W, C) f32 -> fills pad_ref (reflection pad of 1)
        pad_ref[1:H + 1, 1:W + 1, :] = img
        pad_ref[0:1, 1:W + 1, :] = img[1:2]                   # top    <- row 1
        pad_ref[H + 1:H + 2, 1:W + 1, :] = img[H - 2:H - 1]   # bottom <- row H-2
        pad_ref[:, 0:1, :] = pad_ref[:, 2:3, :]               # left   <- orig col 1
        pad_ref[:, W + 1:W + 2, :] = pad_ref[:, W - 1:W, :]   # right  <- orig col W-2

    def conv3x3(w_ref, b_ref):
        # 9 tap matmuls (taps folded into the reduction), bf16 MXU operands,
        # f32 accumulation.  Returns (H*W, C) f32.
        acc = jnp.zeros((H * W, C), jnp.float32)
        for t in range(9):
            ki, kj = divmod(t, 3)
            tap = pad_ref[ki:ki + H, kj:kj + W, :]            # (H, W, C) window
            tap = tap.reshape(H * W, C).astype(jnp.bfloat16)
            acc = acc + jnp.dot(tap, w_ref[t],
                                preferred_element_type=jnp.float32)
        return acc + b_ref[...]       # (1, C) broadcast; cancelled by the norm

    def inst_norm(y):
        # per-channel stats over the H*W rows of this batch element (f32)
        mean = jnp.mean(y, axis=0, keepdims=True)
        yc = y - mean
        var = jnp.mean(yc * yc, axis=0, keepdims=True)        # biased, as torch
        return yc * jax.lax.rsqrt(var + eps)

    x = x_ref[0]                                              # (H, W, C) f32

    reflect_pad(x)
    h = jnp.maximum(inst_norm(conv3x3(w1_ref, b1_ref)), 0.0)  # IN + ReLU fused
    # TODO(synk): dropout_probability > 0 (training-mode Dropout) not
    # implemented; this is the eval-mode forward where Dropout is identity.

    reflect_pad(h.reshape(H, W, C))
    y = inst_norm(conv3x3(w2_ref, b2_ref))

    o_ref[0] = (x.reshape(H * W, C) + y).reshape(H, W, C)     # residual add


# ----------------------------------------------------------------------------
# Wrapper
# ----------------------------------------------------------------------------
def resnet_block_forward(params, x, eps=_EPS):
    """x: (B, C, H, W) f32 NCHW, as in the PyTorch module."""
    B, C, H, W = x.shape
    assert H >= 2 and W >= 2, "reflection pad of 1 needs H, W >= 2"

    w1, b1 = params["conv1"]
    w2, b2 = params["conv2"]

    # One-time layout plumbing (tiny): activation NCHW -> NHWC,
    # weights (Cout, Cin, 3, 3) -> (tap = ki*3+kj, Cin, Cout) in bf16.
    x_nhwc = jnp.transpose(x, (0, 2, 3, 1)).astype(jnp.float32)

    def prep_w(w):
        return jnp.transpose(w, (2, 3, 1, 0)).reshape(9, C, C).astype(jnp.bfloat16)

    def prep_b(b):
        if b is None:
            return jnp.zeros((1, C), jnp.float32)
        return b.reshape(1, C).astype(jnp.float32)

    kernel = functools.partial(_resnet_block_kernel, H=H, W=W, C=C, eps=eps)

    out_nhwc = pl.pallas_call(
        kernel,
        out_shape=jax.ShapeDtypeStruct((B, H, W, C), jnp.float32),
        grid_spec=pltpu.PrefetchScalarGridSpec(
            num_scalar_prefetch=0,
            grid=(B,),
            in_specs=[
                pl.BlockSpec((1, H, W, C), lambda b: (b, 0, 0, 0)),
                pl.BlockSpec((9, C, C), lambda b: (0, 0, 0)),
                pl.BlockSpec((1, C), lambda b: (0, 0)),
                pl.BlockSpec((9, C, C), lambda b: (0, 0, 0)),
                pl.BlockSpec((1, C), lambda b: (0, 0)),
            ],
            out_specs=pl.BlockSpec((1, H, W, C), lambda b: (b, 0, 0, 0)),
            scratch_shapes=[pltpu.VMEM((H + 2, W + 2, C), jnp.float32)],
        ),
        compiler_params=pltpu.CompilerParams(
            dimension_semantics=("parallel",),
            vmem_limit_bytes=_VMEM_LIMIT,
        ),
    )(x_nhwc, prep_w(w1), prep_b(b1), prep_w(w2), prep_b(b2))

    return jnp.transpose(out_nhwc, (0, 3, 1, 2))               # back to NCHW


# ----------------------------------------------------------------------------
# Parameters (Conv2d(dim, dim, 3) x 2, InstanceNorm2d(affine=False), use_bias)
# ----------------------------------------------------------------------------
def init_resnet_block_params(key, dim, use_bias=True):
    k1, k2, k3, k4 = jax.random.split(key, 4)
    w1 = jax.random.normal(k1, (dim, dim, 3, 3), jnp.float32) * 0.05
    w2 = jax.random.normal(k2, (dim, dim, 3, 3), jnp.float32) * 0.05
    b1 = (jax.random.normal(k3, (dim,), jnp.float32) * 0.05
          if use_bias else None)
    b2 = (jax.random.normal(k4, (dim,), jnp.float32) * 0.05
          if use_bias else None)
    return {"conv1": (w1, b1), "conv2": (w2, b2)}


# ----------------------------------------------------------------------------
# Pure-JAX reference (mirrors the kernel's bf16 matmul operands) for checking.
# ----------------------------------------------------------------------------
def _reference_forward(params, x, eps=_EPS):
    B, C, H, W = x.shape

    def conv_in(h, w, b):                      # h: (B, C, H, W) f32
        hp = jnp.pad(h.astype(jnp.bfloat16),
                     ((0, 0), (0, 0), (1, 1), (1, 1)), mode="reflect")
        acc = jnp.zeros((B, C, H, W), jnp.float32)
        for ki in range(3):
            for kj in range(3):
                tap = hp[:, :, ki:ki + H, kj:kj + W].astype(jnp.float32)
                wk = w[:, :, ki, kj].astype(jnp.bfloat16).astype(jnp.float32)
                acc = acc + jnp.einsum("ncij,oc->noij", tap, wk)
        if b is not None:
            acc = acc + b.reshape(1, C, 1, 1)
        mean = acc.mean(axis=(2, 3), keepdims=True)
        var = ((acc - mean) ** 2).mean(axis=(2, 3), keepdims=True)
        return (acc - mean) * jax.lax.rsqrt(var + eps)

    w1, b1 = params["conv1"]
    w2, b2 = params["conv2"]
    h = jnp.maximum(conv_in(x.astype(jnp.float32), w1, b1), 0.0)
    return x + conv_in(h, w2, b2)


# ----------------------------------------------------------------------------
if __name__ == "__main__":
    # Small configuration consistent with the module:
    #   dim=32, padding_type='reflect', norm_layer=InstanceNorm2d,
    #   dropout_probability=0, use_bias=True
    B, C, H, W = 2, 32, 16, 16

    key = jax.random.PRNGKey(0)
    kp, kx = jax.random.split(key)
    params = init_resnet_block_params(kp, C, use_bias=True)
    x = jax.random.normal(kx, (B, C, H, W), jnp.float32)

    fwd = jax.jit(resnet_block_forward)
    out = fwd(params, x)
    jax.block_until_ready(out)

    assert out.shape == (B, C, H, W)
    assert out.dtype == jnp.float32
    assert bool(jnp.all(jnp.isfinite(out)))

    ref = _reference_forward(params, x)
    max_err = float(jnp.max(jnp.abs(out - ref)))
    assert max_err < 1e-2, f"mismatch vs reference: max abs err = {max_err}"

    print("KERNEL_OK")
</pallas_src>

<mosaic_0001>
module attributes {stable_mosaic.version = 11 : i64} {
  func.func @_resnet_block_kernel(%arg0: i32, %arg1: memref<1x16x16x32xf32, #tpu.memory_space<vmem>>, %arg2: memref<9x32x32xbf16, #tpu.memory_space<vmem>>, %arg3: memref<1x32xf32, #tpu.memory_space<vmem>>, %arg4: memref<9x32x32xbf16, #tpu.memory_space<vmem>>, %arg5: memref<1x32xf32, #tpu.memory_space<vmem>>, %arg6: memref<1x16x16x32xf32, #tpu.memory_space<vmem>>, %arg7: memref<18x18x32xf32, #tpu.memory_space<vmem>>) attributes {dimension_semantics = [#tpu.dimension_semantics<parallel>], iteration_bounds = array<i64: 2>, scalar_prefetch = 0 : i64, scratch_operands = 1 : i64, tpu.core_type = #tpu.core_type<tc>, window_params = [{transform_indices = @transform_0, window_bounds = array<i64: 1, 16, 16, 32>}, {pipeline_mode = #tpu.pipeline_mode<synchronous>, transform_indices = @transform_1, window_bounds = array<i64: 9, 32, 32>}, {pipeline_mode = #tpu.pipeline_mode<synchronous>, transform_indices = @transform_2, window_bounds = array<i64: 1, 32>}, {pipeline_mode = #tpu.pipeline_mode<synchronous>, transform_indices = @transform_3, window_bounds = array<i64: 9, 32, 32>}, {pipeline_mode = #tpu.pipeline_mode<synchronous>, transform_indices = @transform_4, window_bounds = array<i64: 1, 32>}, {transform_indices = @transform_5, window_bounds = array<i64: 1, 16, 16, 32>}]} {
    %c0 = arith.constant 0 : index
    %c0_0 = arith.constant 0 : index
    %c0_1 = arith.constant 0 : index
    %c0_2 = arith.constant 0 : index
    %0 = vector.load %arg1[%c0, %c0_0, %c0_1, %c0_2] : memref<1x16x16x32xf32, #tpu.memory_space<vmem>>, vector<1x16x16x32xf32>
    %1 = vector.shape_cast %0 : vector<1x16x16x32xf32> to vector<16x16x32xf32>
    %c1 = arith.constant 1 : index
    %c1_3 = arith.constant 1 : index
    %c0_4 = arith.constant 0 : index
    %2 = vector.load %arg7[%c1, %c1_3, %c0_4] : memref<18x18x32xf32, #tpu.memory_space<vmem>>, vector<16x16x32xf32>
    tpu.vector_store %arg7[%c1, %c1_3, %c0_4], %1 {strides = array<i32>} : memref<18x18x32xf32, #tpu.memory_space<vmem>>, vector<16x16x32xf32>,
    %3 = vector.extract_strided_slice %1 {offsets = [1, 0, 0], sizes = [1, 16, 32], strides = [1, 1, 1]} : vector<16x16x32xf32> to vector<1x16x32xf32>
    %c0_5 = arith.constant 0 : index
    %c1_6 = arith.constant 1 : index
    %c0_7 = arith.constant 0 : index
    %4 = vector.load %arg7[%c0_5, %c1_6, %c0_7] : memref<18x18x32xf32, #tpu.memory_space<vmem>>, vector<1x16x32xf32>
    tpu.vector_store %arg7[%c0_5, %c1_6, %c0_7], %3 {strides = array<i32>} : memref<18x18x32xf32, #tpu.memory_space<vmem>>, vector<1x16x32xf32>,
    %5 = vector.extract_strided_slice %1 {offsets = [14, 0, 0], sizes = [1, 16, 32], strides = [1, 1, 1]} : vector<16x16x32xf32> to vector<1x16x32xf32>
    %c17 = arith.constant 17 : index
    %c1_8 = arith.constant 1 : index
    %c0_9 = arith.constant 0 : index
    %6 = vector.load %arg7[%c17, %c1_8, %c0_9] : memref<18x18x32xf32, #tpu.memory_space<vmem>>, vector<1x16x32xf32>
    tpu.vector_store %arg7[%c17, %c1_8, %c0_9], %5 {strides = array<i32>} : memref<18x18x32xf32, #tpu.memory_space<vmem>>, vector<1x16x32xf32>,
    %c0_10 = arith.constant 0 : index
    %c2 = arith.constant 2 : index
    %c0_11 = arith.constant 0 : index
    %7 = vector.load %arg7[%c0_10, %c2, %c0_11] : memref<18x18x32xf32, #tpu.memory_space<vmem>>, vector<18x1x32xf32>
    %c0_12 = arith.constant 0 : index
    %c0_13 = arith.constant 0 : index
    %c0_14 = arith.constant 0 : index
    %8 = vector.load %arg7[%c0_12, %c0_13, %c0_14] : memref<18x18x32xf32, #tpu.memory_space<vmem>>, vector<18x1x32xf32>
    tpu.vector_store %arg7[%c0_12, %c0_13, %c0_14], %7 {strides = array<i32>} : memref<18x18x32xf32, #tpu.memory_space<vmem>>, vector<18x1x32xf32>,
    %c0_15 = arith.constant 0 : index
    %c15 = arith.constant 15 : index
    %c0_16 = arith.constant 0 : index
    %9 = vector.load %arg7[%c0_15, %c15, %c0_16] : memref<18x18x32xf32, #tpu.memory_space<vmem>>, vector<18x1x32xf32>
    %c0_17 = arith.constant 0 : index
    %c17_18 = arith.constant 17 : index
    %c0_19 = arith.constant 0 : index
    %10 = vector.load %arg7[%c0_17, %c17_18, %c0_19] : memref<18x18x32xf32, #tpu.memory_space<vmem>>, vector<18x1x32xf32>
    tpu.vector_store %arg7[%c0_17, %c17_18, %c0_19], %9 {strides = array<i32>} : memref<18x18x32xf32, #tpu.memory_space<vmem>>, vector<18x1x32xf32>,
    %cst = arith.constant 0.000000e+00 : f32
    %11 = vector.broadcast %cst : f32 to vector<256x32xf32>
    %c0_20 = arith.constant 0 : index
    %c0_21 = arith.constant 0 : index
    %c0_22 = arith.constant 0 : index
    %12 = vector.load %arg7[%c0_20, %c0_21, %c0_22] : memref<18x18x32xf32, #tpu.memory_space<vmem>>, vector<16x16x32xf32>
    %13 = vector.shape_cast %12 : vector<16x16x32xf32> to vector<256x32xf32>
    %14 = arith.truncf %13 : vector<256x32xf32> to vector<256x32xbf16>
    %c0_23 = arith.constant 0 : index
    %c0_24 = arith.constant 0 : index
    %c0_25 = arith.constant 0 : index
    %15 = vector.load %arg2[%c0_23, %c0_24, %c0_25] : memref<9x32x32xbf16, #tpu.memory_space<vmem>>, vector<1x32x32xbf16>
    %16 = vector.shape_cast %15 : vector<1x32x32xbf16> to vector<32x32xbf16>
    %cst_26 = arith.constant dense<0.000000e+00> : vector<256x32xf32>
    %17 = tpu.matmul %14, %16, %cst_26 {dimension_numbers = #tpu.dot_dimension_numbers<[1], [0], [0], [1], [0, 0, 1, 1], [], []>} : vector<256x32xbf16>, vector<32x32xbf16>, vector<256x32xf32> -> vector<256x32xf32>
    %18 = arith.addf %11, %17 : vector<256x32xf32>
    %c0_27 = arith.constant 0 : index
    %c1_28 = arith.constant 1 : index
    %c0_29 = arith.constant 0 : index
    %19 = vector.load %arg7[%c0_27, %c1_28, %c0_29] : memref<18x18x32xf32, #tpu.memory_space<vmem>>, vector<16x16x32xf32>
    %20 = vector.shape_cast %19 : vector<16x16x32xf32> to vector<256x32xf32>
    %21 = arith.truncf %20 : vector<256x32xf32> to vector<256x32xbf16>
    %c1_30 = arith.constant 1 : index
    %c0_31 = arith.constant 0 : index
    %c0_32 = arith.constant 0 : index
    %22 = vector.load %arg2[%c1_30, %c0_31, %c0_32] : memref<9x32x32xbf16, #tpu.memory_space<vmem>>, vector<1x32x32xbf16>
    %23 = vector.shape_cast %22 : vector<1x32x32xbf16> to vector<32x32xbf16>
    %cst_33 = arith.constant dense<0.000000e+00> : vector<256x32xf32>
    %24 = tpu.matmul %21, %23, %cst_33 {dimension_numbers = #tpu.dot_dimension_numbers<[1], [0], [0], [1], [0, 0, 1, 1], [], []>} : vector<256x32xbf16>, vector<32x32xbf16>, vector<256x32xf32> -> vector<256x32xf32>
    %25 = arith.addf %18, %24 : vector<256x32xf32>
    %c0_34 = arith.constant 0 : index
    %c2_35 = arith.constant 2 : index
    %c0_36 = arith.constant 0 : index
    %26 = vector.load %arg7[%c0_34, %c2_35, %c0_36] : memref<18x18x32xf32, #tpu.memory_space<vmem>>, vector<16x16x32xf32>
    %27 = vector.shape_cast %26 : vector<16x16x32xf32> to vector<256x32xf32>
    %28 = arith.truncf %27 : vector<256x32xf32> to vector<256x32xbf16>
    %c2_37 = arith.constant 2 : index
    %c0_38 = arith.constant 0 : index
    %c0_39 = arith.constant 0 : index
    %29 = vector.load %arg2[%c2_37, %c0_38, %c0_39] : memref<9x32x32xbf16, #tpu.memory_space<vmem>>, vector<1x32x32xbf16>
    %30 = vector.shape_cast %29 : vector<1x32x32xbf16> to vector<32x32xbf16>
    %cst_40 = arith.constant dense<0.000000e+00> : vector<256x32xf32>
    %31 = tpu.matmul %28, %30, %cst_40 {dimension_numbers = #tpu.dot_dimension_numbers<[1], [0], [0], [1], [0, 0, 1, 1], [], []>} : vector<256x32xbf16>, vector<32x32xbf16>, vector<256x32xf32> -> vector<256x32xf32>
    %32 = arith.addf %25, %31 : vector<256x32xf32>
    %c1_41 = arith.constant 1 : index
    %c0_42 = arith.constant 0 : index
    %c0_43 = arith.constant 0 : index
    %33 = vector.load %arg7[%c1_41, %c0_42, %c0_43] : memref<18x18x32xf32, #tpu.memory_space<vmem>>, vector<16x16x32xf32>
    %34 = vector.shape_cast %33 : vector<16x16x32xf32> to vector<256x32xf32>
    %35 = arith.truncf %34 : vector<256x32xf32> to vector<256x32xbf16>
    %c3 = arith.constant 3 : index
    %c0_44 = arith.constant 0 : index
    %c0_45 = arith.constant 0 : index
    %36 = vector.load %arg2[%c3, %c0_44, %c0_45] : memref<9x32x32xbf16, #tpu.memory_space<vmem>>, vector<1x32x32xbf16>
    %37 = vector.shape_cast %36 : vector<1x32x32xbf16> to vector<32x32xbf16>
    %cst_46 = arith.constant dense<0.000000e+00> : vector<256x32xf32>
    %38 = tpu.matmul %35, %37, %cst_46 {dimension_numbers = #tpu.dot_dimension_numbers<[1], [0], [0], [1], [0, 0, 1, 1], [], []>} : vector<256x32xbf16>, vector<32x32xbf16>, vector<256x32xf32> -> vector<256x32xf32>
    %39 = arith.addf %32, %38 : vector<256x32xf32>
    %c1_47 = arith.constant 1 : index
    %c1_48 = arith.constant 1 : index
    %c0_49 = arith.constant 0 : index
    %40 = vector.load %arg7[%c1_47, %c1_48, %c0_49] : memref<18x18x32xf32, #tpu.memory_space<vmem>>, vector<16x16x32xf32>
    %41 = vector.shape_cast %40 : vector<16x16x32xf32> to vector<256x32xf32>
    %42 = arith.truncf %41 : vector<256x32xf32> to vector<256x32xbf16>
    %c4 = arith.constant 4 : index
    %c0_50 = arith.constant 0 : index
    %c0_51 = arith.constant 0 : index
    %43 = vector.load %arg2[%c4, %c0_50, %c0_51] : memref<9x32x32xbf16, #tpu.memory_space<vmem>>, vector<1x32x32xbf16>
    %44 = vector.shape_cast %43 : vector<1x32x32xbf16> to vector<32x32xbf16>
    %cst_52 = arith.constant dense<0.000000e+00> : vector<256x32xf32>
    %45 = tpu.matmul %42, %44, %cst_52 {dimension_numbers = #tpu.dot_dimension_numbers<[1], [0], [0], [1], [0, 0, 1, 1], [], []>} : vector<256x32xbf16>, vector<32x32xbf16>, vector<256x32xf32> -> vector<256x32xf32>
    %46 = arith.addf %39, %45 : vector<256x32xf32>
    %c1_53 = arith.constant 1 : index
    %c2_54 = arith.constant 2 : index
    %c0_55 = arith.constant 0 : index
    %47 = vector.load %arg7[%c1_53, %c2_54, %c0_55] : memref<18x18x32xf32, #tpu.memory_space<vmem>>, vector<16x16x32xf32>
    %48 = vector.shape_cast %47 : vector<16x16x32xf32> to vector<256x32xf32>
    %49 = arith.truncf %48 : vector<256x32xf32> to vector<256x32xbf16>
    %c5 = arith.constant 5 : index
    %c0_56 = arith.constant 0 : index
    %c0_57 = arith.constant 0 : index
    %50 = vector.load %arg2[%c5, %c0_56, %c0_57] : memref<9x32x32xbf16, #tpu.memory_space<vmem>>, vector<1x32x32xbf16>
    %51 = vector.shape_cast %50 : vector<1x32x32xbf16> to vector<32x32xbf16>
    %cst_58 = arith.constant dense<0.000000e+00> : vector<256x32xf32>
    %52 = tpu.matmul %49, %51, %cst_58 {dimension_numbers = #tpu.dot_dimension_numbers<[1], [0], [0], [1], [0, 0, 1, 1], [], []>} : vector<256x32xbf16>, vector<32x32xbf16>, vector<256x32xf32> -> vector<256x32xf32>
    %53 = arith.addf %46, %52 : vector<256x32xf32>
    %c2_59 = arith.constant 2 : index
    %c0_60 = arith.constant 0 : index
    %c0_61 = arith.constant 0 : index
    %54 = vector.load %arg7[%c2_59, %c0_60, %c0_61] : memref<18x18x32xf32, #tpu.memory_space<vmem>>, vector<16x16x32xf32>
    %55 = vector.shape_cast %54 : vector<16x16x32xf32> to vector<256x32xf32>
    %56 = arith.truncf %55 : vector<256x32xf32> to vector<256x32xbf16>
    %c6 = arith.constant 6 : index
    %c0_62 = arith.constant 0 : index
    %c0_63 = arith.constant 0 : index
    %57 = vector.load %arg2[%c6, %c0_62, %c0_63] : memref<9x32x32xbf16, #tpu.memory_space<vmem>>, vector<1x32x32xbf16>
    %58 = vector.shape_cast %57 : vector<1x32x32xbf16> to vector<32x32xbf16>
    %cst_64 = arith.constant dense<0.000000e+00> : vector<256x32xf32>
    %59 = tpu.matmul %56, %58, %cst_64 {dimension_numbers = #tpu.dot_dimension_numbers<[1], [0], [0], [1], [0, 0, 1, 1], [], []>} : vector<256x32xbf16>, vector<32x32xbf16>, vector<256x32xf32> -> vector<256x32xf32>
    %60 = arith.addf %53, %59 : vector<256x32xf32>
    %c2_65 = arith.constant 2 : index
    %c1_66 = arith.constant 1 : index
    %c0_67 = arith.constant 0 : index
    %61 = vector.load %arg7[%c2_65, %c1_66, %c0_67] : memref<18x18x32xf32, #tpu.memory_space<vmem>>, vector<16x16x32xf32>
    %62 = vector.shape_cast %61 : vector<16x16x32xf32> to vector<256x32xf32>
    %63 = arith.truncf %62 : vector<256x32xf32> to vector<256x32xbf16>
    %c7 = arith.constant 7 : index
    %c0_68 = arith.constant 0 : index
    %c0_69 = arith.constant 0 : index
    %64 = vector.load %arg2[%c7, %c0_68, %c0_69] : memref<9x32x32xbf16, #tpu.memory_space<vmem>>, vector<1x32x32xbf16>
    %65 = vector.shape_cast %64 : vector<1x32x32xbf16> to vector<32x32xbf16>
    %cst_70 = arith.constant dense<0.000000e+00> : vector<256x32xf32>
    %66 = tpu.matmul %63, %65, %cst_70 {dimension_numbers = #tpu.dot_dimension_numbers<[1], [0], [0], [1], [0, 0, 1, 1], [], []>} : vector<256x32xbf16>, vector<32x32xbf16>, vector<256x32xf32> -> vector<256x32xf32>
    %67 = arith.addf %60, %66 : vector<256x32xf32>
    %c2_71 = arith.constant 2 : index
    %c2_72 = arith.constant 2 : index
    %c0_73 = arith.constant 0 : index
    %68 = vector.load %arg7[%c2_71, %c2_72, %c0_73] : memref<18x18x32xf32, #tpu.memory_space<vmem>>, vector<16x16x32xf32>
    %69 = vector.shape_cast %68 : vector<16x16x32xf32> to vector<256x32xf32>
    %70 = arith.truncf %69 : vector<256x32xf32> to vector<256x32xbf16>
    %c8 = arith.constant 8 : index
    %c0_74 = arith.constant 0 : index
    %c0_75 = arith.constant 0 : index
    %71 = vector.load %arg2[%c8, %c0_74, %c0_75] : memref<9x32x32xbf16, #tpu.memory_space<vmem>>, vector<1x32x32xbf16>
    %72 = vector.shape_cast %71 : vector<1x32x32xbf16> to vector<32x32xbf16>
    %cst_76 = arith.constant dense<0.000000e+00> : vector<256x32xf32>
    %73 = tpu.matmul %70, %72, %cst_76 {dimension_numbers = #tpu.dot_dimension_numbers<[1], [0], [0], [1], [0, 0, 1, 1], [], []>} : vector<256x32xbf16>, vector<32x32xbf16>, vector<256x32xf32> -> vector<256x32xf32>
    %74 = arith.addf %67, %73 : vector<256x32xf32>
    %c0_77 = arith.constant 0 : index
    %c0_78 = arith.constant 0 : index
    %75 = vector.load %arg3[%c0_77, %c0_78] : memref<1x32xf32, #tpu.memory_space<vmem>>, vector<1x32xf32>
    %76 = vector.broadcast %75 : vector<1x32xf32> to vector<256x32xf32>
    %77 = arith.addf %74, %76 : vector<256x32xf32>
    %cst_79 = arith.constant dense<0.000000e+00> : vector<32xf32>
    %78 = vector.multi_reduction <add>, %77, %cst_79 [0] : vector<256x32xf32> to vector<32xf32>
    %79 = vector.shape_cast %78 : vector<32xf32> to vector<1x32xf32>
    %cst_80 = arith.constant 2.560000e+02 : f32
    %80 = vector.broadcast %cst_80 : f32 to vector<1x32xf32>
    %81 = arith.divf %79, %80 : vector<1x32xf32>
    %82 = vector.broadcast %81 : vector<1x32xf32> to vector<256x32xf32>
    %83 = arith.subf %77, %82 : vector<256x32xf32>
    %84 = arith.mulf %83, %83 : vector<256x32xf32>
    %cst_81 = arith.constant dense<0.000000e+00> : vector<32xf32>
    %85 = vector.multi_reduction <add>, %84, %cst_81 [0] : vector<256x32xf32> to vector<32xf32>
    %86 = vector.shape_cast %85 : vector<32xf32> to vector<1x32xf32>
    %cst_82 = arith.constant 2.560000e+02 : f32
    %87 = vector.broadcast %cst_82 : f32 to vector<1x32xf32>
    %88 = arith.divf %86, %87 : vector<1x32xf32>
    %cst_83 = arith.constant 9.99999974E-6 : f32
    %89 = vector.broadcast %cst_83 : f32 to vector<1x32xf32>
    %90 = arith.addf %88, %89 : vector<1x32xf32>
    %91 = math.rsqrt %90 : vector<1x32xf32>
    %92 = vector.broadcast %91 : vector<1x32xf32> to vector<256x32xf32>
    %93 = arith.mulf %83, %92 : vector<256x32xf32>
    %cst_84 = arith.constant 0.000000e+00 : f32
    %94 = vector.broadcast %cst_84 : f32 to vector<256x32xf32>
    %95 = arith.maximumf %93, %94 : vector<256x32xf32>
    %96 = vector.shape_cast %95 : vector<256x32xf32> to vector<16x16x32xf32>
    %c1_85 = arith.constant 1 : index
    %c1_86 = arith.constant 1 : index
    %c0_87 = arith.constant 0 : index
    %97 = vector.load %arg7[%c1_85, %c1_86, %c0_87] : memref<18x18x32xf32, #tpu.memory_space<vmem>>, vector<16x16x32xf32>
    tpu.vector_store %arg7[%c1_85, %c1_86, %c0_87], %96 {strides = array<i32>} : memref<18x18x32xf32, #tpu.memory_space<vmem>>, vector<16x16x32xf32>,
    %98 = vector.extract_strided_slice %96 {offsets = [1, 0, 0], sizes = [1, 16, 32], strides = [1, 1, 1]} : vector<16x16x32xf32> to vector<1x16x32xf32>
    %c0_88 = arith.constant 0 : index
    %c1_89 = arith.constant 1 : index
    %c0_90 = arith.constant 0 : index
    %99 = vector.load %arg7[%c0_88, %c1_89, %c0_90] : memref<18x18x32xf32, #tpu.memory_space<vmem>>, vector<1x16x32xf32>
    tpu.vector_store %arg7[%c0_88, %c1_89, %c0_90], %98 {strides = array<i32>} : memref<18x18x32xf32, #tpu.memory_space<vmem>>, vector<1x16x32xf32>,
    %100 = vector.extract_strided_slice %96 {offsets = [14, 0, 0], sizes = [1, 16, 32], strides = [1, 1, 1]} : vector<16x16x32xf32> to vector<1x16x32xf32>
    %c17_91 = arith.constant 17 : index
    %c1_92 = arith.constant 1 : index
    %c0_93 = arith.constant 0 : index
    %101 = vector.load %arg7[%c17_91, %c1_92, %c0_93] : memref<18x18x32xf32, #tpu.memory_space<vmem>>, vector<1x16x32xf32>
    tpu.vector_store %arg7[%c17_91, %c1_92, %c0_93], %100 {strides = array<i32>} : memref<18x18x32xf32, #tpu.memory_space<vmem>>, vector<1x16x32xf32>,
    %c0_94 = arith.constant 0 : index
    %c2_95 = arith.constant 2 : index
    %c0_96 = arith.constant 0 : index
    %102 = vector.load %arg7[%c0_94, %c2_95, %c0_96] : memref<18x18x32xf32, #tpu.memory_space<vmem>>, vector<18x1x32xf32>
    %c0_97 = arith.constant 0 : index
    %c0_98 = arith.constant 0 : index
    %c0_99 = arith.constant 0 : index
    %103 = vector.load %arg7[%c0_97, %c0_98, %c0_99] : memref<18x18x32xf32, #tpu.memory_space<vmem>>, vector<18x1x32xf32>
    tpu.vector_store %arg7[%c0_97, %c0_98, %c0_99], %102 {strides = array<i32>} : memref<18x18x32xf32, #tpu.memory_space<vmem>>, vector<18x1x32xf32>,
    %c0_100 = arith.constant 0 : index
    %c15_101 = arith.constant 15 : index
    %c0_102 = arith.constant 0 : index
    %104 = vector.load %arg7[%c0_100, %c15_101, %c0_102] : memref<18x18x32xf32, #tpu.memory_space<vmem>>, vector<18x1x32xf32>
    %c0_103 = arith.constant 0 : index
    %c17_104 = arith.constant 17 : index
    %c0_105 = arith.constant 0 : index
    %105 = vector.load %arg7[%c0_103, %c17_104, %c0_105] : memref<18x18x32xf32, #tpu.memory_space<vmem>>, vector<18x1x32xf32>
    tpu.vector_store %arg7[%c0_103, %c17_104, %c0_105], %104 {strides = array<i32>} : memref<18x18x32xf32, #tpu.memory_space<vmem>>, vector<18x1x32xf32>,
    %cst_106 = arith.constant 0.000000e+00 : f32
    %106 = vector.broadcast %cst_106 : f32 to vector<256x32xf32>
    %c0_107 = arith.constant 0 : index
    %c0_108 = arith.constant 0 : index
    %c0_109 = arith.constant 0 : index
    %107 = vector.load %arg7[%c0_107, %c0_108, %c0_109] : memref<18x18x32xf32, #tpu.memory_space<vmem>>, vector<16x16x32xf32>
    %108 = vector.shape_cast %107 : vector<16x16x32xf32> to vector<256x32xf32>
    %109 = arith.truncf %108 : vector<256x32xf32> to vector<256x32xbf16>
    %c0_110 = arith.constant 0 : index
    %c0_111 = arith.constant 0 : index
    %c0_112 = arith.constant 0 : index
    %110 = vector.load %arg4[%c0_110, %c0_111, %c0_112] : memref<9x32x32xbf16, #tpu.memory_space<vmem>>, vector<1x32x32xbf16>
    %111 = vector.shape_cast %110 : vector<1x32x32xbf16> to vector<32x32xbf16>
    %cst_113 = arith.constant dense<0.000000e+00> : vector<256x32xf32>
    %112 = tpu.matmul %109, %111, %cst_113 {dimension_numbers = #tpu.dot_dimension_numbers<[1], [0], [0], [1], [0, 0, 1, 1], [], []>} : vector<256x32xbf16>, vector<32x32xbf16>, vector<256x32xf32> -> vector<256x32xf32>
    %113 = arith.addf %106, %112 : vector<256x32xf32>
    %c0_114 = arith.constant 0 : index
    %c1_115 = arith.constant 1 : index
    %c0_116 = arith.constant 0 : index
    %114 = vector.load %arg7[%c0_114, %c1_115, %c0_116] : memref<18x18x32xf32, #tpu.memory_space<vmem>>, vector<16x16x32xf32>
    %115 = vector.shape_cast %114 : vector<16x16x32xf32> to vector<256x32xf32>
    %116 = arith.truncf %115 : vector<256x32xf32> to vector<256x32xbf16>
    %c1_117 = arith.constant 1 : index
    %c0_118 = arith.constant 0 : index
    %c0_119 = arith.constant 0 : index
    %117 = vector.load %arg4[%c1_117, %c0_118, %c0_119] : memref<9x32x32xbf16, #tpu.memory_space<vmem>>, vector<1x32x32xbf16>
    %118 = vector.shape_cast %117 : vector<1x32x32xbf16> to vector<32x32xbf16>
    %cst_120 = arith.constant dense<0.000000e+00> : vector<256x32xf32>
    %119 = tpu.matmul %116, %118, %cst_120 {dimension_numbers = #tpu.dot_dimension_numbers<[1], [0], [0], [1], [0, 0, 1, 1], [], []>} : vector<256x32xbf16>, vector<32x32xbf16>, vector<256x32xf32> -> vector<256x32xf32>
    %120 = arith.addf %113, %119 : vector<256x32xf32>
    %c0_121 = arith.constant 0 : index
    %c2_122 = arith.constant 2 : index
    %c0_123 = arith.constant 0 : index
    %121 = vector.load %arg7[%c0_121, %c2_122, %c0_123] : memref<18x18x32xf32, #tpu.memory_space<vmem>>, vector<16x16x32xf32>
    %122 = vector.shape_cast %121 : vector<16x16x32xf32> to vector<256x32xf32>
    %123 = arith.truncf %122 : vector<256x32xf32> to vector<256x32xbf16>
    %c2_124 = arith.constant 2 : index
    %c0_125 = arith.constant 0 : index
    %c0_126 = arith.constant 0 : index
    %124 = vector.load %arg4[%c2_124, %c0_125, %c0_126] : memref<9x32x32xbf16, #tpu.memory_space<vmem>>, vector<1x32x32xbf16>
    %125 = vector.shape_cast %124 : vector<1x32x32xbf16> to vector<32x32xbf16>
    %cst_127 = arith.constant dense<0.000000e+00> : vector<256x32xf32>
    %126 = tpu.matmul %123, %125, %cst_127 {dimension_numbers = #tpu.dot_dimension_numbers<[1], [0], [0], [1], [0, 0, 1, 1], [], []>} : vector<256x32xbf16>, vector<32x32xbf16>, vector<256x32xf32> -> vector<256x32xf32>
    %127 = arith.addf %120, %126 : vector<256x32xf32>
    %c1_128 = arith.constant 1 : index
    %c0_129 = arith.constant 0 : index
    %c0_130 = arith.constant 0 : index
    %128 = vector.load %arg7[%c1_128, %c0_129, %c0_130] : memref<18x18x32xf32, #tpu.memory_space<vmem>>, vector<16x16x32xf32>
    %129 = vector.shape_cast %128 : vector<16x16x32xf32> to vector<256x32xf32>
    %130 = arith.truncf %129 : vector<256x32xf32> to vector<256x32xbf16>
    %c3_131 = arith.constant 3 : index
    %c0_132 = arith.constant 0 : index
    %c0_133 = arith.constant 0 : index
    %131 = vector.load %arg4[%c3_131, %c0_132, %c0_133] : memref<9x32x32xbf16, #tpu.memory_space<vmem>>, vector<1x32x32xbf16>
    %132 = vector.shape_cast %131 : vector<1x32x32xbf16> to vector<32x32xbf16>
    %cst_134 = arith.constant dense<0.000000e+00> : vector<256x32xf32>
    %133 = tpu.matmul %130, %132, %cst_134 {dimension_numbers = #tpu.dot_dimension_numbers<[1], [0], [0], [1], [0, 0, 1, 1], [], []>} : vector<256x32xbf16>, vector<32x32xbf16>, vector<256x32xf32> -> vector<256x32xf32>
    %134 = arith.addf %127, %133 : vector<256x32xf32>
    %c1_135 = arith.constant 1 : index
    %c1_136 = arith.constant 1 : index
    %c0_137 = arith.constant 0 : index
    %135 = vector.load %arg7[%c1_135, %c1_136, %c0_137] : memref<18x18x32xf32, #tpu.memory_space<vmem>>, vector<16x16x32xf32>
    %136 = vector.shape_cast %135 : vector<16x16x32xf32> to vector<256x32xf32>
    %137 = arith.truncf %136 : vector<256x32xf32> to vector<256x32xbf16>
    %c4_138 = arith.constant 4 : index
    %c0_139 = arith.constant 0 : index
    %c0_140 = arith.constant 0 : index
    %138 = vector.load %arg4[%c4_138, %c0_139, %c0_140] : memref<9x32x32xbf16, #tpu.memory_space<vmem>>, vector<1x32x32xbf16>
    %139 = vector.shape_cast %138 : vector<1x32x32xbf16> to vector<32x32xbf16>
    %cst_141 = arith.constant dense<0.000000e+00> : vector<256x32xf32>
    %140 = tpu.matmul %137, %139, %cst_141 {dimension_numbers = #tpu.dot_dimension_numbers<[1], [0], [0], [1], [0, 0, 1, 1], [], []>} : vector<256x32xbf16>, vector<32x32xbf16>, vector<256x32xf32> -> vector<256x32xf32>
    %141 = arith.addf %134, %140 : vector<256x32xf32>
    %c1_142 = arith.constant 1 : index
    %c2_143 = arith.constant 2 : index
    %c0_144 = arith.constant 0 : index
    %142 = vector.load %arg7[%c1_142, %c2_143, %c0_144] : memref<18x18x32xf32, #tpu.memory_space<vmem>>, vector<16x16x32xf32>
    %143 = vector.shape_cast %142 : vector<16x16x32xf32> to vector<256x32xf32>
    %144 = arith.truncf %143 : vector<256x32xf32> to vector<256x32xbf16>
    %c5_145 = arith.constant 5 : index
    %c0_146 = arith.constant 0 : index
    %c0_147 = arith.constant 0 : index
    %145 = vector.load %arg4[%c5_145, %c0_146, %c0_147] : memref<9x32x32xbf16, #tpu.memory_space<vmem>>, vector<1x32x32xbf16>
    %146 = vector.shape_cast %145 : vector<1x32x32xbf16> to vector<32x32xbf16>
    %cst_148 = arith.constant dense<0.000000e+00> : vector<256x32xf32>
    %147 = tpu.matmul %144, %146, %cst_148 {dimension_numbers = #tpu.dot_dimension_numbers<[1], [0], [0], [1], [0, 0, 1, 1], [], []>} : vector<256x32xbf16>, vector<32x32xbf16>, vector<256x32xf32> -> vector<256x32xf32>
    %148 = arith.addf %141, %147 : vector<256x32xf32>
    %c2_149 = arith.constant 2 : index
    %c0_150 = arith.constant 0 : index
    %c0_151 = arith.constant 0 : index
    %149 = vector.load %arg7[%c2_149, %c0_150, %c0_151] : memref<18x18x32xf32, #tpu.memory_space<vmem>>, vector<16x16x32xf32>
    %150 = vector.shape_cast %149 : vector<16x16x32xf32> to vector<256x32xf32>
    %151 = arith.truncf %150 : vector<256x32xf32> to vector<256x32xbf16>
    %c6_152 = arith.constant 6 : index
    %c0_153 = arith.constant 0 : index
    %c0_154 = arith.constant 0 : index
    %152 = vector.load %arg4[%c6_152, %c0_153, %c0_154] : memref<9x32x32xbf16, #tpu.memory_space<vmem>>, vector<1x32x32xbf16>
    %153 = vector.shape_cast %152 : vector<1x32x32xbf16> to vector<32x32xbf16>
    %cst_155 = arith.constant dense<0.000000e+00> : vector<256x32xf32>
    %154 = tpu.matmul %151, %153, %cst_155 {dimension_numbers = #tpu.dot_dimension_numbers<[1], [0], [0], [1], [0, 0, 1, 1], [], []>} : vector<256x32xbf16>, vector<32x32xbf16>, vector<256x32xf32> -> vector<256x32xf32>
    %155 = arith.addf %148, %154 : vector<256x32xf32>
    %c2_156 = arith.constant 2 : index
    %c1_157 = arith.constant 1 : index
    %c0_158 = arith.constant 0 : index
    %156 = vector.load %arg7[%c2_156, %c1_157, %c0_158] : memref<18x18x32xf32, #tpu.memory_space<vmem>>, vector<16x16x32xf32>
    %157 = vector.shape_cast %156 : vector<16x16x32xf32> to vector<256x32xf32>
    %158 = arith.truncf %157 : vector<256x32xf32> to vector<256x32xbf16>
    %c7_159 = arith.constant 7 : index
    %c0_160 = arith.constant 0 : index
    %c0_161 = arith.constant 0 : index
    %159 = vector.load %arg4[%c7_159, %c0_160, %c0_161] : memref<9x32x32xbf16, #tpu.memory_space<vmem>>, vector<1x32x32xbf16>
    %160 = vector.shape_cast %159 : vector<1x32x32xbf16> to vector<32x32xbf16>
    %cst_162 = arith.constant dense<0.000000e+00> : vector<256x32xf32>
    %161 = tpu.matmul %158, %160, %cst_162 {dimension_numbers = #tpu.dot_dimension_numbers<[1], [0], [0], [1], [0, 0, 1, 1], [], []>} : vector<256x32xbf16>, vector<32x32xbf16>, vector<256x32xf32> -> vector<256x32xf32>
    %162 = arith.addf %155, %161 : vector<256x32xf32>
    %c2_163 = arith.constant 2 : index
    %c2_164 = arith.constant 2 : index
    %c0_165 = arith.constant 0 : index
    %163 = vector.load %arg7[%c2_163, %c2_164, %c0_165] : memref<18x18x32xf32, #tpu.memory_space<vmem>>, vector<16x16x32xf32>
    %164 = vector.shape_cast %163 : vector<16x16x32xf32> to vector<256x32xf32>
    %165 = arith.truncf %164 : vector<256x32xf32> to vector<256x32xbf16>
    %c8_166 = arith.constant 8 : index
    %c0_167 = arith.constant 0 : index
    %c0_168 = arith.constant 0 : index
    %166 = vector.load %arg4[%c8_166, %c0_167, %c0_168] : memref<9x32x32xbf16, #tpu.memory_space<vmem>>, vector<1x32x32xbf16>
    %167 = vector.shape_cast %166 : vector<1x32x32xbf16> to vector<32x32xbf16>
    %cst_169 = arith.constant dense<0.000000e+00> : vector<256x32xf32>
    %168 = tpu.matmul %165, %167, %cst_169 {dimension_numbers = #tpu.dot_dimension_numbers<[1], [0], [0], [1], [0, 0, 1, 1], [], []>} : vector<256x32xbf16>, vector<32x32xbf16>, vector<256x32xf32> -> vector<256x32xf32>
    %169 = arith.addf %162, %168 : vector<256x32xf32>
    %c0_170 = arith.constant 0 : index
    %c0_171 = arith.constant 0 : index
    %170 = vector.load %arg5[%c0_170, %c0_171] : memref<1x32xf32, #tpu.memory_space<vmem>>, vector<1x32xf32>
    %171 = vector.broadcast %170 : vector<1x32xf32> to vector<256x32xf32>
    %172 = arith.addf %169, %171 : vector<256x32xf32>
    %cst_172 = arith.constant dense<0.000000e+00> : vector<32xf32>
    %173 = vector.multi_reduction <add>, %172, %cst_172 [0] : vector<256x32xf32> to vector<32xf32>
    %174 = vector.shape_cast %173 : vector<32xf32> to vector<1x32xf32>
    %cst_173 = arith.constant 2.560000e+02 : f32
    %175 = vector.broadcast %cst_173 : f32 to vector<1x32xf32>
    %176 = arith.divf %174, %175 : vector<1x32xf32>
    %177 = vector.broadcast %176 : vector<1x32xf32> to vector<256x32xf32>
    %178 = arith.subf %172, %177 : vector<256x32xf32>
    %179 = arith.mulf %178, %178 : vector<256x32xf32>
    %cst_174 = arith.constant dense<0.000000e+00> : vector<32xf32>
    %180 = vector.multi_reduction <add>, %179, %cst_174 [0] : vector<256x32xf32> to vector<32xf32>
    %181 = vector.shape_cast %180 : vector<32xf32> to vector<1x32xf32>
    %cst_175 = arith.constant 2.560000e+02 : f32
    %182 = vector.broadcast %cst_175 : f32 to vector<1x32xf32>
    %183 = arith.divf %181, %182 : vector<1x32xf32>
    %cst_176 = arith.constant 9.99999974E-6 : f32
    %184 = vector.broadcast %cst_176 : f32 to vector<1x32xf32>
    %185 = arith.addf %183, %184 : vector<1x32xf32>
    %186 = math.rsqrt %185 : vector<1x32xf32>
    %187 = vector.broadcast %186 : vector<1x32xf32> to vector<256x32xf32>
    %188 = arith.mulf %178, %187 : vector<256x32xf32>
    %189 = vector.shape_cast %1 : vector<16x16x32xf32> to vector<256x32xf32>
    %190 = arith.addf %189, %188 : vector<256x32xf32>
    %191 = vector.shape_cast %190 : vector<256x32xf32> to vector<16x16x32xf32>
    %c0_177 = arith.constant 0 : index
    %c0_178 = arith.constant 0 : index
    %c0_179 = arith.constant 0 : index
    %c0_180 = arith.constant 0 : index
    %192 = vector.load %arg6[%c0_177, %c0_178, %c0_179, %c0_180] : memref<1x16x16x32xf32, #tpu.memory_space<vmem>>, vector<1x16x16x32xf32>
    %193 = vector.shape_cast %192 : vector<1x16x16x32xf32> to vector<16x16x32xf32>
    %194 = vector.shape_cast %191 : vector<16x16x32xf32> to vector<1x16x16x32xf32>
    tpu.vector_store %arg6[%c0_177, %c0_178, %c0_179, %c0_180], %194 {strides = array<i32>} : memref<1x16x16x32xf32, #tpu.memory_space<vmem>>, vector<1x16x16x32xf32>,
    return
  }
  func.func @transform_0(%arg0: i32) -> (i32, i32, i32, i32) {
    %c0_i32 = arith.constant 0 : i32
    %c0_i32_0 = arith.constant 0 : i32
    %c0_i32_1 = arith.constant 0 : i32
    %c0_i32_2 = arith.constant 0 : i32
    return %arg0, %c0_i32, %c0_i32_0, %c0_i32_1 : i32, i32, i32, i32
  }
  func.func @transform_1(%arg0: i32) -> (i32, i32, i32) {
    %c0_i32 = arith.constant 0 : i32
    %c0_i32_0 = arith.constant 0 : i32
    %c0_i32_1 = arith.constant 0 : i32
    %c0_i32_2 = arith.constant 0 : i32
    return %c0_i32, %c0_i32_0, %c0_i32_1 : i32, i32, i32
  }
  func.func @transform_2(%arg0: i32) -> (i32, i32) {
    %c0_i32 = arith.constant 0 : i32
    %c0_i32_0 = arith.constant 0 : i32
    %c0_i32_1 = arith.constant 0 : i32
    return %c0_i32, %c0_i32_0 : i32, i32
  }
  func.func @transform_3(%arg0: i32) -> (i32, i32, i32) {
    %c0_i32 = arith.constant 0 : i32
    %c0_i32_0 = arith.constant 0 : i32
    %c0_i32_1 = arith.constant 0 : i32
    %c0_i32_2 = arith.constant 0 : i32
    return %c0_i32, %c0_i32_0, %c0_i32_1 : i32, i32, i32
  }
  func.func @transform_4(%arg0: i32) -> (i32, i32) {
    %c0_i32 = arith.constant 0 : i32
    %c0_i32_0 = arith.constant 0 : i32
    %c0_i32_1 = arith.constant 0 : i32
    return %c0_i32, %c0_i32_0 : i32, i32
  }
  func.func @transform_5(%arg0: i32) -> (i32, i32, i32, i32) {
    %c0_i32 = arith.constant 0 : i32
    %c0_i32_0 = arith.constant 0 : i32
    %c0_i32_1 = arith.constant 0 : i32
    %c0_i32_2 = arith.constant 0 : i32
    return %arg0, %c0_i32, %c0_i32_0, %c0_i32_1 : i32, i32, i32, i32
  }
}

</mosaic_0001>

<bundles_post_ra>
// kernel: resnet_block_forward.1
= control target key start
LH: loop header
LB: loop body
LE: loop exit
PB: predicated region body
PF: predicated region fallthrough
CT: control target
= control target key end

     0   :  { %10 = vsyncpa [#allocation4], 0  ;;  %s10742_s0 = inlined_call_operand.vmem [shape: f32[2,16,16,32], index: 0, kind: input, shape index: {}]   ;;  %s10743_s1 = inlined_call_operand.vmem [shape: bf16[9,32,32], index: 1, kind: input, shape index: {}]   ;;  %s10744_s2 = inlined_call_operand.vmem [shape: f32[1,32], index: 2, kind: input, shape index: {}]   ;;  %s10745_s3 = inlined_call_operand.vmem [shape: bf16[9,32,32], index: 3, kind: input, shape index: {}]   ;;  %s10746_s4 = inlined_call_operand.vmem [shape: f32[1,32], index: 4, kind: input, shape index: {}]   ;;  %s10747_s5 = inlined_call_operand.hbm [shape: f32[2,16,16,32], index: 5, kind: output, shape index: {}]  }
   0x1   :  { %12 = vsyncpa [#allocation4 + $0x1], 0  ;;  %s8648_s18 = smov 0   ;;  %s8650_s19 = smov 0  }
   0x2   :  { %s8652_s20 = smov 0   ;;  %s8654_s21 = smov 0  }
   0x3 LB: > { %s8669_s22 = sadd.s32 4294967295, %s8613_s21   ;;  %s6582_s23 = sadd.s32 4294967294, %s8613_s21   ;;  %s8613_s21 = sphi %s8654_s21, %s10816_s21   ;;  %s8609_s20 = sphi %s8652_s20, %s10815_s20   ;;  %s8605_s19 = sphi %s8650_s19, %s10814_s19   ;;  %s8601_s18 = sphi %s8648_s18, %s10813_s18  }
   0x4   : > { %s8673_s24 = sadd.s32 1, %s8613_s21   ;;  %s135_s25 = sadd.s32 1, %s8609_s20 }
   0x5   : > { %s132_s26 = ssub.s32 %s8613_s21, %s8673_s24  ;;  %p145_p0 = scmp.ne.s32.totalorder %s8609_s20, %s8605_s19 }
   0x6   : > { %p133_p1 = scmp.eq.s32.totalorder %s132_s26, 0  ;;  %p146_p2 = scmp.eq.s32.totalorder %s8669_s22, 1 }
   0x7   : > { %p151_p3 = scmp.ne.s32.totalorder %s8605_s19, %s8601_s18  ;;  %p152_p4 = scmp.eq.s32.totalorder %s6582_s23, 1 }
   0x8   : > { %s8684_s27 = scalar_select %p133_p1, %s8609_s20, %s135_s25  }
   0x9   : > { %p8686_p5 = por %p146_p2, %p145_p0  ;;  %p8690_p6 = por %p152_p4, %p151_p3 }
   0xa   : > { %p6585_p7 = scmp.ge.s32.totalorder %s8613_s21, 1  ;;  %p190_p8 = scmp.lt.s32.totalorder %s8613_s21, 3 }
   0xc   : > { %p191_p9 = pnand %p6585_p7, %p190_p8 }
   0xe   : > { %194 = sbr.rel (%p191_p9) target bundleno = 1918 (0x77e), region = 40 }
  0x15   : > { %v8511_v0 = vld [vmem:[%s10743_s1 + $0x10] sm:$0xff]   ;;  %p218_p10 = scmp.lt.s32.totalorder %s8669_s22, 1  ;;  %v8512_v1 = vld [vmem:[%s10743_s1 + $0x18] sm:$0xff]   ;;  %vm257_vm0 = vcmask 261120   ;;  %v8707_v2 = vld [vmem:[%s10743_s1] sm:$0xff]   ;;  %vm313_vm1 = vcmask 253952  }
  0x16   : > { %7310 = vmatprep.subr.bf16.mxu0 %v8511_v0  ;;  %v8514_v36 = vld [vmem:[%s10743_s1 + $0x8] sm:$0xff]   ;;  %v8855_v41 = vld [vmem:[%s10743_s1 + $0x20] sm:$0xff]   ;;  %s215_s6 = sand.u32 1, %s8605_s19  }
  0x17   : > { %s219_s9 = scalar_select %p218_p10, %s8669_s22, 1  ;;  %7311 = vmatpush3.bf16.msra.mxu0 %v8511_v0 }
  0x18   : > { %7312 = vmatprep.subr.bf16.mxu0 %v8512_v1  ;;  %s6586_s7 = sshll.u32 %s215_s6, 8  ;;  %s10701_s13 = scalar_lea.sflag [#allocation4], %s215_s6 }
  0x19   : > { %s6984_s10 = sshll.u32 %s219_s9, 8  ;;  %s10576_s8 = scalar_lea.vmem [#allocation3], %s6586_s7 }
  0x1a   : > { %s8712_s15 = scalar_lea.vmem %s10742_s0, %s6984_s10  ;;  %s6985_s9 = sshll.u32 %s8669_s22, 12 }
  0x1b   : > { %v8715_v3 = vld [vmem:[%s8712_s15 + $0x10] sm:$0xff]  ;;  %v8718_v4 = vld [vmem:[%s8712_s15 + $0x18] sm:$0xff]  ;;  %v8721_v5 = vld [vmem:[%s8712_s15] sm:$0xff]  ;;  %7313 = vmatpush3.bf16.msra.mxu0 %v8512_v1  ;;  %s6520_s10 = sshll.u32 %s10576_s8, 4  ;;  %s10667_s12 = scalar_lea.hbm %s10747_s5, %s6985_s9  ;;  %s10669_s10 = int_to_ptr.vmem [resolvable:$true] %s6520_s10 }
  0x1c   : > { %260 = vst.msk [vmem:[#allocation2 + $0x31] sm:$0xff] %vm257_vm0, %v8715_v3  ;;  %261 = vst.msk [vmem:[#allocation2 + $0x39] sm:$0xff] %vm257_vm0, %v8718_v4  ;;  %v8732_v6 = vld [vmem:[%s8712_s15 + $0x8] sm:$0xff]  ;;  %v8737_v7 = vld [vmem:[%s8712_s15 + $0x20] sm:$0xff]  ;;  %7346 = vmatprep.subr.bf16.mxu0 %v8707_v2  ;;  %s8551_s14 = scalar_lea.vmem %s10669_s10, 4096 }
  0x1d   : > { %290 = vst.msk [vmem:[#allocation2 + $0x1] sm:$0xff] %vm257_vm0, %v8715_v3  ;;  %291 = vst.msk [vmem:[#allocation2 + $0x9] sm:$0xff] %vm257_vm0, %v8718_v4  ;;  %v8740_v8 = vld [vmem:[%s8712_s15 + $0x28] sm:$0xff]  ;;  %v8750_v9 = vld [vmem:[%s8712_s15 + $0x30] sm:$0xff]  ;;  %p8552_p11 = scmp.ne.s32.totalorder %s10669_s10, %s8551_s14 }
  0x1e   : > { %258 = vst.msk [vmem:[#allocation2 + $0x19] sm:$0xff] %vm257_vm0, %v8721_v5  ;;  %259 = vst.msk [vmem:[#allocation2 + $0x21] sm:$0xff] %vm257_vm0, %v8732_v6  ;;  %v8753_v10 = vld [vmem:[%s8712_s15 + $0x38] sm:$0xff]  ;;  %v8756_v11 = vld [vmem:[%s8712_s15 + $0x40] sm:$0xff] }
  0x1f   : > { %262 = vst.msk [vmem:[#allocation2 + $0x49] sm:$0xff] %vm257_vm0, %v8737_v7  ;;  %263 = vst.msk [vmem:[#allocation2 + $0x51] sm:$0xff] %vm257_vm0, %v8740_v8  ;;  %v8763_v12 = vld [vmem:[%s8712_s15 + $0x48] sm:$0xff]  ;;  %v8768_v13 = vld [vmem:[%s8712_s15 + $0x50] sm:$0xff]  ;;  %p8553_p12 = pnand %p8552_p11, %p8686_p5 }
  0x20   : > { %264 = vst.msk [vmem:[#allocation2 + $0x61] sm:$0xff] %vm257_vm0, %v8750_v9  ;;  %265 = vst.msk [vmem:[#allocation2 + $0x69] sm:$0xff] %vm257_vm0, %v8753_v10  ;;  %v8771_v14 = vld [vmem:[%s8712_s15 + $0x58] sm:$0xff]  ;;  %v8780_v15 = vld [vmem:[%s8712_s15 + $0x60] sm:$0xff] }
  0x21   : > { %266 = vst.msk [vmem:[#allocation2 + $0x79] sm:$0xff] %vm257_vm0, %v8756_v11  ;;  %10771 = vst [vmem:[#allocation6_spill] sm:$0xff] %v8768_v13  ;;  %v8783_v16 = vld [vmem:[%s8712_s15 + $0x68] sm:$0xff]  ;;  %v8786_v17 = vld [vmem:[%s8712_s15 + $0x70] sm:$0xff]  ;;  %p8554_p13 = pneg %p8553_p12 }
  0x22   : > { %10772 = vst [vmem:[#allocation7_spill] sm:$0xff] %v8771_v14  ;;  %267 = vst.msk [vmem:[#allocation2 + $0x81] sm:$0xff] %vm257_vm0, %v8763_v12  ;;  %v8793_v18 = vld [vmem:[%s8712_s15 + $0x78] sm:$0xff]  ;;  %v8798_v19 = vld [vmem:[%s8712_s15 + $0x80] sm:$0xff] }
  0x23   : > { %268 = vst.msk [vmem:[#allocation2 + $0x91] sm:$0xff] %vm257_vm0, %v8768_v13  ;;  %269 = vst.msk [vmem:[#allocation2 + $0x99] sm:$0xff] %vm257_vm0, %v8771_v14  ;;  %v8801_v20 = vld [vmem:[%s8712_s15 + $0x88] sm:$0xff]  ;;  %v8810_v21 = vld [vmem:[%s8712_s15 + $0x90] sm:$0xff] }
  0x24   : > { %10773 = vst [vmem:[#allocation8_spill] sm:$0xff] %v8780_v15  ;;  %10774 = vst [vmem:[#allocation9_spill] sm:$0xff] %v8783_v16  ;;  %v8813_v22 = vld [vmem:[%s8712_s15 + $0x98] sm:$0xff]  ;;  %v8816_v23 = vld [vmem:[%s8712_s15 + $0xa0] sm:$0xff] }
  0x25   : > { %10775 = vst [vmem:[#allocation10_spill] sm:$0xff] %v8786_v17  ;;  %270 = vst.msk [vmem:[#allocation2 + $0xa9] sm:$0xff] %vm257_vm0, %v8780_v15  ;;  %v8823_v24 = vld [vmem:[%s8712_s15 + $0xa8] sm:$0xff]  ;;  %v8828_v25 = vld [vmem:[%s8712_s15 + $0xb0] sm:$0xff] }
  0x26   : > { %271 = vst.msk [vmem:[#allocation2 + $0xb1] sm:$0xff] %vm257_vm0, %v8783_v16  ;;  %10776 = vst [vmem:[#allocation11_spill] sm:$0xff] %v8793_v18  ;;  %v8831_v26 = vld [vmem:[%s8712_s15 + $0xb8] sm:$0xff]  ;;  %v420_v27 = vld [vmem:[#allocation2 + $0x1] sm:$0xff] }
  0x27   : > { %272 = vst.msk [vmem:[#allocation2 + $0xc1] sm:$0xff] %vm257_vm0, %v8786_v17  ;;  %10777 = vst [vmem:[#allocation12_spill] sm:$0xff] %v8798_v19  ;;  %v421_v28 = vld [vmem:[#allocation2 + $0x9] sm:$0xff]  ;;  %v422_v29 = vld [vmem:[#allocation2 + $0x19] sm:$0xff] }
  0x28   : > { %10778 = vst [vmem:[#allocation13_spill] sm:$0xff] %v8801_v20  ;;  %273 = vst.msk [vmem:[#allocation2 + $0xc9] sm:$0xff] %vm257_vm0, %v8793_v18  ;;  %v452_v30 = vpack.c.bf16 %v421_v28, %v420_v27  ;;  %v423_v31 = vld [vmem:[#allocation2 + $0x21] sm:$0xff]  ;;  %v424_v32 = vld [vmem:[#allocation2 + $0x31] sm:$0xff] }
  0x29   : > { %274 = vst.msk [vmem:[#allocation2 + $0xd9] sm:$0xff] %vm257_vm0, %v8798_v19  ;;  %275 = vst.msk [vmem:[#allocation2 + $0xe1] sm:$0xff] %vm257_vm0, %v8801_v20  ;;  %v425_v33 = vld [vmem:[#allocation2 + $0x39] sm:$0xff]  ;;  %v8839_v34 = vpack.c.bf16 %v423_v31, %v422_v29  ;;  %v426_v37 = vld [vmem:[#allocation2 + $0x49] sm:$0xff] }
  0x2a   : > { %10779 = vst [vmem:[#allocation14_spill] sm:$0xff] %v8810_v21  ;;  %10780 = vst [vmem:[#allocation15_spill] sm:$0xff] %v8813_v22  ;;  %v8841_v35 = vpack.c.bf16 %v425_v33, %v424_v32  ;;  %7314 = vmatprep.mubr.msk.bf16.mxu0 %vm257_vm0, %v452_v30  ;;  %v427_v38 = vld [vmem:[#allocation2 + $0x51] sm:$0xff]  ;;  %v428_v39 = vld [vmem:[#allocation2 + $0x61] sm:$0xff] }
  0x2b   : > { %10781 = vst [vmem:[#allocation16_spill] sm:$0xff] %v8816_v23  ;;  %276 = vst.msk [vmem:[#allocation2 + $0xf1] sm:$0xff] %vm257_vm0, %v8810_v21  ;;  %7315 = vmatmul.mubr.msk.bf16.vlgmr.msra.gmra.mrb[0].mxu0 %vm257_vm0, %v8839_v34  ;;  %v429_v40 = vld [vmem:[#allocation2 + $0x69] sm:$0xff]  ;;  %v8857_v42 = vpack.c.bf16 %v427_v38, %v426_v37  ;;  %v8860_v43 = vld [vmem:[%s8712_s15 + $0xc0] sm:$0xff] }
  0x2c   : > { %277 = vst.msk [vmem:[#allocation2 + $0xf9] sm:$0xff] %vm257_vm0, %v8813_v22  ;;  %10782 = vst [vmem:[#allocation17_spill] sm:$0xff] %v8823_v24  ;;  %7347 = vmatpush3.bf16.msra.mxu0 %v8707_v2  ;;  %7318 = vmatprep.mubr.msk.bf16.mxu0 %vm257_vm0, %v8841_v35  ;;  %v8862_v44 = vpack.c.bf16 %v429_v40, %v428_v39  ;;  %v8865_v45 = vld [vmem:[%s8712_s15 + $0xc8] sm:$0xff]  ;;  %v8870_v46 = vld [vmem:[%s8712_s15 + $0xd0] sm:$0xff] }
  0x2d   : > { %278 = vst.msk [vmem:[#allocation2 + $0x109] sm:$0xff] %vm257_vm0, %v8816_v23  ;;  %10783 = vst [vmem:[#allocation18_spill] sm:$0xff] %v8828_v25  ;;  %7348 = vmatprep.subr.bf16.mxu0 %v8514_v36  ;;  %v8873_v47 = vld [vmem:[%s8712_s15 + $0xd8] sm:$0xff]  ;;  %v8882_v48 = vld [vmem:[%s8712_s15 + $0xe0] sm:$0xff] }
  0x2e   : > { %10784 = vst [vmem:[#allocation19_spill] sm:$0xff] %v8831_v26  ;;  %279 = vst.msk [vmem:[#allocation2 + $0x111] sm:$0xff] %vm257_vm0, %v8823_v24  ;;  %v8885_v49 = vld [vmem:[%s8712_s15 + $0xe8] sm:$0xff]  ;;  %v295_v50 = vld [vmem:[#allocation2 + $0x2] sm:$0x1] }
  0x2f   : > { %280 = vst.msk [vmem:[#allocation2 + $0x121] sm:$0xff] %vm257_vm0, %v8828_v25  ;;  %281 = vst.msk [vmem:[#allocation2 + $0x129] sm:$0xff] %vm257_vm0, %v8831_v26  ;;  %v296_v51 = vld [vmem:[#allocation2 + $0x1a] sm:$0x1]  ;;  %v297_v53 = vld [vmem:[#allocation2 + $0x32] sm:$0x1] }
  0x30   : > { %10785 = vst [vmem:[#allocation20_spill] sm:$0xff] %v8860_v43  ;;  %7349 = vmatpush3.bf16.msra.mxu0 %v8514_v36  ;;  %10786 = vst [vmem:[#allocation21_spill] sm:$0xff] %v8865_v45  ;;  %v430_v52 = vld [vmem:[#allocation2 + $0x79] sm:$0xff]  ;;  %v298_v54 = vld [vmem:[#allocation2 + $0x4a] sm:$0x1] }
  0x31   : > { %282 = vst.msk [vmem:[#allocation2 + $0x139] sm:$0xff] %vm257_vm0, %v8860_v43  ;;  %10787 = vst [vmem:[#allocation22_spill] sm:$0xff] %v8870_v46  ;;  %7382 = vmatprep.subr.bf16.mxu0 %v8855_v41  ;;  %v431_v55 = vld [vmem:[#allocation2 + $0x81] sm:$0xff]  ;;  %v432_v56 = vld [vmem:[#allocation2 + $0x91] sm:$0xff] }
  0x32   : > { %10788 = vst [vmem:[#allocation23_spill] sm:$0xff] %v8873_v47  ;;  %283 = vst.msk [vmem:[#allocation2 + $0x141] sm:$0xff] %vm257_vm0, %v8865_v45  ;;  %v299_v57 = vld [vmem:[#allocation2 + $0x62] sm:$0x1]  ;;  %v433_v58 = vld [vmem:[#allocation2 + $0x99] sm:$0xff]  ;;  %v8907_v62 = vpack.c.bf16 %v431_v55, %v430_v52 }
  0x33   : > { %284 = vst.msk [vmem:[#allocation2 + $0x151] sm:$0xff] %vm257_vm0, %v8870_v46  ;;  %285 = vst.msk [vmem:[#allocation2 + $0x159] sm:$0xff] %vm257_vm0, %v8873_v47  ;;  %7319 = vmatmul.mubr.msk.bf16.gmra.mrb[4].mxu0 %vm257_vm0, %v8857_v42  ;;  %v300_v59 = vld [vmem:[#allocation2 + $0x7a] sm:$0x1]  ;;  %v301_v60 = vld [vmem:[#allocation2 + $0x92] sm:$0x1]  ;;  %v8910_v0 = vpack.c.bf16 %v433_v58, %v432_v56 }
  0x34   : > { %10789 = vst [vmem:[#allocation24_spill] sm:$0xff] %v8882_v48  ;;  %286 = vst.msk [vmem:[#allocation2 + $0x169] sm:$0xff] %vm257_vm0, %v8882_v48  ;;  %7322 = vmatprep.mubr.msk.bf16.mxu0 %vm257_vm0, %v8862_v44  ;;  %v302_v61 = vld [vmem:[#allocation2 + $0xaa] sm:$0x1]  ;;  %v303_v63 = vld [vmem:[#allocation2 + $0xc2] sm:$0x1] }
  0x35   : > { %287 = vst.msk [vmem:[#allocation2 + $0x171] sm:$0xff] %vm257_vm0, %v8885_v49  ;;  %293 = vst.msk [vmem:[#allocation2 + $0x199] sm:$0xff] %vm257_vm0, %v8882_v48  ;;  %v304_v1 = vld [vmem:[#allocation2 + $0xda] sm:$0x1]  ;;  %v305_v2 = vld [vmem:[#allocation2 + $0xf2] sm:$0x1] }
  0x36   : > { %294 = vst.msk [vmem:[#allocation2 + $0x1a1] sm:$0xff] %vm257_vm0, %v8885_v49  ;;  %v434_v27 = vld [vmem:[#allocation2 + $0xa9] sm:$0xff]  ;;  %v435_v28 = vld [vmem:[#allocation2 + $0xb1] sm:$0xff]  ;;  %v436_v30 = vld [vmem:[#allocation2 + $0xc1] sm:$0xff] }
  0x37   : > { %314 = vst.msk [vmem:[#allocation2] sm:$0x1] %vm313_vm1, %v295_v50  ;;  %315 = vst.msk [vmem:[#allocation2 + $0x18] sm:$0x1] %vm313_vm1, %v296_v51  ;;  %v306_v29 = vld [vmem:[#allocation2 + $0x10a] sm:$0x1]  ;;  %v8920_v33 = vpack.c.bf16 %v435_v28, %v434_v27 }
  0x38   : > { %316 = vst.msk [vmem:[#allocation2 + $0x30] sm:$0x1] %vm313_vm1, %v297_v53  ;;  %317 = vst.msk [vmem:[#allocation2 + $0x48] sm:$0x1] %vm313_vm1, %v298_v54  ;;  %v437_v31 = vld [vmem:[#allocation2 + $0xc9] sm:$0xff]  ;;  %v438_v51 = vld [vmem:[#allocation2 + $0xd9] sm:$0xff] }
  0x39   : > { %318 = vst.msk [vmem:[#allocation2 + $0x60] sm:$0x1] %vm313_vm1, %v299_v57  ;;  %319 = vst.msk [vmem:[#allocation2 + $0x78] sm:$0x1] %vm313_vm1, %v300_v59  ;;  %v307_v32 = vld [vmem:[#allocation2 + $0x122] sm:$0x1]  ;;  %v8923_v37 = vpack.c.bf16 %v437_v31, %v436_v30 }
  0x3a   : > { %320 = vst.msk [vmem:[#allocation2 + $0x90] sm:$0x1] %vm313_vm1, %v301_v60  ;;  %321 = vst.msk [vmem:[#allocation2 + $0xa8] sm:$0x1] %vm313_vm1, %v302_v61  ;;  %v308_v36 = vld [vmem:[#allocation2 + $0x13a] sm:$0x1] }
  0x3b   : > { %322 = vst.msk [vmem:[#allocation2 + $0xc0] sm:$0x1] %vm313_vm1, %v303_v63  ;;  %7323 = vmatmul.mubr.msk.bf16.gmra.mrb[8].mxu0 %vm257_vm0, %v8907_v62  ;;  %323 = vst.msk [vmem:[#allocation2 + $0xd8] sm:$0x1] %vm313_vm1, %v304_v1  ;;  %v309_v38 = vld [vmem:[#allocation2 + $0x152] sm:$0x1] }
  0x3c   : > { %7326 = vmatprep.mubr.msk.bf16.mxu0 %vm257_vm0, %v8910_v0  ;;  %324 = vst.msk [vmem:[#allocation2 + $0xf0] sm:$0x1] %vm313_vm1, %v305_v2  ;;  %325 = vst.msk [vmem:[#allocation2 + $0x108] sm:$0x1] %vm313_vm1, %v306_v29  ;;  %v310_v39 = vld [vmem:[#allocation2 + $0x16a] sm:$0x1] }
  0x3d   : > { %326 = vst.msk [vmem:[#allocation2 + $0x120] sm:$0x1] %vm313_vm1, %v307_v32  ;;  %327 = vst.msk [vmem:[#allocation2 + $0x138] sm:$0x1] %vm313_vm1, %v308_v36  ;;  %v332_v40 = vld [vmem:[#allocation2 + $0xf] sm:$0x1] }
  0x3e   : > { %328 = vst.msk [vmem:[#allocation2 + $0x150] sm:$0x1] %vm313_vm1, %v309_v38  ;;  %329 = vst.msk [vmem:[#allocation2 + $0x168] sm:$0x1] %vm313_vm1, %v310_v39  ;;  %v333_v50 = vld [vmem:[#allocation2 + $0x27] sm:$0x1] }
  0x3f   : > { %350 = vst.msk [vmem:[#allocation2 + $0x11] sm:$0x1] %vm313_vm1, %v332_v40  ;;  %v439_v52 = vld [vmem:[#allocation2 + $0xe1] sm:$0xff]  ;;  %351 = vst.msk [vmem:[#allocation2 + $0x29] sm:$0x1] %vm313_vm1, %v333_v50  ;;  %v440_v54 = vld [vmem:[#allocation2 + $0xf1] sm:$0xff] }
  0x40   : > { %v334_v53 = vld [vmem:[#allocation2 + $0x3f] sm:$0x1]  ;;  %v335_v56 = vld [vmem:[#allocation2 + $0x57] sm:$0x1]  ;;  %v336_v57 = vld [vmem:[#allocation2 + $0x6f] sm:$0x1]  ;;  %v8936_v58 = vpack.c.bf16 %v439_v52, %v438_v51 }
  0x41   : > { %v441_v55 = vld [vmem:[#allocation2 + $0xf9] sm:$0xff]  ;;  %352 = vst.msk [vmem:[#allocation2 + $0x41] sm:$0x1] %vm313_vm1, %v334_v53  ;;  %353 = vst.msk [vmem:[#allocation2 + $0x59] sm:$0x1] %vm313_vm1, %v335_v56  ;;  %v442_v2 = vld [vmem:[#allocation2 + $0x109] sm:$0xff] }
  0x42   : > { %354 = vst.msk [vmem:[#allocation2 + $0x71] sm:$0x1] %vm313_vm1, %v336_v57  ;;  %v337_v59 = vld [vmem:[#allocation2 + $0x87] sm:$0x1]  ;;  %v8939_v60 = vpack.c.bf16 %v441_v55, %v440_v54  ;;  %v338_v61 = vld [vmem:[#allocation2 + $0x9f] sm:$0x1] }
  0x43   : > { %7327 = vmatmul.mubr.msk.bf16.gmra.mrb[12].mxu0 %vm257_vm0, %v8920_v33  ;;  %355 = vst.msk [vmem:[#allocation2 + $0x89] sm:$0x1] %vm313_vm1, %v337_v59  ;;  %356 = vst.msk [vmem:[#allocation2 + $0xa1] sm:$0x1] %vm313_vm1, %v338_v61  ;;  %v339_v63 = vld [vmem:[#allocation2 + $0xb7] sm:$0x1] }
  0x44   : > { %7330 = vmatprep.mubr.msk.bf16.mxu0 %vm257_vm0, %v8923_v37  ;;  %357 = vst.msk [vmem:[#allocation2 + $0xb9] sm:$0x1] %vm313_vm1, %v339_v63  ;;  %v340_v1 = vld [vmem:[#allocation2 + $0xcf] sm:$0x1]  ;;  %v443_v27 = vld [vmem:[#allocation2 + $0x111] sm:$0xff]  ;;  %v444_v29 = vld [vmem:[#allocation2 + $0x121] sm:$0xff] }
  0x45   : > { %358 = vst.msk [vmem:[#allocation2 + $0xd1] sm:$0x1] %vm313_vm1, %v340_v1  ;;  %v341_v28 = vld [vmem:[#allocation2 + $0xe7] sm:$0x1]  ;;  %v445_v30 = vld [vmem:[#allocation2 + $0x129] sm:$0xff]  ;;  %v8951_v36 = vpack.c.bf16 %v443_v27, %v442_v2  ;;  %v446_v50 = vld [vmem:[#allocation2 + $0x139] sm:$0xff] }
  0x46   : > { %359 = vst.msk [vmem:[#allocation2 + $0xe9] sm:$0x1] %vm313_vm1, %v341_v28  ;;  %v342_v31 = vld [vmem:[#allocation2 + $0xff] sm:$0x1]  ;;  %v343_v32 = vld [vmem:[#allocation2 + $0x117] sm:$0x1]  ;;  %v8954_v39 = vpack.c.bf16 %v445_v30, %v444_v29 }
  0x47   : > { %360 = vst.msk [vmem:[#allocation2 + $0x101] sm:$0x1] %vm313_vm1, %v342_v31  ;;  %361 = vst.msk [vmem:[#allocation2 + $0x119] sm:$0x1] %vm313_vm1, %v343_v32  ;;  %v344_v38 = vld [vmem:[#allocation2 + $0x12f] sm:$0x1] }
  0x48   : > { %362 = vst.msk [vmem:[#allocation2 + $0x131] sm:$0x1] %vm313_vm1, %v344_v38  ;;  %v345_v40 = vld [vmem:[#allocation2 + $0x147] sm:$0x1]  ;;  %v448_v52 = vld [vmem:[#allocation2 + $0x151] sm:$0xff]  ;;  %v449_v53 = vld [vmem:[#allocation2 + $0x159] sm:$0xff] }
  0x49   : > { %363 = vst.msk [vmem:[#allocation2 + $0x149] sm:$0x1] %vm313_vm1, %v345_v40  ;;  %v447_v51 = vld [vmem:[#allocation2 + $0x141] sm:$0xff]  ;;  %v346_v55 = vld [vmem:[#allocation2 + $0x15f] sm:$0x1]  ;;  %v8964_v56 = vpack.c.bf16 %v449_v53, %v448_v52  ;;  %v450_v59 = vld [vmem:[#allocation2 + $0x169] sm:$0xff] }
  0x4a   : > { %v8962_v54 = vpack.c.bf16 %v447_v51, %v446_v50  ;;  %364 = vst.msk [vmem:[#allocation2 + $0x161] sm:$0x1] %vm313_vm1, %v346_v55  ;;  %v347_v57 = vld [vmem:[#allocation2 + $0x177] sm:$0x1]  ;;  %v369_v63 = vld [vmem:[#allocation2 + $0x8] sm:$0xff]  ;;  %v368_v1 = vld [vmem:[#allocation2] sm:$0xff] }
  0x4b   : > { %7331 = vmatmul.mubr.msk.bf16.gmra.mrb[16].mxu0 %vm257_vm0, %v8936_v58  ;;  %365 = vst.msk [vmem:[#allocation2 + $0x179] sm:$0x1] %vm313_vm1, %v347_v57  ;;  %v451_v61 = vld [vmem:[#allocation2 + $0x171] sm:$0xff]  ;;  %v400_v27 = vpack.c.bf16 %v369_v63, %v368_v1  ;;  %v371_v29 = vld [vmem:[#allocation2 + $0x20] sm:$0xff]  ;;  %v8516_v40 = vld [vmem:[%s10743_s1 + $0x28] sm:$0xff]  }
  0x4c   : > { %7334 = vmatprep.mubr.msk.bf16.mxu0 %vm257_vm0, %v8939_v60  ;;  %v8972_v2 = vpack.c.bf16 %v451_v61, %v450_v59  ;;  %v370_v28 = vld [vmem:[#allocation2 + $0x18] sm:$0xff]  ;;  %v372_v31 = vld [vmem:[#allocation2 + $0x30] sm:$0xff]  ;;  %v374_v50 = vld [vmem:[#allocation2 + $0x48] sm:$0xff] }
  0x4d   : > { %v373_v30 = vld [vmem:[#allocation2 + $0x38] sm:$0xff]  ;;  %v8977_v32 = vpack.c.bf16 %v371_v29, %v370_v28  ;;  %v375_v51 = vld [vmem:[#allocation2 + $0x50] sm:$0xff]  ;;  %v376_v52 = vld [vmem:[#allocation2 + $0x60] sm:$0xff] }
  0x4e   : > { %v8979_v38 = vpack.c.bf16 %v373_v30, %v372_v31  ;;  %v377_v53 = vld [vmem:[#allocation2 + $0x68] sm:$0xff]  ;;  %v8992_v55 = vld [vmem:[%s10743_s1 + $0x30] sm:$0xff]   ;;  %v8994_v57 = vpack.c.bf16 %v375_v51, %v374_v50  ;;  %v379_v61 = vld [vmem:[#allocation2 + $0x80] sm:$0xff] }
  0x4f   : > { %v8996_v59 = vpack.c.bf16 %v377_v53, %v376_v52  ;;  %v380_v63 = vld [vmem:[#allocation2 + $0x90] sm:$0xff]  ;;  %v381_v1 = vld [vmem:[#allocation2 + $0x98] sm:$0xff]  ;;  %v382_v29 = vld [vmem:[#allocation2 + $0xa8] sm:$0xff] }
  0x50   : > { %v9005_v28 = vpack.c.bf16 %v381_v1, %v380_v63  ;;  %v383_v30 = vld [vmem:[#allocation2 + $0xb0] sm:$0xff]  ;;  %v384_v31 = vld [vmem:[#allocation2 + $0xc0] sm:$0xff]  ;;  %v386_v52 = vld [vmem:[#allocation2 + $0xd8] sm:$0xff] }
  0x51   : > { %v9011_v50 = vpack.c.bf16 %v383_v30, %v382_v29  ;;  %v387_v53 = vld [vmem:[#allocation2 + $0xe0] sm:$0xff]  ;;  %v390_v29 = vld [vmem:[#allocation2 + $0x108] sm:$0xff]  ;;  %v391_v30 = vld [vmem:[#allocation2 + $0x110] sm:$0xff] }
  0x52   : > { %v9019_v63 = vpack.c.bf16 %v387_v53, %v386_v52  ;;  %v9027_v48 = vpack.c.bf16 %v391_v30, %v390_v29  ;;  %v9032_v46 = vld [vmem:[%s8712_s15 + $0xf0] sm:$0xff]  ;;  %v394_v52 = vld [vmem:[#allocation2 + $0x138] sm:$0xff]  ;;  %v395_v53 = vld [vmem:[#allocation2 + $0x140] sm:$0xff] }
  0x53   : > { %7335 = vmatmul.mubr.msk.bf16.gmra.mrb[20].mxu0 %vm257_vm0, %v8951_v36  ;;  %10790 = vst [vmem:[#allocation25_spill] sm:$0xff] %v9032_v46  ;;  %288 = vst.msk [vmem:[#allocation2 + $0x181] sm:$0xff] %vm257_vm0, %v9032_v46  ;;  %v9040_v45 = vpack.c.bf16 %v395_v53, %v394_v52  ;;  %v9045_v30 = vld [vmem:[%s8712_s15 + $0xf8] sm:$0xff]  ;;  %v399_v46 = vld [vmem:[#allocation2 + $0x170] sm:$0xff]  ;;  %s8615_s15 = smov [#allocation3]  }
  0x54   : > { %7338 = vmatprep.mubr.msk.bf16.mxu0 %vm257_vm0, %v8954_v39  ;;  %10791 = vst [vmem:[#allocation26_spill] sm:$0xff] %v9045_v30  ;;  %289 = vst.msk [vmem:[#allocation2 + $0x189] sm:$0xff] %vm257_vm0, %v9045_v30  ;;  %v915_v52 = vld [vmem:[#allocation2 + $0x2] sm:$0xff]  ;;  %v916_v53 = vld [vmem:[#allocation2 + $0xa] sm:$0xff]  ;;  %s8555_s16 = sshll.u32 %s8615_s15, 4  ;;  %s8556_s16 = int_to_ptr.vmem [resolvable:$false] %s8555_s16 }
  0x55   : > { %v917_v30 = vld [vmem:[#allocation2 + $0x1a] sm:$0xff]  ;;  %v919_v43 = vld [vmem:[#allocation2 + $0x32] sm:$0xff]  ;;  %s8557_s17 = scalar_lea.vmem %s8556_s16, 8192  ;;  %p8558_p0 = scmp.lt.s32.totalorder %s10669_s10, %s8556_s16 }
  0x56   : > { %v920_v26 = vld [vmem:[#allocation2 + $0x3a] sm:$0xff]  ;;  %p8559_p1 = scmp.lt.s32.totalorder %s8557_s17, %s8551_s14 }
  0x57   : > { %v9061_v24 = vpack.c.bf16 %v920_v26, %v919_v43  ;;  %v8518_v23 = vld [vmem:[%s10743_s1 + $0x38] sm:$0xff]   ;;  %v8519_v26 = vld [vmem:[%s10743_s1 + $0x40] sm:$0xff]  }
  0x58   : > { %v928_v22 = vld [vmem:[#allocation2 + $0x9a] sm:$0xff]  ;;  %p8560_p2 = por %p8559_p1, %p8558_p0 }
  0x5a   : > { %p8561_p3 = pnand %p8560_p2, %p8554_p13 }
  0x5b   : > { %7339 = vmatmul.mubr.msk.bf16.gmra.mrb[24].mxu0 %vm257_vm0, %v8962_v54 }
  0x5c   : > { %7342 = vmatprep.mubr.msk.bf16.mxu0 %vm257_vm0, %v8964_v56 }
  0x63   : > { %7343 = vmatmul.mubr.msk.bf16.gmra.mrb[28].mxu0 %vm257_vm0, %v8972_v2 }
  0x64   : > { %7350 = vmatprep.mubr.msk.bf16.mxu0 %vm257_vm0, %v400_v27 }
  0x6b   : > { %7351 = vmatmul.mubr.msk.bf16.vlgmr.msra.gmra.mrb[0].mxu0 %vm257_vm0, %v8977_v32 }
  0x6c   : > { %7383 = vmatpush3.bf16.msra.mxu0 %v8855_v41  ;;  %7354 = vmatprep.mubr.msk.bf16.mxu0 %vm257_vm0, %v8979_v38  ;;  %v378_v41 = vld [vmem:[#allocation2 + $0x78] sm:$0xff] }
  0x6d   : > { %7384 = vmatprep.subr.bf16.mxu0 %v8516_v40  ;;  %v9003_v27 = vpack.c.bf16 %v379_v61, %v378_v41  ;;  %v388_v41 = vld [vmem:[#allocation2 + $0xf0] sm:$0xff]  ;;  %v389_v61 = vld [vmem:[#allocation2 + $0xf8] sm:$0xff] }
  0x6e   : > { %v9021_v1 = vpack.c.bf16 %v389_v61, %v388_v41  ;;  %v396_v41 = vld [vmem:[#allocation2 + $0x150] sm:$0xff]  ;;  %v397_v61 = vld [vmem:[#allocation2 + $0x158] sm:$0xff] }
  0x6f   : > { %v9042_v29 = vpack.c.bf16 %v397_v61, %v396_v41  ;;  %v947_v61 = vpack.c.bf16 %v916_v53, %v915_v52  ;;  %v923_v52 = vld [vmem:[#allocation2 + $0x62] sm:$0xff]  ;;  %v924_v53 = vld [vmem:[#allocation2 + $0x6a] sm:$0xff] }
  0x70   : > { %7385 = vmatpush3.bf16.msra.mxu0 %v8516_v40  ;;  %v385_v40 = vld [vmem:[#allocation2 + $0xc8] sm:$0xff] }
  0x71   : > { %7418 = vmatprep.subr.bf16.mxu0 %v8992_v55  ;;  %v9013_v51 = vpack.c.bf16 %v385_v40, %v384_v31  ;;  %v392_v31 = vld [vmem:[#allocation2 + $0x120] sm:$0xff]  ;;  %v393_v40 = vld [vmem:[#allocation2 + $0x128] sm:$0xff] }
  0x72   : > { %v9029_v47 = vpack.c.bf16 %v393_v40, %v392_v31  ;;  %v311_v31 = vld [vmem:[#allocation2 + $0x182] sm:$0x1]  ;;  %v398_v40 = vld [vmem:[#allocation2 + $0x168] sm:$0xff] }
  0x73   : > { %7355 = vmatmul.mubr.msk.bf16.gmra.mrb[4].mxu0 %vm257_vm0, %v8994_v57  ;;  %330 = vst.msk [vmem:[#allocation2 + $0x180] sm:$0x1] %vm313_vm1, %v311_v31  ;;  %v9054_v41 = vpack.c.bf16 %v399_v46, %v398_v40  ;;  %v918_v31 = vld [vmem:[#allocation2 + $0x22] sm:$0xff]  ;;  %v921_v46 = vld [vmem:[#allocation2 + $0x4a] sm:$0xff]  ;;  %v922_v40 = vld [vmem:[#allocation2 + $0x52] sm:$0xff] }
  0x74   : > { %7358 = vmatprep.mubr.msk.bf16.mxu0 %vm257_vm0, %v8996_v59  ;;  %v9059_v25 = vpack.c.bf16 %v918_v31, %v917_v30  ;;  %v9074_v43 = vpack.c.bf16 %v922_v40, %v921_v46  ;;  %v9076_v30 = vpack.c.bf16 %v924_v53, %v923_v52  ;;  %v927_v31 = vld [vmem:[#allocation2 + $0x92] sm:$0xff]  ;;  %v931_v40 = vld [vmem:[#allocation2 + $0xc2] sm:$0xff]  ;;  %v932_v52 = vld [vmem:[#allocation2 + $0xca] sm:$0xff] }
  0x75   : > { %v9084_v20 = vpack.c.bf16 %v928_v22, %v927_v31  ;;  %v930_v46 = vld [vmem:[#allocation2 + $0xb2] sm:$0xff]  ;;  %v9092_v19 = vpack.c.bf16 %v932_v52, %v931_v40  ;;  %v933_v22 = vld [vmem:[#allocation2 + $0xda] sm:$0xff]  ;;  %v939_v40 = vld [vmem:[#allocation2 + $0x122] sm:$0xff] }
  0x76   : > { %v936_v31 = vld [vmem:[#allocation2 + $0xfa] sm:$0xff]  ;;  %v940_v52 = vld [vmem:[#allocation2 + $0x12a] sm:$0xff] }
  0x77   : > { %v9108_v15 = vpack.c.bf16 %v940_v52, %v939_v40  ;;  %v8520_v52 = vld [vmem:[%s10743_s1 + $0x48] sm:$0xff]  }
  0x7b   : > { %7359 = vmatmul.mubr.msk.bf16.gmra.mrb[8].mxu0 %vm257_vm0, %v9003_v27 }
  0x7c   : > { %7362 = vmatprep.mubr.msk.bf16.mxu0 %vm257_vm0, %v9005_v28 }
  0x83   : > { %7363 = vmatmul.mubr.msk.bf16.gmra.mrb[12].mxu0 %vm257_vm0, %v9011_v50 }
  0x84   : > { %7366 = vmatprep.mubr.msk.bf16.mxu0 %vm257_vm0, %v9013_v51 }
  0x8b   : > { %7367 = vmatmul.mubr.msk.bf16.gmra.mrb[16].mxu0 %vm257_vm0, %v9019_v63 }
  0x8c   : > { %7370 = vmatprep.mubr.msk.bf16.mxu0 %vm257_vm0, %v9021_v1 }
  0x93   : > { %7371 = vmatmul.mubr.msk.bf16.gmra.mrb[20].mxu0 %vm257_vm0, %v9027_v48 }
  0x94   : > { %7374 = vmatprep.mubr.msk.bf16.mxu0 %vm257_vm0, %v9029_v47 }
  0x9b   : > { %7375 = vmatmul.mubr.msk.bf16.gmra.mrb[24].mxu0 %vm257_vm0, %v9040_v45 }
  0x9c   : > { %7378 = vmatprep.mubr.msk.bf16.mxu0 %vm257_vm0, %v9042_v29 }
  0xa3   : > { %7379 = vmatmul.mubr.msk.bf16.gmra.mrb[28].mxu0 %vm257_vm0, %v9054_v41 }
  0xa4   : > { %7386 = vmatprep.mubr.msk.bf16.mxu0 %vm257_vm0, %v947_v61  ;;  %v926_v61 = vld [vmem:[#allocation2 + $0x82] sm:$0xff] }
  0xab   : > { %7387 = vmatmul.mubr.msk.bf16.vlgmr.msra.gmra.mrb[0].mxu0 %vm257_vm0, %v9059_v25 }
  0xac   : > { %7419 = vmatpush3.bf16.msra.mxu0 %v8992_v55  ;;  %7390 = vmatprep.mubr.msk.bf16.mxu0 %vm257_vm0, %v9061_v24  ;;  %v925_v55 = vld [vmem:[#allocation2 + $0x7a] sm:$0xff] }
  0xad   : > { %7420 = vmatprep.subr.bf16.mxu0 %v8518_v23  ;;  %v9082_v21 = vpack.c.bf16 %v926_v61, %v925_v55  ;;  %v934_v55 = vld [vmem:[#allocation2 + $0xe2] sm:$0xff]  ;;  %v935_v61 = vld [vmem:[#allocation2 + $0xf2] sm:$0xff] }
  0xae   : > { %v9098_v18 = vpack.c.bf16 %v934_v55, %v933_v22  ;;  %v9100_v17 = vpack.c.bf16 %v936_v31, %v935_v61  ;;  %v941_v22 = vld [vmem:[#allocation2 + $0x13a] sm:$0xff]  ;;  %v942_v55 = vld [vmem:[#allocation2 + $0x142] sm:$0xff]  ;;  %v943_v61 = vld [vmem:[#allocation2 + $0x152] sm:$0xff] }
  0xaf   : > { %v944_v31 = vld [vmem:[#allocation2 + $0x15a] sm:$0xff]  ;;  %v9114_v14 = vpack.c.bf16 %v942_v55, %v941_v22  ;;  %v8521_v22 = vld [vmem:[%s10743_s1 + $0x50] sm:$0xff]   ;;  %v1252_v55 = vld [vmem:[#allocation2 + $0x188] sm:$0xff] }
  0xb0   : > { %7421 = vmatpush3.bf16.msra.mxu0 %v8518_v23  ;;  %v929_v23 = vld [vmem:[#allocation2 + $0xaa] sm:$0xff]  ;;  %v9116_v13 = vpack.c.bf16 %v944_v31, %v943_v61  ;;  %v8522_v31 = vld [vmem:[%s10743_s1 + $0x58] sm:$0xff]  }
  0xb1   : > { %7454 = vmatprep.subr.bf16.mxu0 %v8519_v26  ;;  %v9090_v53 = vpack.c.bf16 %v930_v46, %v929_v23  ;;  %v937_v23 = vld [vmem:[#allocation2 + $0x10a] sm:$0xff]  ;;  %v938_v46 = vld [vmem:[#allocation2 + $0x112] sm:$0xff] }
  0xb2   : > { %v9106_v16 = vpack.c.bf16 %v938_v46, %v937_v23  ;;  %v945_v23 = vld [vmem:[#allocation2 + $0x16a] sm:$0xff]  ;;  %v946_v46 = vld [vmem:[#allocation2 + $0x172] sm:$0xff] }
  0xb3   : > { %7391 = vmatmul.mubr.msk.bf16.gmra.mrb[4].mxu0 %vm257_vm0, %v9074_v43  ;;  %v9122_v40 = vpack.c.bf16 %v946_v46, %v945_v23  ;;  %v8523_v23 = vld [vmem:[%s10743_s1 + $0x60] sm:$0xff]  }
  0xb4   : > { %7394 = vmatprep.mubr.msk.bf16.mxu0 %vm257_vm0, %v9076_v30 }
  0xbb   : > { %7395 = vmatmul.mubr.msk.bf16.gmra.mrb[8].mxu0 %vm257_vm0, %v9082_v21 }
  0xbc   : > { %7398 = vmatprep.mubr.msk.bf16.mxu0 %vm257_vm0, %v9084_v20 }
  0xc3   : > { %7399 = vmatmul.mubr.msk.bf16.gmra.mrb[12].mxu0 %vm257_vm0, %v9090_v53 }
  0xc4   : > { %7402 = vmatprep.mubr.msk.bf16.mxu0 %vm257_vm0, %v9092_v19 }
  0xcb   : > { %7403 = vmatmul.mubr.msk.bf16.gmra.mrb[16].mxu0 %vm257_vm0, %v9098_v18 }
  0xcc   : > { %7406 = vmatprep.mubr.msk.bf16.mxu0 %vm257_vm0, %v9100_v17 }
  0xd3   : > { %7407 = vmatmul.mubr.msk.bf16.gmra.mrb[20].mxu0 %vm257_vm0, %v9106_v16 }
  0xd4   : > { %7410 = vmatprep.mubr.msk.bf16.mxu0 %vm257_vm0, %v9108_v15 }
  0xdb   : > { %7411 = vmatmul.mubr.msk.bf16.gmra.mrb[24].mxu0 %vm257_vm0, %v9114_v14 }
  0xdc   : > { %7414 = vmatprep.mubr.msk.bf16.mxu0 %vm257_vm0, %v9116_v13 }
  0xe3   : > { %7415 = vmatmul.mubr.msk.bf16.gmra.mrb[28].mxu0 %vm257_vm0, %v9122_v40 }
  0xe4   : > { %7422 = vmatprep.mubr.msk.bf16.mxu0 %vm257_vm0, %v8977_v32  ;;  %v348_v32 = vld [vmem:[#allocation2 + $0x18f] sm:$0x1] }
  0xe5   : > { %366 = vst.msk [vmem:[#allocation2 + $0x191] sm:$0x1] %vm313_vm1, %v348_v32  ;;  %v2458_v32 = vld [vmem:[#allocation2 + $0xc1] sm:$0xff] }
  0xeb   : > { %7423 = vmatmul.mubr.msk.bf16.vlgmr.msra.gmra.mrb[0].mxu0 %vm257_vm0, %v8979_v38 }
  0xec   : > { %7455 = vmatpush3.bf16.msra.mxu0 %v8519_v26  ;;  %7426 = vmatprep.mubr.msk.bf16.mxu0 %vm257_vm0, %v8994_v57  ;;  %v1251_v26 = vld [vmem:[#allocation2 + $0x180] sm:$0xff] }
  0xed   : > { %7456 = vmatprep.subr.bf16.mxu0 %v8520_v52  ;;  %v9163_v61 = vpack.c.bf16 %v1252_v55, %v1251_v26  ;;  %v2459_v26 = vld [vmem:[#allocation2 + $0xc9] sm:$0xff] }
  0xf0   : > { %7457 = vmatpush3.bf16.msra.mxu0 %v8520_v52  ;;  %v2456_v52 = vld [vmem:[#allocation2 + $0xa9] sm:$0xff] }
  0xf1   : > { %7490 = vmatprep.subr.bf16.mxu0 %v8521_v22 }
  0xf3   : > { %7427 = vmatmul.mubr.msk.bf16.gmra.mrb[4].mxu0 %vm257_vm0, %v8996_v59 }
  0xf4   : > { %7430 = vmatprep.mubr.msk.bf16.mxu0 %vm257_vm0, %v9003_v27 }
  0xfb   : > { %7431 = vmatmul.mubr.msk.bf16.gmra.mrb[8].mxu0 %vm257_vm0, %v9005_v28 }
  0xfc   : > { %7434 = vmatprep.mubr.msk.bf16.mxu0 %vm257_vm0, %v9011_v50 }
 0x103   : > { %7435 = vmatmul.mubr.msk.bf16.gmra.mrb[12].mxu0 %vm257_vm0, %v9013_v51 }
 0x104   : > { %7438 = vmatprep.mubr.msk.bf16.mxu0 %vm257_vm0, %v9019_v63 }
 0x10b   : > { %7439 = vmatmul.mubr.msk.bf16.gmra.mrb[16].mxu0 %vm257_vm0, %v9021_v1 }
 0x10c   : > { %7442 = vmatprep.mubr.msk.bf16.mxu0 %vm257_vm0, %v9027_v48 }
 0x113   : > { %7443 = vmatmul.mubr.msk.bf16.gmra.mrb[20].mxu0 %vm257_vm0, %v9029_v47 }
 0x114   : > { %7446 = vmatprep.mubr.msk.bf16.mxu0 %vm257_vm0, %v9040_v45 }
 0x11b   : > { %7447 = vmatmul.mubr.msk.bf16.gmra.mrb[24].mxu0 %vm257_vm0, %v9042_v29 }
 0x11c   : > { %7450 = vmatprep.mubr.msk.bf16.mxu0 %vm257_vm0, %v9054_v41 }
 0x123   : > { %7451 = vmatmul.mubr.msk.bf16.gmra.mrb[28].mxu0 %vm257_vm0, %v9163_v61 }
 0x124   : > { %7458 = vmatprep.mubr.msk.bf16.mxu0 %vm257_vm0, %v8839_v34  ;;  %v312_v34 = vld [vmem:[#allocation2 + $0x19a] sm:$0x1] }
 0x125   : > { %331 = vst.msk [vmem:[#allocation2 + $0x198] sm:$0x1] %vm313_vm1, %v312_v34  ;;  %v2462_v34 = vld [vmem:[#allocation2 + $0xf1] sm:$0xff] }
 0x12b   : > { %7459 = vmatmul.mubr.msk.bf16.vlgmr.msra.gmra.mrb[0].mxu0 %vm257_vm0, %v8841_v35  ;;  %v1557_v35 = vld [vmem:[#allocation2 + $0x181] sm:$0xff] }
 0x12c   : > { %7491 = vmatpush3.bf16.msra.mxu0 %v8521_v22  ;;  %7462 = vmatprep.mubr.msk.bf16.mxu0 %vm257_vm0, %v8857_v42  ;;  %v1558_v42 = vld [vmem:[#allocation2 + $0x189] sm:$0xff]  ;;  %v2457_v22 = vld [vmem:[#allocation2 + $0xb1] sm:$0xff] }
 0x12d   : > { %7492 = vmatprep.subr.bf16.mxu0 %v8522_v31  ;;  %v2483_v55 = vpack.c.bf16 %v2457_v22, %v2456_v52 }
 0x130   : > { %7493 = vmatpush3.bf16.msra.mxu0 %v8522_v31  ;;  %v2460_v31 = vld [vmem:[#allocation2 + $0xd9] sm:$0xff] }
 0x131   : > { %7526 = vmatprep.subr.bf16.mxu0 %v8523_v23 }
 0x133   : > { %7463 = vmatmul.mubr.msk.bf16.gmra.mrb[4].mxu0 %vm257_vm0, %v8862_v44  ;;  %v9204_v44 = vpack.c.bf16 %v1558_v42, %v1557_v35  ;;  %v2463_v35 = vld [vmem:[#allocation2 + $0xf9] sm:$0xff] }
 0x134   : > { %7466 = vmatprep.mubr.msk.bf16.mxu0 %vm257_vm0, %v8907_v62  ;;  %v8524_v62 = vld [vmem:[%s10743_s1 + $0x68] sm:$0xff]  }
 0x13b   : > { %7467 = vmatmul.mubr.msk.bf16.gmra.mrb[8].mxu0 %vm257_vm0, %v8910_v0  ;;  %v8525_v0 = vld [vmem:[%s10743_s1 + $0x70] sm:$0xff]  }
 0x13c   : > { %7470 = vmatprep.mubr.msk.bf16.mxu0 %vm257_vm0, %v8920_v33  ;;  %v1864_v33 = vld [vmem:[#allocation2 + $0x18a] sm:$0xff] }
 0x143   : > { %7471 = vmatmul.mubr.msk.bf16.gmra.mrb[12].mxu0 %vm257_vm0, %v8923_v37 }
 0x144   : > { %7474 = vmatprep.mubr.msk.bf16.mxu0 %vm257_vm0, %v8936_v58  ;;  %v8526_v58 = vld [vmem:[%s10743_s1 + $0x78] sm:$0xff]  }
 0x14b   : > { %7475 = vmatmul.mubr.msk.bf16.gmra.mrb[16].mxu0 %vm257_vm0, %v8939_v60  ;;  %v8527_v60 = vld [vmem:[%s10743_s1 + $0x80] sm:$0xff]  }
 0x14c   : > { %7478 = vmatprep.mubr.msk.bf16.mxu0 %vm257_vm0, %v8951_v36  ;;  %v349_v36 = vld [vmem:[#allocation2 + $0x1a7] sm:$0x1] }
 0x14d   : > { %367 = vst.msk [vmem:[#allocation2 + $0x1a9] sm:$0x1] %vm313_vm1, %v349_v36 }
 0x153   : > { %7479 = vmatmul.mubr.msk.bf16.gmra.mrb[20].mxu0 %vm257_vm0, %v8954_v39  ;;  %v2170_v39 = vld [vmem:[#allocation2 + $0x198] sm:$0xff] }
 0x154   : > { %7482 = vmatprep.mubr.msk.bf16.mxu0 %vm257_vm0, %v8962_v54  ;;  %v2446_v54 = vld [vmem:[#allocation2 + $0x31] sm:$0xff] }
 0x15b   : > { %7483 = vmatmul.mubr.msk.bf16.gmra.mrb[24].mxu0 %vm257_vm0, %v8964_v56  ;;  %v2447_v56 = vld [vmem:[#allocation2 + $0x39] sm:$0xff] }
 0x15c   : > { %7486 = vmatprep.mubr.msk.bf16.mxu0 %vm257_vm0, %v8972_v2  ;;  %v2478_v2 = vpack.c.bf16 %v2447_v56, %v2446_v54  ;;  %v2470_v54 = vld [vmem:[#allocation2 + $0x151] sm:$0xff]  ;;  %v2471_v56 = vld [vmem:[#allocation2 + $0x159] sm:$0xff] }
 0x163   : > { %7487 = vmatmul.mubr.msk.bf16.gmra.mrb[28].mxu0 %vm257_vm0, %v9204_v44 }
 0x164   : > { %7494 = vmatprep.mubr.msk.bf16.mxu0 %vm257_vm0, %v9059_v25  ;;  %v1863_v25 = vld [vmem:[#allocation2 + $0x182] sm:$0xff] }
 0x165   : > { %v9244_v37 = vpack.c.bf16 %v1864_v33, %v1863_v25  ;;  %v2465_v25 = vld [vmem:[#allocation2 + $0x111] sm:$0xff]  ;;  %v2466_v33 = vld [vmem:[#allocation2 + $0x121] sm:$0xff] }
 0x16b   : > { %7495 = vmatmul.mubr.msk.bf16.vlgmr.msra.gmra.mrb[0].mxu0 %vm257_vm0, %v9061_v24 }
 0x16c   : > { %7527 = vmatpush3.bf16.msra.mxu0 %v8523_v23  ;;  %7498 = vmatprep.mubr.msk.bf16.mxu0 %vm257_vm0, %v9074_v43  ;;  %v2461_v23 = vld [vmem:[#allocation2 + $0xe1] sm:$0xff] }
 0x16d   : > { %7528 = vmatprep.subr.bf16.mxu0 %v8524_v62  ;;  %v2485_v42 = vpack.c.bf16 %v2461_v23, %v2460_v31 }
 0x170   : > { %7529 = vmatpush3.bf16.msra.mxu0 %v8524_v62  ;;  %v2486_v62 = vpack.c.bf16 %v2463_v35, %v2462_v34 }
 0x171   : > { %7562 = vmatprep.subr.bf16.mxu0 %v8525_v0 }
 0x173   : > { %7499 = vmatmul.mubr.msk.bf16.gmra.mrb[4].mxu0 %vm257_vm0, %v9076_v30 }
 0x174   : > { %7502 = vmatprep.mubr.msk.bf16.mxu0 %vm257_vm0, %v9082_v21 }
 0x17b   : > { %7503 = vmatmul.mubr.msk.bf16.gmra.mrb[8].mxu0 %vm257_vm0, %v9084_v20 }
 0x17c   : > { %7506 = vmatprep.mubr.msk.bf16.mxu0 %vm257_vm0, %v9090_v53 }
 0x183   : > { %7507 = vmatmul.mubr.msk.bf16.gmra.mrb[12].mxu0 %vm257_vm0, %v9092_v19 }
 0x184   : > { %7510 = vmatprep.mubr.msk.bf16.mxu0 %vm257_vm0, %v9098_v18 }
 0x18b   : > { %7511 = vmatmul.mubr.msk.bf16.gmra.mrb[16].mxu0 %vm257_vm0, %v9100_v17 }
 0x18c   : > { %7514 = vmatprep.mubr.msk.bf16.mxu0 %vm257_vm0, %v9106_v16 }
 0x193   : > { %7515 = vmatmul.mubr.msk.bf16.gmra.mrb[20].mxu0 %vm257_vm0, %v9108_v15 }
 0x194   : > { %7518 = vmatprep.mubr.msk.bf16.mxu0 %vm257_vm0, %v9114_v14 }
 0x19b   : > { %7519 = vmatmul.mubr.msk.bf16.gmra.mrb[24].mxu0 %vm257_vm0, %v9116_v13 }
 0x19c   : > { %7522 = vmatprep.mubr.msk.bf16.mxu0 %vm257_vm0, %v9122_v40 }
 0x1a3   : > { %7523 = vmatmul.mubr.msk.bf16.gmra.mrb[28].mxu0 %vm257_vm0, %v9244_v37 }
 0x1a4   : > { %7530 = vmatprep.mubr.msk.bf16.mxu0 %vm257_vm0, %v8979_v38  ;;  %v2449_v38 = vld [vmem:[#allocation2 + $0x51] sm:$0xff] }
 0x1ab   : > { %7531 = vmatmul.mubr.msk.bf16.vlgmr.msra.gmra.mrb[0].mxu0 %vm257_vm0, %v8994_v57  ;;  %v2450_v57 = vld [vmem:[#allocation2 + $0x61] sm:$0xff] }
 0x1ac   : > { %7563 = vmatpush3.bf16.msra.mxu0 %v8525_v0  ;;  %7534 = vmatprep.mubr.msk.bf16.mxu0 %vm257_vm0, %v8996_v59  ;;  %v2451_v59 = vld [vmem:[#allocation2 + $0x69] sm:$0xff] }
 0x1ad   : > { %7564 = vmatprep.subr.bf16.mxu0 %v8526_v58  ;;  %v2464_v0 = vld [vmem:[#allocation2 + $0x109] sm:$0xff] }
 0x1b0   : > { %7565 = vmatpush3.bf16.msra.mxu0 %v8526_v58  ;;  %v2467_v58 = vld [vmem:[#allocation2 + $0x129] sm:$0xff] }
 0x1b1   : > { %7598 = vmatprep.subr.bf16.mxu0 %v8527_v60  ;;  %v2488_v36 = vpack.c.bf16 %v2467_v58, %v2466_v33 }
 0x1b3   : > { %7535 = vmatmul.mubr.msk.bf16.gmra.mrb[4].mxu0 %vm257_vm0, %v9003_v27 }
 0x1b4   : > { %7538 = vmatprep.mubr.msk.bf16.mxu0 %vm257_vm0, %v9005_v28  ;;  %v2480_v28 = vpack.c.bf16 %v2451_v59, %v2450_v57  ;;  %v2476_v59 = vld [vmem:[#allocation2 + $0x199] sm:$0xff] }
 0x1bb   : > { %7539 = vmatmul.mubr.msk.bf16.gmra.mrb[8].mxu0 %vm257_vm0, %v9011_v50  ;;  %v8528_v50 = vld [vmem:[%s10743_s1 + $0x88] sm:$0xff]  }
 0x1bc   : > { %7542 = vmatprep.mubr.msk.bf16.mxu0 %vm257_vm0, %v9013_v51  ;;  %v2452_v51 = vld [vmem:[#allocation2 + $0x79] sm:$0xff] }
 0x1c3   : > { %7543 = vmatmul.mubr.msk.bf16.gmra.mrb[12].mxu0 %vm257_vm0, %v9019_v63  ;;  %v2453_v63 = vld [vmem:[#allocation2 + $0x81] sm:$0xff] }
 0x1c4   : > { %7546 = vmatprep.mubr.msk.bf16.mxu0 %vm257_vm0, %v9021_v1  ;;  %v2454_v1 = vld [vmem:[#allocation2 + $0x91] sm:$0xff] }
 0x1cb   : > { %7547 = vmatmul.mubr.msk.bf16.gmra.mrb[16].mxu0 %vm257_vm0, %v9027_v48  ;;  %v2171_v48 = vld [vmem:[#allocation2 + $0x1a0] sm:$0xff] }
 0x1cc   : > { %7550 = vmatprep.mubr.msk.bf16.mxu0 %vm257_vm0, %v9029_v47  ;;  %v2187_v47 = vpack.c.bf16 %v2171_v48, %v2170_v39  ;;  %v2468_v39 = vld [vmem:[#allocation2 + $0x139] sm:$0xff]  ;;  %v2469_v48 = vld [vmem:[#allocation2 + $0x141] sm:$0xff] }
 0x1d3   : > { %7551 = vmatmul.mubr.msk.bf16.gmra.mrb[20].mxu0 %vm257_vm0, %v9040_v45  ;;  %v2448_v45 = vld [vmem:[#allocation2 + $0x49] sm:$0xff] }
 0x1d4   : > { %7554 = vmatprep.mubr.msk.bf16.mxu0 %vm257_vm0, %v9042_v29  ;;  %v2479_v27 = vpack.c.bf16 %v2449_v38, %v2448_v45  ;;  %v2455_v29 = vld [vmem:[#allocation2 + $0x99] sm:$0xff]  ;;  %v2472_v45 = vld [vmem:[#allocation2 + $0x169] sm:$0xff]  ;;  %v2473_v38 = vld [vmem:[#allocation2 + $0x171] sm:$0xff] }
 0x1d5   : > { %v2482_v46 = vpack.c.bf16 %v2455_v29, %v2454_v1  ;;  %v2491_v57 = vpack.c.bf16 %v2473_v38, %v2472_v45 }
 0x1db   : > { %7555 = vmatmul.mubr.msk.bf16.gmra.mrb[24].mxu0 %vm257_vm0, %v9054_v41  ;;  %v2481_v41 = vpack.c.bf16 %v2453_v63, %v2452_v51 }
 0x1dc   : > { %7558 = vmatprep.mubr.msk.bf16.mxu0 %vm257_vm0, %v9163_v61  ;;  %v2484_v61 = vpack.c.bf16 %v2459_v26, %v2458_v32 }
 0x1e3   : > { %7559 = vmatmul.mubr.msk.bf16.gmra.mrb[28].mxu0 %vm257_vm0, %v2187_v47  ;;  %v2489_v47 = vpack.c.bf16 %v2469_v48, %v2468_v39 }
 0x1e4   : > { %7566 = vmatprep.mubr.msk.bf16.mxu0 %vm257_vm0, %v2478_v2  ;;  %v2490_v2 = vpack.c.bf16 %v2471_v56, %v2470_v54 }
 0x1eb   : > { %7567 = vmatmul.mubr.msk.bf16.vlgmr.msra.gmra.mrb[0].mxu0 %vm257_vm0, %v2479_v27  ;;  %v2477_v27 = vld [vmem:[#allocation2 + $0x1a1] sm:$0xff] }
 0x1ec   : > { %7599 = vmatpush3.bf16.msra.mxu0 %v8527_v60  ;;  %7570 = vmatprep.mubr.msk.bf16.mxu0 %vm257_vm0, %v2480_v28  ;;  %v2487_v60 = vpack.c.bf16 %v2465_v25, %v2464_v0  ;;  %v2493_v28 = vpack.c.bf16 %v2477_v27, %v2476_v59 }
 0x1ed   : > { %7600 = vmatprep.subr.bf16.mxu0 %v8528_v50 }
 0x1f0   : > { %7601 = vmatpush3.bf16.msra.mxu0 %v8528_v50 }
 0x1f3   : > { %7571 = vmatmul.mubr.msk.bf16.gmra.mrb[4].mxu0 %vm257_vm0, %v2481_v41 }
 0x1f4   : > { %7574 = vmatprep.mubr.msk.bf16.mxu0 %vm257_vm0, %v2482_v46 }
 0x1fb   : > { %7575 = vmatmul.mubr.msk.bf16.gmra.mrb[8].mxu0 %vm257_vm0, %v2483_v55 }
 0x1fc   : > { %7578 = vmatprep.mubr.msk.bf16.mxu0 %vm257_vm0, %v2484_v61 }
 0x203   : > { %7579 = vmatmul.mubr.msk.bf16.gmra.mrb[12].mxu0 %vm257_vm0, %v2485_v42 }
 0x204   : > { %7582 = vmatprep.mubr.msk.bf16.mxu0 %vm257_vm0, %v2486_v62 }
 0x20b   : > { %7583 = vmatmul.mubr.msk.bf16.gmra.mrb[16].mxu0 %vm257_vm0, %v2487_v60 }
 0x20c   : > { %7586 = vmatprep.mubr.msk.bf16.mxu0 %vm257_vm0, %v2488_v36 }
 0x213   : > { %7587 = vmatmul.mubr.msk.bf16.gmra.mrb[20].mxu0 %vm257_vm0, %v2489_v47 }
 0x214   : > { %7590 = vmatprep.mubr.msk.bf16.mxu0 %vm257_vm0, %v2490_v2 }
 0x21b   : > { %7591 = vmatmul.mubr.msk.bf16.gmra.mrb[24].mxu0 %vm257_vm0, %v2491_v57 }
 0x21c   : > { %7594 = vmatprep.mubr.msk.bf16.mxu0 %vm257_vm0, %v9204_v44 }
 0x223   : > { %7595 = vmatmul.mubr.msk.bf16.gmra.mrb[28].mxu0 %vm257_vm0, %v2493_v28 }
 0x224   : > { %7602 = vmatprep.mubr.msk.bf16.mxu0 %vm257_vm0, %v9061_v24 }
 0x22b   : > { %7603 = vmatmul.mubr.msk.bf16.vlgmr.msra.gmra.mrb[0].mxu0 %vm257_vm0, %v9074_v43 }
 0x22c   : > { %7606 = vmatprep.mubr.msk.bf16.mxu0 %vm257_vm0, %v9076_v30 }
 0x233   : > { %7607 = vmatmul.mubr.msk.bf16.gmra.mrb[4].mxu0 %vm257_vm0, %v9082_v21 }
 0x234   : > { %7610 = vmatprep.mubr.msk.bf16.mxu0 %vm257_vm0, %v9084_v20 }
 0x23b   : > { %7611 = vmatmul.mubr.msk.bf16.gmra.mrb[8].mxu0 %vm257_vm0, %v9090_v53 }
 0x23c   : > { %7614 = vmatprep.mubr.msk.bf16.mxu0 %vm257_vm0, %v9092_v19 }
 0x243   : > { %7615 = vmatmul.mubr.msk.bf16.gmra.mrb[12].mxu0 %vm257_vm0, %v9098_v18  ;;  %v2782_v18 = vld [vmem:[#allocation2 + $0x19a] sm:$0xff] }
 0x244   : > { %7618 = vmatprep.mubr.msk.bf16.mxu0 %vm257_vm0, %v9100_v17  ;;  %v2783_v17 = vld [vmem:[#allocation2 + $0x1a2] sm:$0xff] }
 0x245   : > { %v2799_v19 = vpack.c.bf16 %v2783_v17, %v2782_v18 }
 0x24b   : > { %7619 = vmatmul.mubr.msk.bf16.gmra.mrb[16].mxu0 %vm257_vm0, %v9106_v16 }
 0x24c   : > { %7622 = vmatprep.mubr.msk.bf16.mxu0 %vm257_vm0, %v9108_v15  ;;  %v9340_v15 = vld [vmem:[%s10744_s2] ss:$0 sm:$0xff] }
 0x253   : > { %7623 = vmatmul.mubr.msk.bf16.gmra.mrb[20].mxu0 %vm257_vm0, %v9114_v14 }
 0x254   : > { %7626 = vmatprep.mubr.msk.bf16.mxu0 %vm257_vm0, %v9116_v13 }
 0x25b   : > { %7627 = vmatmul.mubr.msk.bf16.gmra.mrb[24].mxu0 %vm257_vm0, %v9122_v40 }
 0x25c   : > { %7630 = vmatprep.mubr.msk.bf16.mxu0 %vm257_vm0, %v9244_v37 }
 0x263   : > { %7631 = vmatmul.mubr.msk.bf16.gmra.mrb[28].mxu0 %vm257_vm0, %v2799_v19 }
 0x2fe   : > { %v7604_v14 = vpop.f32.mrb[0].mxu0 }
 0x2ff   : > { %v2899_v16 = vpop.f32.mrb[1].mxu0  ;;  %v9346_v24 = vadd.f32 %v7604_v14, %v9340_v15 }
 0x300   : > { %v9343_v13 = vadd.f32 %v9340_v15, %v2899_v16  ;;  %v7605_v20 = vpop.f32.mrb[2].mxu0 }
 0x301   : > { %v2902_v21 = vpop.f32.mrb[3].mxu0  ;;  %v9354_v53 = vadd.f32 %v7605_v20, %v9340_v15  ;;  %v3100_v37 = vsel %vm257_vm0, %v9346_v24, 0.0 }
 0x302   : > { %v9349_v43 = vadd.f32 %v9340_v15, %v2902_v21  ;;  %v3097_v30 = vsel %vm257_vm0, %v9343_v13, 0.0 }
 0x303   : > { %v3102_v1 = vsel %vm257_vm0, %v9354_v53, 0.0 }
 0x304   : > { %v3098_v40 = vsel %vm257_vm0, %v9349_v43, 0.0 }
 0x305   : > { %v3099_v44 = vadd.f32 %v3098_v40, %v3097_v30 }
 0x306   : > { %v7608_v50 = vpop.f32.mrb[4].mxu0 }
 0x307   : > { %v3101_v51 = vadd.f32 %v3100_v37, %v3099_v44  ;;  %v2915_v63 = vpop.f32.mrb[5].mxu0  ;;  %v9366_v22 = vadd.f32 %v7608_v50, %v9340_v15 }
 0x308   : > { %v9363_v29 = vadd.f32 %v9340_v15, %v2915_v63  ;;  %v7609_v41 = vpop.f32.mrb[6].mxu0 }
 0x309   : > { %v3103_v46 = vadd.f32 %v3102_v1, %v3101_v51  ;;  %v2918_v52 = vpop.f32.mrb[7].mxu0  ;;  %v9374_v61 = vadd.f32 %v7609_v41, %v9340_v15  ;;  %v3108_v34 = vsel %vm257_vm0, %v9366_v22, 0.0 }
 0x30a   : > { %v3104_v32 = vsel %vm257_vm0, %v9363_v29, 0.0  ;;  %v9371_v26 = vadd.f32 %v9340_v15, %v2918_v52 }
 0x30b   : > { %v3105_v55 = vadd.f32 %v3104_v32, %v3103_v46  ;;  %v3110_v0 = vsel %vm257_vm0, %v9374_v61, 0.0 }
 0x30c   : > { %v3106_v31 = vsel %vm257_vm0, %v9371_v26, 0.0 }
 0x30d   : > { %v3107_v23 = vadd.f32 %v3106_v31, %v3105_v55 }
 0x30e   : > { %v7612_v35 = vpop.f32.mrb[8].mxu0 }
 0x30f   : > { %v3109_v42 = vadd.f32 %v3108_v34, %v3107_v23  ;;  %v2931_v62 = vpop.f32.mrb[9].mxu0  ;;  %v9386_v36 = vadd.f32 %v7612_v35, %v9340_v15 }
 0x310   : > { %v9383_v25 = vadd.f32 %v9340_v15, %v2931_v62  ;;  %v7613_v33 = vpop.f32.mrb[10].mxu0 }
 0x311   : > { %v3111_v58 = vadd.f32 %v3110_v0, %v3109_v42  ;;  %v2934_v60 = vpop.f32.mrb[11].mxu0  ;;  %v9394_v56 = vadd.f32 %v7613_v33, %v9340_v15  ;;  %v3116_v45 = vsel %vm257_vm0, %v9386_v36, 0.0 }
 0x312   : > { %v3112_v39 = vsel %vm257_vm0, %v9383_v25, 0.0  ;;  %v9391_v48 = vadd.f32 %v9340_v15, %v2934_v60 }
 0x313   : > { %v3113_v54 = vadd.f32 %v3112_v39, %v3111_v58  ;;  %v3118_v27 = vsel %vm257_vm0, %v9394_v56, 0.0 }
 0x314   : > { %v3114_v47 = vsel %vm257_vm0, %v9391_v48, 0.0 }
 0x315   : > { %v3115_v2 = vadd.f32 %v3114_v47, %v3113_v54 }
 0x316   : > { %v7616_v38 = vpop.f32.mrb[12].mxu0 }
 0x317   : > { %v3117_v57 = vadd.f32 %v3116_v45, %v3115_v2  ;;  %v2947_v59 = vpop.f32.mrb[13].mxu0  ;;  %v9406_v14 = vadd.f32 %v7616_v38, %v9340_v15 }
 0x318   : > { %v9403_v28 = vadd.f32 %v9340_v15, %v2947_v59  ;;  %v7617_v18 = vpop.f32.mrb[14].mxu0 }
 0x319   : > { %v3119_v17 = vadd.f32 %v3118_v27, %v3117_v57  ;;  %v2950_v19 = vpop.f32.mrb[15].mxu0  ;;  %v9414_v30 = vadd.f32 %v7617_v18, %v9340_v15  ;;  %v3124_v37 = vsel %vm257_vm0, %v9406_v14, 0.0 }
 0x31a   : > { %v3120_v16 = vsel %vm257_vm0, %v9403_v28, 0.0  ;;  %v9411_v20 = vadd.f32 %v9340_v15, %v2950_v19 }
 0x31b   : > { %v3121_v21 = vadd.f32 %v3120_v16, %v3119_v17  ;;  %v3126_v1 = vsel %vm257_vm0, %v9414_v30, 0.0 }
 0x31c   : > { %v3122_v40 = vsel %vm257_vm0, %v9411_v20, 0.0 }
 0x31d   : > { %v3123_v44 = vadd.f32 %v3122_v40, %v3121_v21 }
 0x31e   : > { %v7620_v50 = vpop.f32.mrb[16].mxu0 }
 0x31f   : > { %v3125_v51 = vadd.f32 %v3124_v37, %v3123_v44  ;;  %v2963_v63 = vpop.f32.mrb[17].mxu0  ;;  %v9426_v55 = vadd.f32 %v7620_v50, %v9340_v15 }
 0x320   : > { %v9423_v41 = vadd.f32 %v9340_v15, %v2963_v63  ;;  %v7621_v46 = vpop.f32.mrb[18].mxu0 }
 0x321   : > { %v3127_v52 = vadd.f32 %v3126_v1, %v3125_v51  ;;  %v2966_v32 = vpop.f32.mrb[19].mxu0  ;;  %v9434_v35 = vadd.f32 %v7621_v46, %v9340_v15  ;;  %v3132_v0 = vsel %vm257_vm0, %v9426_v55, 0.0 }
 0x322   : > { %v3128_v31 = vsel %vm257_vm0, %v9423_v41, 0.0  ;;  %v9431_v23 = vadd.f32 %v9340_v15, %v2966_v32 }
 0x323   : > { %v3129_v34 = vadd.f32 %v3128_v31, %v3127_v52  ;;  %v3134_v39 = vsel %vm257_vm0, %v9434_v35, 0.0 }
 0x324   : > { %v3130_v42 = vsel %vm257_vm0, %v9431_v23, 0.0 }
 0x325   : > { %v3131_v62 = vadd.f32 %v3130_v42, %v3129_v34 }
 0x326   : > { %v7624_v33 = vpop.f32.mrb[20].mxu0 }
 0x327   : > { %v3133_v58 = vadd.f32 %v3132_v0, %v3131_v62  ;;  %v2979_v60 = vpop.f32.mrb[21].mxu0  ;;  %v9446_v38 = vadd.f32 %v7624_v33, %v9340_v15 }
 0x328   : > { %v9443_v54 = vadd.f32 %v9340_v15, %v2979_v60  ;;  %v7625_v47 = vpop.f32.mrb[22].mxu0 }
 0x329   : > { %v3135_v2 = vadd.f32 %v3134_v39, %v3133_v58  ;;  %v2982_v45 = vpop.f32.mrb[23].mxu0  ;;  %v9454_v18 = vadd.f32 %v7625_v47, %v9340_v15  ;;  %v3140_v16 = vsel %vm257_vm0, %v9446_v38, 0.0 }
 0x32a   : > { %v3136_v57 = vsel %vm257_vm0, %v9443_v54, 0.0  ;;  %v9451_v59 = vadd.f32 %v9340_v15, %v2982_v45 }
 0x32b   : > { %v3137_v27 = vadd.f32 %v3136_v57, %v3135_v2  ;;  %v3142_v37 = vsel %vm257_vm0, %v9454_v18, 0.0 }
 0x32c   : > { %v3138_v17 = vsel %vm257_vm0, %v9451_v59, 0.0 }
 0x32d   : > { %v3139_v19 = vadd.f32 %v3138_v17, %v3137_v27 }
 0x32e   : > { %v7628_v21 = vpop.f32.mrb[24].mxu0 }
 0x32f   : > { %v3141_v40 = vadd.f32 %v3140_v16, %v3139_v19  ;;  %v2995_v44 = vpop.f32.mrb[25].mxu0  ;;  %v3091_v46 = vadd.f32 %v7628_v21, %v9340_v15 }
 0x330   : > { %v3089_v50 = vadd.f32 %v9340_v15, %v2995_v44  ;;  %v7629_v51 = vpop.f32.mrb[26].mxu0 }
 0x331   : > { %v3143_v63 = vadd.f32 %v3142_v37, %v3141_v40  ;;  %v2998_v1 = vpop.f32.mrb[27].mxu0  ;;  %v3092_v34 = vadd.f32 %v7629_v51, %v9340_v15  ;;  %v3148_v0 = vsel %vm257_vm0, %v3091_v46, 0.0 }
 0x332   : > { %v3144_v52 = vsel %vm257_vm0, %v3089_v50, 0.0  ;;  %v3090_v32 = vadd.f32 %v9340_v15, %v2998_v1 }
 0x333   : > { %v3145_v31 = vadd.f32 %v3144_v52, %v3143_v63  ;;  %v3150_v39 = vsel %vm257_vm0, %v3092_v34, 0.0 }
 0x334   : > { %v3146_v42 = vsel %vm257_vm0, %v3090_v32, 0.0 }
 0x335   : > { %v3147_v62 = vadd.f32 %v3146_v42, %v3145_v31 }
 0x336   : > { %v7632_v33 = vpop.f32.mrb[28].mxu0 }
 0x337   : > { %v3149_v58 = vadd.f32 %v3148_v0, %v3147_v62  ;;  %v3011_v60 = vpop.f32.mrb[29].mxu0  ;;  %v3095_v27 = vadd.f32 %v7632_v33, %v9340_v15  ;;  %v8529_v33 = vld [vmem:[%s10745_s3 + $0x10] sm:$0xff]  }
 0x338   : > { %v3093_v47 = vadd.f32 %v9340_v15, %v3011_v60  ;;  %v7633_v2 = vpop.f32.mrb[30].mxu0  ;;  %7634 = vmatprep.subr.bf16.mxu1 %v8529_v33 }
 0x339   : > { %v3151_v45 = vadd.f32 %v3150_v39, %v3149_v58  ;;  %v3014_v57 = vpop.f32.mrb[31].mxu0  ;;  %v3096_v21 = vadd.f32 %v7633_v2, %v9340_v15  ;;  %v3156_v37 = vsel %vm257_vm0, %v3095_v27, 0.0  ;;  %7635 = vmatpush3.bf16.msra.mxu1 %v8529_v33  ;;  %v9487_v39 = vld [vmem:[%s10745_s3] sm:$0xff]  }
 0x33a   : > { %v3152_v17 = vsel %vm257_vm0, %v3093_v47, 0.0  ;;  %v3094_v19 = vadd.f32 %v9340_v15, %v3014_v57  ;;  %v8530_v15 = vld [vmem:[%s10745_s3 + $0x18] sm:$0xff]  }
 0x33b   : > { %v3153_v16 = vadd.f32 %v3152_v17, %v3151_v45  ;;  %v3158_v63 = vsel %vm257_vm0, %v3096_v21, 0.0  ;;  %7636 = vmatprep.subr.bf16.mxu1 %v8530_v15 }
 0x33c   : > { %v3154_v40 = vsel %vm257_vm0, %v3094_v19, 0.0 }
 0x33d   : > { %v3155_v44 = vadd.f32 %v3154_v40, %v3153_v16  ;;  %7637 = vmatpush3.bf16.msra.mxu1 %v8530_v15 }
 0x33e   : > { %7670 = vmatprep.subr.bf16.mxu1 %v9487_v39 }
 0x33f   : > { %v3157_v51 = vadd.f32 %v3156_v37, %v3155_v44 }
 0x341   : > { %v3159_v1 = vadd.f32 %v3158_v63, %v3157_v51 }
 0x343   : > { %v3160_v52 = vrot.slane %v3159_v1, 4 }
 0x345   : > { %v3161_v31 = vadd.f32 %v3160_v52, %v3159_v1 }
 0x347   : > { %v3162_v42 = vrot.slane %v3161_v31, 2 }
 0x349   : > { %v3163_v62 = vadd.f32 %v3162_v42, %v3161_v31 }
 0x34b   : > { %v3164_v0 = vrot.slane %v3163_v62, 1 }
 0x34d   : > { %v3165_v58 = vadd.f32 %v3164_v0, %v3163_v62 }
 0x34f   : > { %v3167_v60 = vmul.f32 0.00390625, %v3165_v58 }
 0x351   : > { %v9490_v2 = vsub.f32 %v9391_v48, %v3167_v60  ;;  %v9493_v45 = vsub.f32 %v9394_v56, %v3167_v60  ;;  %v9496_v57 = vsub.f32 %v9403_v28, %v3167_v60  ;;  %v9499_v17 = vsub.f32 %v9411_v20, %v3167_v60 }
 0x352   : > { %v9502_v16 = vsub.f32 %v9406_v14, %v3167_v60  ;;  %v9505_v40 = vsub.f32 %v9414_v30, %v3167_v60  ;;  %v9509_v48 = vsub.f32 %v9423_v41, %v3167_v60  ;;  %v9512_v56 = vsub.f32 %v9431_v23, %v3167_v60 }
 0x353   : > { %v9515_v28 = vsub.f32 %v9426_v55, %v3167_v60  ;;  %v9518_v20 = vsub.f32 %v9434_v35, %v3167_v60  ;;  %v9521_v14 = vsub.f32 %v9443_v54, %v3167_v60  ;;  %v9524_v30 = vsub.f32 %v9451_v59, %v3167_v60 }
 0x354   : > { %v9527_v44 = vsub.f32 %v9446_v38, %v3167_v60  ;;  %v9530_v41 = vsub.f32 %v9454_v18, %v3167_v60  ;;  %v9532_v23 = vsub.f32 %v3089_v50, %v3167_v60  ;;  %v9534_v37 = vsub.f32 %v3090_v32, %v3167_v60 }
 0x355   : > { %v9536_v55 = vsub.f32 %v3091_v46, %v3167_v60  ;;  %v9538_v35 = vsub.f32 %v3092_v34, %v3167_v60  ;;  %v9540_v51 = vsub.f32 %v3093_v47, %v3167_v60  ;;  %v9542_v54 = vsub.f32 %v3094_v19, %v3167_v60 }
 0x356   : > { %v9544_v59 = vsub.f32 %v3095_v27, %v3167_v60  ;;  %v9546_v63 = vsub.f32 %v3096_v21, %v3167_v60  ;;  %v9549_v38 = vsub.f32 %v9343_v13, %v3167_v60  ;;  %v9552_v18 = vsub.f32 %v9349_v43, %v3167_v60 }
 0x357   : > { %v9555_v50 = vsub.f32 %v9346_v24, %v3167_v60  ;;  %v9558_v46 = vsub.f32 %v9354_v53, %v3167_v60  ;;  %v9565_v47 = vsub.f32 %v9363_v29, %v3167_v60  ;;  %v9570_v43 = vsub.f32 %v9371_v26, %v3167_v60 }
 0x358   : > { %v3200_v32 = vmul.f32 %v9549_v38, %v9549_v38  ;;  %v3201_v34 = vmul.f32 %v9552_v18, %v9552_v18  ;;  %v9577_v21 = vsub.f32 %v9366_v22, %v3167_v60  ;;  %v9583_v26 = vsub.f32 %v9374_v61, %v3167_v60 }
 0x359   : > { %v3202_v13 = vmul.f32 %v9555_v50, %v9555_v50  ;;  %v3203_v24 = vmul.f32 %v9558_v46, %v9558_v46  ;;  %v3204_v29 = vmul.f32 %v9565_v47, %v9565_v47  ;;  %v3205_v31 = vmul.f32 %v9570_v43, %v9570_v43 }
 0x35a   : > { %v3232_v53 = vsel %vm257_vm0, %v3200_v32, 0.0  ;;  %v3233_v27 = vsel %vm257_vm0, %v3201_v34, 0.0  ;;  %v9589_v0 = vsub.f32 %v9383_v25, %v3167_v60  ;;  %v3206_v22 = vmul.f32 %v9577_v21, %v9577_v21 }
 0x35b   : > { %v3234_v19 = vadd.f32 %v3233_v27, %v3232_v53  ;;  %v3235_v1 = vsel %vm257_vm0, %v3202_v13, 0.0  ;;  %v3237_v42 = vsel %vm257_vm0, %v3203_v24, 0.0  ;;  %v3239_v33 = vsel %vm257_vm0, %v3204_v29, 0.0 }
 0x35c   : > { %v3207_v58 = vmul.f32 %v9583_v26, %v9583_v26  ;;  %v3241_v61 = vsel %vm257_vm0, %v3205_v31, 0.0  ;;  %v9598_v34 = vsub.f32 %v9386_v36, %v3167_v60  ;;  %v3208_v13 = vmul.f32 %v9589_v0, %v9589_v0 }
 0x35d   : > { %v3236_v52 = vadd.f32 %v3235_v1, %v3234_v19  ;;  %v3243_v25 = vsel %vm257_vm0, %v3206_v22, 0.0  ;;  %v3209_v53 = vmul.f32 %v9490_v2, %v9490_v2  ;;  %v3211_v36 = vmul.f32 %v9493_v45, %v9493_v45 }
 0x35e   : > { %v3245_v27 = vsel %vm257_vm0, %v3207_v58, 0.0  ;;  %v3210_v29 = vmul.f32 %v9598_v34, %v9598_v34  ;;  %v3247_v1 = vsel %vm257_vm0, %v3208_v13, 0.0 }
 0x35f   : > { %v3238_v62 = vadd.f32 %v3237_v42, %v3236_v52  ;;  %v3249_v60 = vsel %vm257_vm0, %v3209_v53, 0.0  ;;  %v3212_v42 = vmul.f32 %v9496_v57, %v9496_v57 }
 0x361   : > { %v3240_v15 = vadd.f32 %v3239_v33, %v3238_v62  ;;  %v3251_v62 = vsel %vm257_vm0, %v3210_v29, 0.0  ;;  %v3213_v33 = vmul.f32 %v9499_v17, %v9499_v17 }
 0x363   : > { %v3242_v32 = vadd.f32 %v3241_v61, %v3240_v15  ;;  %v3253_v15 = vsel %vm257_vm0, %v3211_v36, 0.0  ;;  %v3214_v61 = vmul.f32 %v9502_v16, %v9502_v16 }
 0x365   : > { %v3244_v24 = vadd.f32 %v3243_v25, %v3242_v32  ;;  %v3255_v32 = vsel %vm257_vm0, %v3212_v42, 0.0  ;;  %v3215_v25 = vmul.f32 %v9505_v40, %v9505_v40 }
 0x367   : > { %v3246_v19 = vadd.f32 %v3245_v27, %v3244_v24  ;;  %v3257_v24 = vsel %vm257_vm0, %v3213_v33, 0.0  ;;  %v3216_v27 = vmul.f32 %v9509_v48, %v9509_v48 }
 0x369   : > { %v3248_v52 = vadd.f32 %v3247_v1, %v3246_v19  ;;  %v3259_v19 = vsel %vm257_vm0, %v3214_v61, 0.0  ;;  %v3217_v1 = vmul.f32 %v9512_v56, %v9512_v56 }
 0x36b   : > { %v3250_v31 = vadd.f32 %v3249_v60, %v3248_v52  ;;  %v3261_v52 = vsel %vm257_vm0, %v3215_v25, 0.0  ;;  %v3218_v60 = vmul.f32 %v9515_v28, %v9515_v28 }
 0x36d   : > { %v3252_v22 = vadd.f32 %v3251_v62, %v3250_v31  ;;  %v3263_v31 = vsel %vm257_vm0, %v3216_v27, 0.0  ;;  %v3219_v62 = vmul.f32 %v9518_v20, %v9518_v20 }
 0x36f   : > { %v3254_v58 = vadd.f32 %v3253_v15, %v3252_v22  ;;  %v3265_v22 = vsel %vm257_vm0, %v3217_v1, 0.0  ;;  %v3220_v15 = vmul.f32 %v9521_v14, %v9521_v14 }
 0x371   : > { %v3256_v13 = vadd.f32 %v3255_v32, %v3254_v58  ;;  %v3267_v58 = vsel %vm257_vm0, %v3218_v60, 0.0  ;;  %v3221_v32 = vmul.f32 %v9524_v30, %v9524_v30 }
 0x373   : > { %v3258_v53 = vadd.f32 %v3257_v24, %v3256_v13  ;;  %v3269_v13 = vsel %vm257_vm0, %v3219_v62, 0.0  ;;  %v3222_v24 = vmul.f32 %v9527_v44, %v9527_v44 }
 0x375   : > { %v3260_v29 = vadd.f32 %v3259_v19, %v3258_v53  ;;  %v3271_v53 = vsel %vm257_vm0, %v3220_v15, 0.0  ;;  %v3223_v19 = vmul.f32 %v9530_v41, %v9530_v41 }
 0x377   : > { %v3262_v36 = vadd.f32 %v3261_v52, %v3260_v29  ;;  %v3273_v29 = vsel %vm257_vm0, %v3221_v32, 0.0  ;;  %v3224_v52 = vmul.f32 %v9532_v23, %v9532_v23 }
 0x379   : > { %v3264_v42 = vadd.f32 %v3263_v31, %v3262_v36  ;;  %v3275_v36 = vsel %vm257_vm0, %v3222_v24, 0.0  ;;  %v3225_v31 = vmul.f32 %v9534_v37, %v9534_v37 }
 0x37b   : > { %v3266_v33 = vadd.f32 %v3265_v22, %v3264_v42  ;;  %v3277_v42 = vsel %vm257_vm0, %v3223_v19, 0.0  ;;  %v3226_v22 = vmul.f32 %v9536_v55, %v9536_v55 }
 0x37d   : > { %v3268_v61 = vadd.f32 %v3267_v58, %v3266_v33  ;;  %v3279_v33 = vsel %vm257_vm0, %v3224_v52, 0.0  ;;  %v3227_v58 = vmul.f32 %v9538_v35, %v9538_v35 }
 0x37f   : > { %v3270_v25 = vadd.f32 %v3269_v13, %v3268_v61  ;;  %v3281_v61 = vsel %vm257_vm0, %v3225_v31, 0.0  ;;  %v3228_v13 = vmul.f32 %v9540_v51, %v9540_v51 }
 0x381   : > { %v3272_v27 = vadd.f32 %v3271_v53, %v3270_v25  ;;  %v3283_v25 = vsel %vm257_vm0, %v3226_v22, 0.0  ;;  %v3229_v53 = vmul.f32 %v9542_v54, %v9542_v54 }
 0x383   : > { %v3274_v1 = vadd.f32 %v3273_v29, %v3272_v27  ;;  %v3285_v27 = vsel %vm257_vm0, %v3227_v58, 0.0  ;;  %v3230_v29 = vmul.f32 %v9544_v59, %v9544_v59 }
 0x385   : > { %v3276_v60 = vadd.f32 %v3275_v36, %v3274_v1  ;;  %v3287_v1 = vsel %vm257_vm0, %v3228_v13, 0.0  ;;  %v3231_v36 = vmul.f32 %v9546_v63, %v9546_v63 }
 0x387   : > { %v3278_v62 = vadd.f32 %v3277_v42, %v3276_v60  ;;  %v3289_v60 = vsel %vm257_vm0, %v3229_v53, 0.0  ;;  %v3291_v42 = vsel %vm257_vm0, %v3230_v29, 0.0  ;;  %v3293_v22 = vsel %vm257_vm0, %v3231_v36, 0.0 }
 0x389   : > { %v3280_v15 = vadd.f32 %v3279_v33, %v3278_v62 }
 0x38b   : > { %v3282_v32 = vadd.f32 %v3281_v61, %v3280_v15 }
 0x38d   : > { %v3284_v24 = vadd.f32 %v3283_v25, %v3282_v32 }
 0x38f   : > { %v3286_v19 = vadd.f32 %v3285_v27, %v3284_v24 }
 0x391   : > { %v3288_v52 = vadd.f32 %v3287_v1, %v3286_v19 }
 0x393   : > { %v3290_v31 = vadd.f32 %v3289_v60, %v3288_v52 }
 0x395   : > { %v3292_v62 = vadd.f32 %v3291_v42, %v3290_v31 }
 0x397   : > { %v3294_v33 = vadd.f32 %v3293_v22, %v3292_v62 }
 0x399   : > { %v3295_v15 = vrot.slane %v3294_v33, 4 }
 0x39b   : > { %v3296_v58 = vadd.f32 %v3295_v15, %v3294_v33 }
 0x39d   : > { %v3297_v61 = vrot.slane %v3296_v58, 2 }
 0x39f   : > { %v3298_v32 = vadd.f32 %v3297_v61, %v3296_v58 }
 0x3a1   : > { %v3299_v25 = vrot.slane %v3298_v32, 1 }
 0x3a3   : > { %v3300_v24 = vadd.f32 %v3299_v25, %v3298_v32 }
 0x3a5   : > { %v3301_v13 = vmul.f32 0.00390625, %v3300_v24 }
 0x3a7   : > { %v3302_v27 = vadd.f32 1e-05, %v3301_v13 }
 0x3a9   : > { %8547 = vrsqrt.f32 %v3302_v27 }
 0x3b3   : > { %v8548_v19 = vpop.eup %8547 }
 0x3b4   : > { %v3333_v1 = vmul.f32 %v8548_v19, %v9542_v54  ;;  %v3304_v53 = vmul.f32 %v8548_v19, %v9549_v38  ;;  %v3305_v29 = vmul.f32 %v8548_v19, %v9552_v18  ;;  %v3306_v52 = vmul.f32 %v8548_v19, %v9555_v50 }
 0x3b5   : > { %v3307_v36 = vmul.f32 %v8548_v19, %v9558_v46  ;;  %v3308_v60 = vmul.f32 %v8548_v19, %v9565_v47  ;;  %v3309_v31 = vmul.f32 %v8548_v19, %v9570_v43  ;;  %v3310_v42 = vmul.f32 %v8548_v19, %v9577_v21 }
 0x3b6   : > { %v3365_v62 = vmax.f32 %v3333_v1, 0.0  ;;  %v3311_v22 = vmul.f32 %v8548_v19, %v9583_v26  ;;  %v3312_v33 = vmul.f32 %v8548_v19, %v9589_v0  ;;  %v3313_v54 = vmul.f32 %v8548_v19, %v9490_v2 }
 0x3b7   : > { %v3314_v38 = vmul.f32 %v8548_v19, %v9598_v34  ;;  %v3315_v18 = vmul.f32 %v8548_v19, %v9493_v45  ;;  %v3316_v50 = vmul.f32 %v8548_v19, %v9496_v57  ;;  %v3317_v46 = vmul.f32 %v8548_v19, %v9499_v17 }
 0x3b8   : > { %3403 = vst.msk [vmem:[#allocation2 + $0x1a1] sm:$0xff] %vm257_vm0, %v3365_v62  ;;  %v3318_v47 = vmul.f32 %v8548_v19, %v9502_v16  ;;  %v9692_v43 = vmul.f32 %v8548_v19, %v9505_v40  ;;  %v9695_v21 = vmul.f32 %v8548_v19, %v9509_v48  ;;  %v9698_v2 = vmul.f32 %v8548_v19, %v9512_v56 }
 0x3b9   : > { %3397 = vst.msk [vmem:[#allocation2 + $0x171] sm:$0xff] %vm257_vm0, %v3365_v62  ;;  %v9702_v45 = vmul.f32 %v8548_v19, %v9515_v28  ;;  %v9705_v57 = vmul.f32 %v8548_v19, %v9518_v20  ;;  %v9708_v17 = vmul.f32 %v8548_v19, %v9521_v14  ;;  %v9711_v16 = vmul.f32 %v8548_v19, %v9524_v30 }
 0x3ba   : > { %v9714_v40 = vmul.f32 %v8548_v19, %v9527_v44  ;;  %v9717_v48 = vmul.f32 %v8548_v19, %v9530_v41  ;;  %v9720_v56 = vmul.f32 %v8548_v19, %v9532_v23  ;;  %v9723_v28 = vmul.f32 %v8548_v19, %v9534_v37 }
 0x3bb   : > { %v9726_v20 = vmul.f32 %v8548_v19, %v9536_v55  ;;  %v9729_v14 = vmul.f32 %v8548_v19, %v9538_v35  ;;  %v9732_v30 = vmul.f32 %v8548_v19, %v9540_v51  ;;  %v9735_v44 = vmul.f32 %v8548_v19, %v9544_v59 }
 0x3bc   : > { %v9738_v41 = vmul.f32 %v8548_v19, %v9546_v63  ;;  %v3336_v23 = vmax.f32 %v3304_v53, 0.0  ;;  %v3337_v26 = vmax.f32 %v3305_v29, 0.0  ;;  %v3338_v0 = vmax.f32 %v3306_v52, 0.0 }
 0x3bd   : > { %v3339_v37 = vmax.f32 %v3307_v36, 0.0  ;;  %v3340_v34 = vmax.f32 %v3308_v60, 0.0  ;;  %v3341_v15 = vmax.f32 %v3309_v31, 0.0  ;;  %v3342_v55 = vmax.f32 %v3310_v42, 0.0 }
 0x3be   : > { %v3343_v58 = vmax.f32 %v3311_v22, 0.0  ;;  %v3344_v61 = vmax.f32 %v3312_v33, 0.0  ;;  %v3345_v35 = vmax.f32 %v3313_v54, 0.0  ;;  %v3346_v32 = vmax.f32 %v3314_v38, 0.0  ;;  %3368 = vst.msk [vmem:[#allocation2 + $0x19] sm:$0xff] %vm257_vm0, %v3336_v23  ;;  %3369 = vst.msk [vmem:[#allocation2 + $0x21] sm:$0xff] %vm257_vm0, %v3337_v26 }
 0x3bf   : > { %3370 = vst.msk [vmem:[#allocation2 + $0x31] sm:$0xff] %vm257_vm0, %v3338_v0  ;;  %3400 = vst.msk [vmem:[#allocation2 + $0x1] sm:$0xff] %vm257_vm0, %v3338_v0  ;;  %v3347_v51 = vmax.f32 %v3315_v18, 0.0  ;;  %v3348_v59 = vmax.f32 %v3316_v50, 0.0  ;;  %v3349_v63 = vmax.f32 %v3317_v46, 0.0  ;;  %v3350_v25 = vmax.f32 %v3318_v47, 0.0 }
 0x3c0   : > { %3371 = vst.msk [vmem:[#allocation2 + $0x39] sm:$0xff] %vm257_vm0, %v3339_v37  ;;  %3372 = vst.msk [vmem:[#allocation2 + $0x49] sm:$0xff] %vm257_vm0, %v3340_v34  ;;  %v3351_v24 = vmax.f32 %v9692_v43, 0.0  ;;  %v3352_v13 = vmax.f32 %v9695_v21, 0.0  ;;  %v3353_v27 = vmax.f32 %v9698_v2, 0.0  ;;  %v3354_v19 = vmax.f32 %v9702_v45, 0.0 }
 0x3c1   : > { %3373 = vst.msk [vmem:[#allocation2 + $0x51] sm:$0xff] %vm257_vm0, %v3341_v15  ;;  %3374 = vst.msk [vmem:[#allocation2 + $0x61] sm:$0xff] %vm257_vm0, %v3342_v55  ;;  %v3455_v1 = vld [vmem:[#allocation2 + $0x177] sm:$0x1]  ;;  %v3355_v53 = vmax.f32 %v9705_v57, 0.0  ;;  %v3356_v29 = vmax.f32 %v9708_v17, 0.0 }
 0x3c2   : > { %3401 = vst.msk [vmem:[#allocation2 + $0x9] sm:$0xff] %vm257_vm0, %v3339_v37  ;;  %3375 = vst.msk [vmem:[#allocation2 + $0x69] sm:$0xff] %vm257_vm0, %v3343_v58  ;;  %v3357_v52 = vmax.f32 %v9711_v16, 0.0  ;;  %v3358_v36 = vmax.f32 %v9714_v40, 0.0  ;;  %v3359_v60 = vmax.f32 %v9717_v48, 0.0  ;;  %v3360_v31 = vmax.f32 %v9720_v56, 0.0 }
 0x3c3   : > { %3376 = vst.msk [vmem:[#allocation2 + $0x79] sm:$0xff] %vm257_vm0, %v3344_v61  ;;  %3377 = vst.msk [vmem:[#allocation2 + $0x81] sm:$0xff] %vm257_vm0, %v3345_v35  ;;  %v3361_v42 = vmax.f32 %v9723_v28, 0.0  ;;  %v3362_v62 = vmax.f32 %v9726_v20, 0.0  ;;  %v3457_v22 = vld [vmem:[#allocation2 + $0x1a7] sm:$0x1] }
 0x3c4   : > { %3378 = vst.msk [vmem:[#allocation2 + $0x91] sm:$0xff] %vm257_vm0, %v3346_v32  ;;  %3379 = vst.msk [vmem:[#allocation2 + $0x99] sm:$0xff] %vm257_vm0, %v3347_v51  ;;  %v3363_v33 = vmax.f32 %v9729_v14, 0.0  ;;  %v3364_v54 = vmax.f32 %v9732_v30, 0.0  ;;  %v3366_v38 = vmax.f32 %v9735_v44, 0.0  ;;  %v3367_v18 = vmax.f32 %v9738_v41, 0.0 }
 0x3c5   : > { %3380 = vst.msk [vmem:[#allocation2 + $0xa9] sm:$0xff] %vm257_vm0, %v3348_v59  ;;  %3381 = vst.msk [vmem:[#allocation2 + $0xb1] sm:$0xff] %vm257_vm0, %v3349_v63  ;;  %v3530_v46 = vld [vmem:[#allocation2 + $0x19] sm:$0xff]  ;;  %v3531_v47 = vld [vmem:[#allocation2 + $0x21] sm:$0xff] }
 0x3c6   : > { %3382 = vst.msk [vmem:[#allocation2 + $0xc1] sm:$0xff] %vm257_vm0, %v3350_v25  ;;  %3383 = vst.msk [vmem:[#allocation2 + $0xc9] sm:$0xff] %vm257_vm0, %v3351_v24  ;;  %v3528_v50 = vld [vmem:[#allocation2 + $0x1] sm:$0xff]  ;;  %v9792_v21 = vpack.c.bf16 %v3531_v47, %v3530_v46  ;;  %v3532_v2 = vld [vmem:[#allocation2 + $0x31] sm:$0xff] }
 0x3c7   : > { %3473 = vst.msk [vmem:[#allocation2 + $0x179] sm:$0x1] %vm313_vm1, %v3455_v1  ;;  %3475 = vst.msk [vmem:[#allocation2 + $0x1a9] sm:$0x1] %vm313_vm1, %v3457_v22  ;;  %v3533_v45 = vld [vmem:[#allocation2 + $0x39] sm:$0xff]  ;;  %v8532_v17 = vld [vmem:[%s10745_s3 + $0x8] sm:$0xff]  }
 0x3c8   : > { %3384 = vst.msk [vmem:[#allocation2 + $0xd9] sm:$0xff] %vm257_vm0, %v3352_v13  ;;  %3385 = vst.msk [vmem:[#allocation2 + $0xe1] sm:$0xff] %vm257_vm0, %v3353_v27  ;;  %v9798_v16 = vpack.c.bf16 %v3533_v45, %v3532_v2  ;;  %v9808_v40 = vld [vmem:[%s10745_s3 + $0x20] sm:$0xff]   ;;  %v3534_v48 = vld [vmem:[#allocation2 + $0x49] sm:$0xff] }
 0x3c9   : > { %3386 = vst.msk [vmem:[#allocation2 + $0xf1] sm:$0xff] %vm257_vm0, %v3354_v19  ;;  %3387 = vst.msk [vmem:[#allocation2 + $0xf9] sm:$0xff] %vm257_vm0, %v3355_v53  ;;  %v3529_v43 = vld [vmem:[#allocation2 + $0x9] sm:$0xff]  ;;  %v3535_v56 = vld [vmem:[#allocation2 + $0x51] sm:$0xff] }
 0x3ca   : > { %3388 = vst.msk [vmem:[#allocation2 + $0x109] sm:$0xff] %vm257_vm0, %v3356_v29  ;;  %3389 = vst.msk [vmem:[#allocation2 + $0x111] sm:$0xff] %vm257_vm0, %v3357_v52  ;;  %v3560_v57 = vpack.c.bf16 %v3529_v43, %v3528_v50  ;;  %v3536_v28 = vld [vmem:[#allocation2 + $0x61] sm:$0xff]  ;;  %v3537_v20 = vld [vmem:[#allocation2 + $0x69] sm:$0xff]  ;;  %v9810_v30 = vpack.c.bf16 %v3535_v56, %v3534_v48 }
 0x3cb   : > { %3390 = vst.msk [vmem:[#allocation2 + $0x121] sm:$0xff] %vm257_vm0, %v3358_v36  ;;  %3391 = vst.msk [vmem:[#allocation2 + $0x129] sm:$0xff] %vm257_vm0, %v3359_v60  ;;  %v3404_v14 = vld [vmem:[#allocation2 + $0x2] sm:$0x1]  ;;  %v3406_v44 = vld [vmem:[#allocation2 + $0x32] sm:$0x1]  ;;  %v9814_v41 = vpack.c.bf16 %v3537_v20, %v3536_v28 }
 0x3cc   : > { %3392 = vst.msk [vmem:[#allocation2 + $0x139] sm:$0xff] %vm257_vm0, %v3360_v31  ;;  %3393 = vst.msk [vmem:[#allocation2 + $0x141] sm:$0xff] %vm257_vm0, %v3361_v42  ;;  %7638 = vmatprep.mubr.msk.bf16.mxu1 %vm257_vm0, %v3560_v57  ;;  %v3407_v23 = vld [vmem:[#allocation2 + $0x4a] sm:$0x1]  ;;  %v3408_v26 = vld [vmem:[#allocation2 + $0x62] sm:$0x1] }
 0x3cd   : > { %3394 = vst.msk [vmem:[#allocation2 + $0x151] sm:$0xff] %vm257_vm0, %v3362_v62  ;;  %3402 = vst.msk [vmem:[#allocation2 + $0x199] sm:$0xff] %vm257_vm0, %v3364_v54  ;;  %7639 = vmatmul.mubr.msk.bf16.vlgmr.msra.gmra.mrb[0].mxu1 %vm257_vm0, %v9792_v21  ;;  %v3409_v0 = vld [vmem:[#allocation2 + $0x7a] sm:$0x1]  ;;  %v3410_v37 = vld [vmem:[#allocation2 + $0x92] sm:$0x1] }
 0x3ce   : > { %3395 = vst.msk [vmem:[#allocation2 + $0x159] sm:$0xff] %vm257_vm0, %v3363_v33  ;;  %3396 = vst.msk [vmem:[#allocation2 + $0x169] sm:$0xff] %vm257_vm0, %v3364_v54  ;;  %7671 = vmatpush3.bf16.msra.mxu1 %v9487_v39  ;;  %7642 = vmatprep.mubr.msk.bf16.mxu1 %vm257_vm0, %v9798_v16  ;;  %v3405_v39 = vld [vmem:[#allocation2 + $0x1a] sm:$0x1]  ;;  %v3411_v15 = vld [vmem:[#allocation2 + $0xaa] sm:$0x1] }
 0x3cf   : > { %3398 = vst.msk [vmem:[#allocation2 + $0x181] sm:$0xff] %vm257_vm0, %v3366_v38  ;;  %3399 = vst.msk [vmem:[#allocation2 + $0x189] sm:$0xff] %vm257_vm0, %v3367_v18  ;;  %7672 = vmatprep.subr.bf16.mxu1 %v8532_v17  ;;  %v3538_v34 = vld [vmem:[#allocation2 + $0x79] sm:$0xff]  ;;  %v3412_v55 = vld [vmem:[#allocation2 + $0xc2] sm:$0x1] }
 0x3d0   : > { %3422 = vst.msk [vmem:[#allocation2] sm:$0x1] %vm313_vm1, %v3404_v14  ;;  %3423 = vst.msk [vmem:[#allocation2 + $0x18] sm:$0x1] %vm313_vm1, %v3405_v39  ;;  %v3539_v58 = vld [vmem:[#allocation2 + $0x81] sm:$0xff]  ;;  %v3540_v61 = vld [vmem:[#allocation2 + $0x91] sm:$0xff] }
 0x3d1   : > { %3424 = vst.msk [vmem:[#allocation2 + $0x30] sm:$0x1] %vm313_vm1, %v3406_v44  ;;  %3425 = vst.msk [vmem:[#allocation2 + $0x48] sm:$0x1] %vm313_vm1, %v3407_v23  ;;  %v3413_v35 = vld [vmem:[#allocation2 + $0xda] sm:$0x1]  ;;  %v9831_v25 = vpack.c.bf16 %v3539_v58, %v3538_v34 }
 0x3d2   : > { %7673 = vmatpush3.bf16.msra.mxu1 %v8532_v17  ;;  %3426 = vst.msk [vmem:[#allocation2 + $0x60] sm:$0x1] %vm313_vm1, %v3408_v26  ;;  %3427 = vst.msk [vmem:[#allocation2 + $0x78] sm:$0x1] %vm313_vm1, %v3409_v0  ;;  %v3541_v32 = vld [vmem:[#allocation2 + $0x99] sm:$0xff]  ;;  %v3542_v1 = vld [vmem:[#allocation2 + $0xa9] sm:$0xff] }
 0x3d3   : > { %7706 = vmatprep.subr.bf16.mxu1 %v9808_v40  ;;  %3428 = vst.msk [vmem:[#allocation2 + $0x90] sm:$0x1] %vm313_vm1, %v3410_v37  ;;  %3429 = vst.msk [vmem:[#allocation2 + $0xa8] sm:$0x1] %vm313_vm1, %v3411_v15  ;;  %v3414_v51 = vld [vmem:[#allocation2 + $0xf2] sm:$0x1]  ;;  %v9834_v24 = vpack.c.bf16 %v3541_v32, %v3540_v61 }
 0x3d4   : > { %3430 = vst.msk [vmem:[#allocation2 + $0xc0] sm:$0x1] %vm313_vm1, %v3412_v55  ;;  %3431 = vst.msk [vmem:[#allocation2 + $0xd8] sm:$0x1] %vm313_vm1, %v3413_v35  ;;  %v3415_v59 = vld [vmem:[#allocation2 + $0x10a] sm:$0x1] }
 0x3d5   : > { %7643 = vmatmul.mubr.msk.bf16.gmra.mrb[4].mxu1 %vm257_vm0, %v9810_v30  ;;  %3432 = vst.msk [vmem:[#allocation2 + $0xf0] sm:$0x1] %vm313_vm1, %v3414_v51  ;;  %3433 = vst.msk [vmem:[#allocation2 + $0x108] sm:$0x1] %vm313_vm1, %v3415_v59  ;;  %v3416_v63 = vld [vmem:[#allocation2 + $0x122] sm:$0x1] }
 0x3d6   : > { %7646 = vmatprep.mubr.msk.bf16.mxu1 %vm257_vm0, %v9814_v41  ;;  %3434 = vst.msk [vmem:[#allocation2 + $0x120] sm:$0x1] %vm313_vm1, %v3416_v63  ;;  %v3417_v13 = vld [vmem:[#allocation2 + $0x13a] sm:$0x1]  ;;  %v3418_v27 = vld [vmem:[#allocation2 + $0x152] sm:$0x1] }
 0x3d7   : > { %3435 = vst.msk [vmem:[#allocation2 + $0x138] sm:$0x1] %vm313_vm1, %v3417_v13  ;;  %3436 = vst.msk [vmem:[#allocation2 + $0x150] sm:$0x1] %vm313_vm1, %v3418_v27  ;;  %v3419_v19 = vld [vmem:[#allocation2 + $0x16a] sm:$0x1] }
 0x3d8   : > { %3437 = vst.msk [vmem:[#allocation2 + $0x168] sm:$0x1] %vm313_vm1, %v3419_v19  ;;  %v3543_v53 = vld [vmem:[#allocation2 + $0xb1] sm:$0xff]  ;;  %v3440_v29 = vld [vmem:[#allocation2 + $0xf] sm:$0x1]  ;;  %v3544_v52 = vld [vmem:[#allocation2 + $0xc1] sm:$0xff] }
 0x3d9   : > { %v3545_v36 = vld [vmem:[#allocation2 + $0xc9] sm:$0xff]  ;;  %3458 = vst.msk [vmem:[#allocation2 + $0x11] sm:$0x1] %vm313_vm1, %v3440_v29  ;;  %v3441_v60 = vld [vmem:[#allocation2 + $0x27] sm:$0x1]  ;;  %v9845_v42 = vpack.c.bf16 %v3543_v53, %v3542_v1  ;;  %v3546_v46 = vld [vmem:[#allocation2 + $0xd9] sm:$0xff] }
 0x3da   : > { %3459 = vst.msk [vmem:[#allocation2 + $0x29] sm:$0x1] %vm313_vm1, %v3441_v60  ;;  %v3442_v31 = vld [vmem:[#allocation2 + $0x3f] sm:$0x1]  ;;  %v3443_v62 = vld [vmem:[#allocation2 + $0x57] sm:$0x1]  ;;  %v9848_v22 = vpack.c.bf16 %v3545_v36, %v3544_v52 }
 0x3db   : > { %3460 = vst.msk [vmem:[#allocation2 + $0x41] sm:$0x1] %vm313_vm1, %v3442_v31  ;;  %3461 = vst.msk [vmem:[#allocation2 + $0x59] sm:$0x1] %vm313_vm1, %v3443_v62  ;;  %v3444_v33 = vld [vmem:[#allocation2 + $0x6f] sm:$0x1] }
 0x3dc   : > { %3462 = vst.msk [vmem:[#allocation2 + $0x71] sm:$0x1] %vm313_vm1, %v3444_v33  ;;  %v3445_v54 = vld [vmem:[#allocation2 + $0x87] sm:$0x1]  ;;  %v3446_v38 = vld [vmem:[#allocation2 + $0x9f] sm:$0x1] }
 0x3dd   : > { %7647 = vmatmul.mubr.msk.bf16.gmra.mrb[8].mxu1 %vm257_vm0, %v9831_v25  ;;  %3463 = vst.msk [vmem:[#allocation2 + $0x89] sm:$0x1] %vm313_vm1, %v3445_v54  ;;  %3464 = vst.msk [vmem:[#allocation2 + $0xa1] sm:$0x1] %vm313_vm1, %v3446_v38  ;;  %v3447_v18 = vld [vmem:[#allocation2 + $0xb7] sm:$0x1] }
 0x3de   : > { %7650 = vmatprep.mubr.msk.bf16.mxu1 %vm257_vm0, %v9834_v24  ;;  %v3448_v50 = vld [vmem:[#allocation2 + $0xcf] sm:$0x1]  ;;  %v3547_v47 = vld [vmem:[#allocation2 + $0xe1] sm:$0xff]  ;;  %3465 = vst.msk [vmem:[#allocation2 + $0xb9] sm:$0x1] %vm313_vm1, %v3447_v18  ;;  %v3548_v43 = vld [vmem:[#allocation2 + $0xf1] sm:$0xff] }
 0x3df   : > { %3466 = vst.msk [vmem:[#allocation2 + $0xd1] sm:$0x1] %vm313_vm1, %v3448_v50  ;;  %v3549_v2 = vld [vmem:[#allocation2 + $0xf9] sm:$0xff]  ;;  %v3449_v45 = vld [vmem:[#allocation2 + $0xe7] sm:$0x1]  ;;  %v9861_v17 = vpack.c.bf16 %v3547_v47, %v3546_v46  ;;  %v3550_v39 = vld [vmem:[#allocation2 + $0x109] sm:$0xff] }
 0x3e0   : > { %3467 = vst.msk [vmem:[#allocation2 + $0xe9] sm:$0x1] %vm313_vm1, %v3449_v45  ;;  %v3450_v57 = vld [vmem:[#allocation2 + $0xff] sm:$0x1]  ;;  %v3451_v48 = vld [vmem:[#allocation2 + $0x117] sm:$0x1]  ;;  %v9864_v56 = vpack.c.bf16 %v3549_v2, %v3548_v43 }
 0x3e1   : > { %3468 = vst.msk [vmem:[#allocation2 + $0x101] sm:$0x1] %vm313_vm1, %v3450_v57  ;;  %3469 = vst.msk [vmem:[#allocation2 + $0x119] sm:$0x1] %vm313_vm1, %v3451_v48  ;;  %v3452_v28 = vld [vmem:[#allocation2 + $0x12f] sm:$0x1] }
 0x3e2   : > { %3470 = vst.msk [vmem:[#allocation2 + $0x131] sm:$0x1] %vm313_vm1, %v3452_v28  ;;  %v3453_v20 = vld [vmem:[#allocation2 + $0x147] sm:$0x1]  ;;  %v3454_v14 = vld [vmem:[#allocation2 + $0x15f] sm:$0x1] }
 0x3e3   : > { %3471 = vst.msk [vmem:[#allocation2 + $0x149] sm:$0x1] %vm313_vm1, %v3453_v20  ;;  %3472 = vst.msk [vmem:[#allocation2 + $0x161] sm:$0x1] %vm313_vm1, %v3454_v14  ;;  %v3551_v44 = vld [vmem:[#allocation2 + $0x111] sm:$0xff]  ;;  %v3552_v26 = vld [vmem:[#allocation2 + $0x121] sm:$0xff] }
 0x3e4   : > { %v3420_v23 = vld [vmem:[#allocation2 + $0x182] sm:$0x1]  ;;  %v3553_v0 = vld [vmem:[#allocation2 + $0x129] sm:$0xff]  ;;  %v9875_v34 = vpack.c.bf16 %v3551_v44, %v3550_v39  ;;  %v3421_v15 = vld [vmem:[#allocation2 + $0x19a] sm:$0x1] }
 0x3e5   : > { %7651 = vmatmul.mubr.msk.bf16.gmra.mrb[12].mxu1 %vm257_vm0, %v9845_v42  ;;  %3438 = vst.msk [vmem:[#allocation2 + $0x180] sm:$0x1] %vm313_vm1, %v3420_v23  ;;  %v3456_v37 = vld [vmem:[#allocation2 + $0x18f] sm:$0x1]  ;;  %v9878_v55 = vpack.c.bf16 %v3553_v0, %v3552_v26  ;;  %3439 = vst.msk [vmem:[#allocation2 + $0x198] sm:$0x1] %vm313_vm1, %v3421_v15 }
 0x3e6   : > { %7654 = vmatprep.mubr.msk.bf16.mxu1 %vm257_vm0, %v9848_v22  ;;  %3474 = vst.msk [vmem:[#allocation2 + $0x191] sm:$0x1] %vm313_vm1, %v3456_v37  ;;  %v3554_v58 = vld [vmem:[#allocation2 + $0x139] sm:$0xff]  ;;  %v3555_v61 = vld [vmem:[#allocation2 + $0x141] sm:$0xff]  ;;  %v3556_v35 = vld [vmem:[#allocation2 + $0x151] sm:$0xff] }
 0x3e7   : > { %v3557_v32 = vld [vmem:[#allocation2 + $0x159] sm:$0xff]  ;;  %v9885_v51 = vpack.c.bf16 %v3555_v61, %v3554_v58  ;;  %v3558_v63 = vld [vmem:[#allocation2 + $0x169] sm:$0xff]  ;;  %v3559_v13 = vld [vmem:[#allocation2 + $0x171] sm:$0xff] }
 0x3e8   : > { %v9887_v59 = vpack.c.bf16 %v3557_v32, %v3556_v35  ;;  %v3476_v27 = vld [vmem:[#allocation2] sm:$0xff]  ;;  %v9893_v19 = vpack.c.bf16 %v3559_v13, %v3558_v63  ;;  %v3477_v1 = vld [vmem:[#allocation2 + $0x8] sm:$0xff]  ;;  %v3478_v29 = vld [vmem:[#allocation2 + $0x18] sm:$0xff] }
 0x3e9   : > { %v3508_v53 = vpack.c.bf16 %v3477_v1, %v3476_v27  ;;  %v3480_v52 = vld [vmem:[#allocation2 + $0x30] sm:$0xff]  ;;  %v3479_v36 = vld [vmem:[#allocation2 + $0x20] sm:$0xff]  ;;  %v3481_v31 = vld [vmem:[#allocation2 + $0x38] sm:$0xff] }
 0x3ea   : > { %v9898_v60 = vpack.c.bf16 %v3479_v36, %v3478_v29  ;;  %v8534_v62 = vld [vmem:[%s10745_s3 + $0x28] sm:$0xff]   ;;  %v9903_v33 = vpack.c.bf16 %v3481_v31, %v3480_v52  ;;  %v9913_v54 = vld [vmem:[%s10745_s3 + $0x30] sm:$0xff]   ;;  %v3484_v18 = vld [vmem:[#allocation2 + $0x60] sm:$0xff] }
 0x3eb   : > { %v3482_v38 = vld [vmem:[#allocation2 + $0x48] sm:$0xff]  ;;  %v3483_v50 = vld [vmem:[#allocation2 + $0x50] sm:$0xff]  ;;  %v3487_v45 = vld [vmem:[#allocation2 + $0x80] sm:$0xff] }
 0x3ec   : > { %v9915_v46 = vpack.c.bf16 %v3483_v50, %v3482_v38  ;;  %v3485_v47 = vld [vmem:[#allocation2 + $0x68] sm:$0xff]  ;;  %v3488_v2 = vld [vmem:[#allocation2 + $0x90] sm:$0xff]  ;;  %v3489_v48 = vld [vmem:[#allocation2 + $0x98] sm:$0xff] }
 0x3ed   : > { %7655 = vmatmul.mubr.msk.bf16.gmra.mrb[16].mxu1 %vm257_vm0, %v9861_v17  ;;  %v9918_v43 = vpack.c.bf16 %v3485_v47, %v3484_v18  ;;  %v9926_v28 = vpack.c.bf16 %v3489_v48, %v3488_v2  ;;  %v3490_v20 = vld [vmem:[#allocation2 + $0xa8] sm:$0xff]  ;;  %v3492_v14 = vld [vmem:[#allocation2 + $0xc0] sm:$0xff]  ;;  %v3491_v39 = vld [vmem:[#allocation2 + $0xb0] sm:$0xff] }
 0x3ee   : > { %7658 = vmatprep.mubr.msk.bf16.mxu1 %vm257_vm0, %v9864_v56  ;;  %v9932_v44 = vpack.c.bf16 %v3491_v39, %v3490_v20  ;;  %v3493_v23 = vld [vmem:[#allocation2 + $0xc8] sm:$0xff]  ;;  %v3494_v0 = vld [vmem:[#allocation2 + $0xd8] sm:$0xff]  ;;  %v3496_v37 = vld [vmem:[#allocation2 + $0xf0] sm:$0xff] }
 0x3ef   : > { %v9934_v26 = vpack.c.bf16 %v3493_v23, %v3492_v14  ;;  %v3495_v15 = vld [vmem:[#allocation2 + $0xe0] sm:$0xff]  ;;  %v3497_v61 = vld [vmem:[#allocation2 + $0xf8] sm:$0xff]  ;;  %v3498_v32 = vld [vmem:[#allocation2 + $0x108] sm:$0xff] }
 0x3f0   : > { %v9940_v58 = vpack.c.bf16 %v3495_v15, %v3494_v0  ;;  %v9942_v35 = vpack.c.bf16 %v3497_v61, %v3496_v37  ;;  %v3500_v63 = vld [vmem:[#allocation2 + $0x120] sm:$0xff]  ;;  %v3499_v13 = vld [vmem:[#allocation2 + $0x110] sm:$0xff]  ;;  %v3501_v1 = vld [vmem:[#allocation2 + $0x128] sm:$0xff] }
 0x3f1   : > { %v9948_v27 = vpack.c.bf16 %v3499_v13, %v3498_v32  ;;  %v3502_v29 = vld [vmem:[#allocation2 + $0x138] sm:$0xff]  ;;  %v3504_v52 = vld [vmem:[#allocation2 + $0x150] sm:$0xff]  ;;  %v3503_v36 = vld [vmem:[#allocation2 + $0x140] sm:$0xff] }
 0x3f2   : > { %v9956_v31 = vpack.c.bf16 %v3503_v36, %v3502_v29  ;;  %v3506_v18 = vld [vmem:[#allocation2 + $0x168] sm:$0xff]  ;;  %v3507_v47 = vld [vmem:[#allocation2 + $0x170] sm:$0xff]  ;;  %v4028_v20 = vld [vmem:[#allocation2 + $0x3a] sm:$0xff] }
 0x3f3   : > { %v4024_v50 = vld [vmem:[#allocation2 + $0xa] sm:$0xff]  ;;  %v4023_v2 = vld [vmem:[#allocation2 + $0x2] sm:$0xff]  ;;  %v4025_v14 = vld [vmem:[#allocation2 + $0x1a] sm:$0xff] }
 0x3f4   : > { %v4026_v48 = vld [vmem:[#allocation2 + $0x22] sm:$0xff]  ;;  %v4027_v23 = vld [vmem:[#allocation2 + $0x32] sm:$0xff]  ;;  %v4032_v32 = vld [vmem:[#allocation2 + $0x6a] sm:$0xff] }
 0x3f5   : > { %7659 = vmatmul.mubr.msk.bf16.gmra.mrb[20].mxu1 %vm257_vm0, %v9875_v34  ;;  %v9969_v39 = vpack.c.bf16 %v4026_v48, %v4025_v14  ;;  %v8536_v0 = vld [vmem:[%s10745_s3 + $0x38] sm:$0xff]   ;;  %v9974_v37 = vpack.c.bf16 %v4028_v20, %v4027_v23  ;;  %v8537_v15 = vld [vmem:[%s10745_s3 + $0x40] sm:$0xff]  }
 0x3f6   : > { %7662 = vmatprep.mubr.msk.bf16.mxu1 %vm257_vm0, %v9878_v55  ;;  %v4030_v61 = vld [vmem:[#allocation2 + $0x52] sm:$0xff]  ;;  %v4033_v36 = vld [vmem:[#allocation2 + $0x7a] sm:$0xff]  ;;  %v4039_v20 = vld [vmem:[#allocation2 + $0xc2] sm:$0xff] }
 0x3f7   : > { %v4042_v23 = vld [vmem:[#allocation2 + $0xe2] sm:$0xff] }
 0x3fd   : > { %7663 = vmatmul.mubr.msk.bf16.gmra.mrb[24].mxu1 %vm257_vm0, %v9885_v51 }
 0x3fe   : > { %7666 = vmatprep.mubr.msk.bf16.mxu1 %vm257_vm0, %v9887_v59 }
 0x405   : > { %7667 = vmatmul.mubr.msk.bf16.gmra.mrb[28].mxu1 %vm257_vm0, %v9893_v19 }
 0x406   : > { %7674 = vmatprep.mubr.msk.bf16.mxu1 %vm257_vm0, %v3508_v53  ;;  %v9950_v53 = vpack.c.bf16 %v3501_v1, %v3500_v63  ;;  %v4029_v63 = vld [vmem:[#allocation2 + $0x4a] sm:$0xff]  ;;  %v4031_v1 = vld [vmem:[#allocation2 + $0x62] sm:$0xff] }
 0x407   : > { %v9984_v13 = vpack.c.bf16 %v4030_v61, %v4029_v63  ;;  %v9986_v29 = vpack.c.bf16 %v4032_v32, %v4031_v1  ;;  %v4041_v61 = vld [vmem:[#allocation2 + $0xda] sm:$0xff]  ;;  %v4043_v63 = vld [vmem:[#allocation2 + $0xf2] sm:$0xff] }
 0x408   : > { %v10008_v32 = vpack.c.bf16 %v4042_v23, %v4041_v61  ;;  %v4049_v23 = vld [vmem:[#allocation2 + $0x13a] sm:$0xff]  ;;  %v4051_v61 = vld [vmem:[#allocation2 + $0x152] sm:$0xff] }
 0x40d   : > { %7675 = vmatmul.mubr.msk.bf16.vlgmr.msra.gmra.mrb[0].mxu1 %vm257_vm0, %v9898_v60 }
 0x40e   : > { %7707 = vmatpush3.bf16.msra.mxu1 %v9808_v40  ;;  %7678 = vmatprep.mubr.msk.bf16.mxu1 %vm257_vm0, %v9903_v33  ;;  %v3486_v40 = vld [vmem:[#allocation2 + $0x78] sm:$0xff] }
 0x40f   : > { %7708 = vmatprep.subr.bf16.mxu1 %v8534_v62  ;;  %v9924_v57 = vpack.c.bf16 %v3487_v45, %v3486_v40  ;;  %v9964_v40 = vpack.c.bf16 %v3507_v47, %v3506_v18  ;;  %v4055_v45 = vpack.c.bf16 %v4024_v50, %v4023_v2  ;;  %v4035_v18 = vld [vmem:[#allocation2 + $0x92] sm:$0xff]  ;;  %v4040_v2 = vld [vmem:[#allocation2 + $0xca] sm:$0xff] }
 0x410   : > { %v4038_v47 = vld [vmem:[#allocation2 + $0xb2] sm:$0xff]  ;;  %v10002_v14 = vpack.c.bf16 %v4040_v2, %v4039_v20  ;;  %v4052_v20 = vld [vmem:[#allocation2 + $0x15a] sm:$0xff] }
 0x412   : > { %7709 = vmatpush3.bf16.msra.mxu1 %v8534_v62  ;;  %v3505_v62 = vld [vmem:[#allocation2 + $0x158] sm:$0xff] }
 0x413   : > { %7742 = vmatprep.subr.bf16.mxu1 %v9913_v54  ;;  %v9958_v38 = vpack.c.bf16 %v3505_v62, %v3504_v52  ;;  %v4036_v52 = vld [vmem:[#allocation2 + $0x9a] sm:$0xff] }
 0x414   : > { %v9994_v50 = vpack.c.bf16 %v4036_v52, %v4035_v18  ;;  %v4048_v52 = vld [vmem:[#allocation2 + $0x12a] sm:$0xff] }
 0x415   : > { %7679 = vmatmul.mubr.msk.bf16.gmra.mrb[4].mxu1 %vm257_vm0, %v9915_v46 }
 0x416   : > { %7682 = vmatprep.mubr.msk.bf16.mxu1 %vm257_vm0, %v9918_v43 }
 0x41d   : > { %7683 = vmatmul.mubr.msk.bf16.gmra.mrb[8].mxu1 %vm257_vm0, %v9924_v57 }
 0x41e   : > { %7686 = vmatprep.mubr.msk.bf16.mxu1 %vm257_vm0, %v9926_v28 }
 0x425   : > { %7687 = vmatmul.mubr.msk.bf16.gmra.mrb[12].mxu1 %vm257_vm0, %v9932_v44 }
 0x426   : > { %7690 = vmatprep.mubr.msk.bf16.mxu1 %vm257_vm0, %v9934_v26 }
 0x42d   : > { %7691 = vmatmul.mubr.msk.bf16.gmra.mrb[16].mxu1 %vm257_vm0, %v9940_v58 }
 0x42e   : > { %7694 = vmatprep.mubr.msk.bf16.mxu1 %vm257_vm0, %v9942_v35 }
 0x435   : > { %7695 = vmatmul.mubr.msk.bf16.gmra.mrb[20].mxu1 %vm257_vm0, %v9948_v27 }
 0x436   : > { %7698 = vmatprep.mubr.msk.bf16.mxu1 %vm257_vm0, %v9950_v53 }
 0x43d   : > { %7699 = vmatmul.mubr.msk.bf16.gmra.mrb[24].mxu1 %vm257_vm0, %v9956_v31 }
 0x43e   : > { %7702 = vmatprep.mubr.msk.bf16.mxu1 %vm257_vm0, %v9958_v38 }
 0x445   : > { %7703 = vmatmul.mubr.msk.bf16.gmra.mrb[28].mxu1 %vm257_vm0, %v9964_v40 }
 0x446   : > { %7710 = vmatprep.mubr.msk.bf16.mxu1 %vm257_vm0, %v4055_v45  ;;  %v4037_v45 = vld [vmem:[#allocation2 + $0xaa] sm:$0xff] }
 0x447   : > { %v10000_v48 = vpack.c.bf16 %v4038_v47, %v4037_v45  ;;  %v4047_v47 = vld [vmem:[#allocation2 + $0x122] sm:$0xff] }
 0x448   : > { %v10018_v2 = vpack.c.bf16 %v4048_v52, %v4047_v47  ;;  %v4050_v45 = vld [vmem:[#allocation2 + $0x142] sm:$0xff]  ;;  %v4053_v52 = vld [vmem:[#allocation2 + $0x16a] sm:$0xff] }
 0x449   : > { %v8538_v47 = vld [vmem:[%s10745_s3 + $0x48] sm:$0xff]  }
 0x44d   : > { %7711 = vmatmul.mubr.msk.bf16.vlgmr.msra.gmra.mrb[0].mxu1 %vm257_vm0, %v9969_v39 }
 0x44e   : > { %7743 = vmatpush3.bf16.msra.mxu1 %v9913_v54  ;;  %7714 = vmatprep.mubr.msk.bf16.mxu1 %vm257_vm0, %v9974_v37  ;;  %v4034_v54 = vld [vmem:[#allocation2 + $0x82] sm:$0xff] }
 0x44f   : > { %7744 = vmatprep.subr.bf16.mxu1 %v8536_v0  ;;  %v9992_v62 = vpack.c.bf16 %v4034_v54, %v4033_v36  ;;  %v4046_v54 = vld [vmem:[#allocation2 + $0x112] sm:$0xff]  ;;  %v4045_v36 = vld [vmem:[#allocation2 + $0x10a] sm:$0xff] }
 0x450   : > { %v10016_v18 = vpack.c.bf16 %v4046_v54, %v4045_v36  ;;  %v4054_v54 = vld [vmem:[#allocation2 + $0x172] sm:$0xff] }
 0x451   : > { %v10032_v36 = vpack.c.bf16 %v4054_v54, %v4053_v52  ;;  %v5564_v54 = vld [vmem:[#allocation2 + $0xb1] sm:$0xff]  ;;  %v5565_v52 = vld [vmem:[#allocation2 + $0xc1] sm:$0xff] }
 0x452   : > { %7745 = vmatpush3.bf16.msra.mxu1 %v8536_v0  ;;  %v4044_v0 = vld [vmem:[#allocation2 + $0xfa] sm:$0xff] }
 0x453   : > { %7778 = vmatprep.subr.bf16.mxu1 %v8537_v15  ;;  %v10010_v1 = vpack.c.bf16 %v4044_v0, %v4043_v63  ;;  %v10024_v0 = vpack.c.bf16 %v4050_v45, %v4049_v23  ;;  %v10026_v63 = vpack.c.bf16 %v4052_v20, %v4051_v61  ;;  %v8539_v45 = vld [vmem:[%s10745_s3 + $0x50] sm:$0xff]   ;;  %v8540_v23 = vld [vmem:[%s10745_s3 + $0x58] sm:$0xff]   ;;  %v8541_v61 = vld [vmem:[%s10745_s3 + $0x60] sm:$0xff]  }
 0x455   : > { %7715 = vmatmul.mubr.msk.bf16.gmra.mrb[4].mxu1 %vm257_vm0, %v9984_v13 }
 0x456   : > { %7718 = vmatprep.mubr.msk.bf16.mxu1 %vm257_vm0, %v9986_v29 }
 0x45d   : > { %7719 = vmatmul.mubr.msk.bf16.gmra.mrb[8].mxu1 %vm257_vm0, %v9992_v62 }
 0x45e   : > { %7722 = vmatprep.mubr.msk.bf16.mxu1 %vm257_vm0, %v9994_v50 }
 0x465   : > { %7723 = vmatmul.mubr.msk.bf16.gmra.mrb[12].mxu1 %vm257_vm0, %v10000_v48 }
 0x466   : > { %7726 = vmatprep.mubr.msk.bf16.mxu1 %vm257_vm0, %v10002_v14 }
 0x46d   : > { %7727 = vmatmul.mubr.msk.bf16.gmra.mrb[16].mxu1 %vm257_vm0, %v10008_v32 }
 0x46e   : > { %7730 = vmatprep.mubr.msk.bf16.mxu1 %vm257_vm0, %v10010_v1 }
 0x475   : > { %7731 = vmatmul.mubr.msk.bf16.gmra.mrb[20].mxu1 %vm257_vm0, %v10016_v18 }
 0x476   : > { %7734 = vmatprep.mubr.msk.bf16.mxu1 %vm257_vm0, %v10018_v2 }
 0x47d   : > { %7735 = vmatmul.mubr.msk.bf16.gmra.mrb[24].mxu1 %vm257_vm0, %v10024_v0 }
 0x47e   : > { %7738 = vmatprep.mubr.msk.bf16.mxu1 %vm257_vm0, %v10026_v63 }
 0x485   : > { %7739 = vmatmul.mubr.msk.bf16.gmra.mrb[28].mxu1 %vm257_vm0, %v10032_v36 }
 0x486   : > { %7746 = vmatprep.mubr.msk.bf16.mxu1 %vm257_vm0, %v9898_v60  ;;  %v4359_v60 = vld [vmem:[#allocation2 + $0x180] sm:$0xff] }
 0x48d   : > { %7747 = vmatmul.mubr.msk.bf16.vlgmr.msra.gmra.mrb[0].mxu1 %vm257_vm0, %v9903_v33 }
 0x48e   : > { %7779 = vmatpush3.bf16.msra.mxu1 %v8537_v15  ;;  %7750 = vmatprep.mubr.msk.bf16.mxu1 %vm257_vm0, %v9915_v46  ;;  %v4360_v15 = vld [vmem:[#allocation2 + $0x188] sm:$0xff] }
 0x48f   : > { %7780 = vmatprep.subr.bf16.mxu1 %v8538_v47  ;;  %v10072_v20 = vpack.c.bf16 %v4360_v15, %v4359_v60  ;;  %v5567_v15 = vld [vmem:[#allocation2 + $0xd9] sm:$0xff] }
 0x492   : > { %7781 = vmatpush3.bf16.msra.mxu1 %v8538_v47  ;;  %v5566_v47 = vld [vmem:[#allocation2 + $0xc9] sm:$0xff] }
 0x493   : > { %7814 = vmatprep.subr.bf16.mxu1 %v8539_v45  ;;  %v5591_v60 = vpack.c.bf16 %v5566_v47, %v5565_v52 }
 0x495   : > { %7751 = vmatmul.mubr.msk.bf16.gmra.mrb[4].mxu1 %vm257_vm0, %v9918_v43 }
 0x496   : > { %7754 = vmatprep.mubr.msk.bf16.mxu1 %vm257_vm0, %v9924_v57 }
 0x49d   : > { %7755 = vmatmul.mubr.msk.bf16.gmra.mrb[8].mxu1 %vm257_vm0, %v9926_v28 }
 0x49e   : > { %7758 = vmatprep.mubr.msk.bf16.mxu1 %vm257_vm0, %v9932_v44 }
 0x4a5   : > { %7759 = vmatmul.mubr.msk.bf16.gmra.mrb[12].mxu1 %vm257_vm0, %v9934_v26 }
 0x4a6   : > { %7762 = vmatprep.mubr.msk.bf16.mxu1 %vm257_vm0, %v9940_v58 }
 0x4ad   : > { %7763 = vmatmul.mubr.msk.bf16.gmra.mrb[16].mxu1 %vm257_vm0, %v9942_v35 }
 0x4ae   : > { %7766 = vmatprep.mubr.msk.bf16.mxu1 %vm257_vm0, %v9948_v27 }
 0x4b5   : > { %7767 = vmatmul.mubr.msk.bf16.gmra.mrb[20].mxu1 %vm257_vm0, %v9950_v53 }
 0x4b6   : > { %7770 = vmatprep.mubr.msk.bf16.mxu1 %vm257_vm0, %v9956_v31 }
 0x4bd   : > { %7771 = vmatmul.mubr.msk.bf16.gmra.mrb[24].mxu1 %vm257_vm0, %v9958_v38 }
 0x4be   : > { %7774 = vmatprep.mubr.msk.bf16.mxu1 %vm257_vm0, %v9964_v40 }
 0x4c5   : > { %7775 = vmatmul.mubr.msk.bf16.gmra.mrb[28].mxu1 %vm257_vm0, %v10072_v20 }
 0x4c6   : > { %7782 = vmatprep.mubr.msk.bf16.mxu1 %vm257_vm0, %v9792_v21  ;;  %v4665_v21 = vld [vmem:[#allocation2 + $0x181] sm:$0xff] }
 0x4cd   : > { %7783 = vmatmul.mubr.msk.bf16.vlgmr.msra.gmra.mrb[0].mxu1 %vm257_vm0, %v9798_v16  ;;  %v4666_v16 = vld [vmem:[#allocation2 + $0x189] sm:$0xff] }
 0x4ce   : > { %7815 = vmatpush3.bf16.msra.mxu1 %v8539_v45  ;;  %7786 = vmatprep.mubr.msk.bf16.mxu1 %vm257_vm0, %v9810_v30  ;;  %v10112_v30 = vpack.c.bf16 %v4666_v16, %v4665_v21 }
 0x4cf   : > { %7816 = vmatprep.subr.bf16.mxu1 %v8540_v23 }
 0x4d2   : > { %7817 = vmatpush3.bf16.msra.mxu1 %v8540_v23  ;;  %v5569_v23 = vld [vmem:[#allocation2 + $0xf1] sm:$0xff] }
 0x4d3   : > { %7850 = vmatprep.subr.bf16.mxu1 %v8541_v61 }
 0x4d5   : > { %7787 = vmatmul.mubr.msk.bf16.gmra.mrb[4].mxu1 %vm257_vm0, %v9814_v41  ;;  %v8542_v41 = vld [vmem:[%s10745_s3 + $0x68] sm:$0xff]  }
 0x4d6   : > { %7790 = vmatprep.mubr.msk.bf16.mxu1 %vm257_vm0, %v9831_v25  ;;  %v8543_v25 = vld [vmem:[%s10745_s3 + $0x70] sm:$0xff]  }
 0x4dd   : > { %7791 = vmatmul.mubr.msk.bf16.gmra.mrb[8].mxu1 %vm257_vm0, %v9834_v24  ;;  %v4972_v24 = vld [vmem:[#allocation2 + $0x18a] sm:$0xff] }
 0x4de   : > { %7794 = vmatprep.mubr.msk.bf16.mxu1 %vm257_vm0, %v9845_v42  ;;  %v4971_v42 = vld [vmem:[#allocation2 + $0x182] sm:$0xff] }
 0x4e5   : > { %7795 = vmatmul.mubr.msk.bf16.gmra.mrb[12].mxu1 %vm257_vm0, %v9848_v22  ;;  %v10152_v22 = vpack.c.bf16 %v4972_v24, %v4971_v42  ;;  %v5573_v24 = vld [vmem:[#allocation2 + $0x121] sm:$0xff]  ;;  %v5574_v42 = vld [vmem:[#allocation2 + $0x129] sm:$0xff] }
 0x4e6   : > { %7798 = vmatprep.mubr.msk.bf16.mxu1 %vm257_vm0, %v9861_v17  ;;  %v8544_v17 = vld [vmem:[%s10745_s3 + $0x78] sm:$0xff]  }
 0x4ed   : > { %7799 = vmatmul.mubr.msk.bf16.gmra.mrb[16].mxu1 %vm257_vm0, %v9864_v56  ;;  %v8545_v56 = vld [vmem:[%s10745_s3 + $0x80] sm:$0xff]  }
 0x4ee   : > { %7802 = vmatprep.mubr.msk.bf16.mxu1 %vm257_vm0, %v9875_v34  ;;  %v5277_v34 = vld [vmem:[#allocation2 + $0x198] sm:$0xff] }
 0x4f5   : > { %7803 = vmatmul.mubr.msk.bf16.gmra.mrb[20].mxu1 %vm257_vm0, %v9878_v55  ;;  %v5553_v55 = vld [vmem:[#allocation2 + $0x31] sm:$0xff] }
 0x4f6   : > { %7806 = vmatprep.mubr.msk.bf16.mxu1 %vm257_vm0, %v9885_v51  ;;  %v5554_v51 = vld [vmem:[#allocation2 + $0x39] sm:$0xff] }
 0x4fd   : > { %7807 = vmatmul.mubr.msk.bf16.gmra.mrb[24].mxu1 %vm257_vm0, %v9887_v59  ;;  %v5278_v59 = vld [vmem:[#allocation2 + $0x1a0] sm:$0xff] }
 0x4fe   : > { %7810 = vmatprep.mubr.msk.bf16.mxu1 %vm257_vm0, %v9893_v19  ;;  %v5294_v19 = vpack.c.bf16 %v5278_v59, %v5277_v34  ;;  %v5575_v34 = vld [vmem:[#allocation2 + $0x139] sm:$0xff] }
 0x4ff   : > { %v5578_v59 = vld [vmem:[#allocation2 + $0x159] sm:$0xff] }
 0x505   : > { %7811 = vmatmul.mubr.msk.bf16.gmra.mrb[28].mxu1 %vm257_vm0, %v10112_v30 }
 0x506   : > { %7818 = vmatprep.mubr.msk.bf16.mxu1 %vm257_vm0, %v9969_v39  ;;  %v5563_v39 = vld [vmem:[#allocation2 + $0xa9] sm:$0xff] }
 0x507   : > { %v5590_v45 = vpack.c.bf16 %v5564_v54, %v5563_v39 }
 0x50d   : > { %7819 = vmatmul.mubr.msk.bf16.vlgmr.msra.gmra.mrb[0].mxu1 %vm257_vm0, %v9974_v37 }
 0x50e   : > { %7851 = vmatpush3.bf16.msra.mxu1 %v8541_v61  ;;  %7822 = vmatprep.mubr.msk.bf16.mxu1 %vm257_vm0, %v9984_v13  ;;  %v5570_v61 = vld [vmem:[#allocation2 + $0xf9] sm:$0xff] }
 0x50f   : > { %7852 = vmatprep.subr.bf16.mxu1 %v8542_v41  ;;  %v5593_v16 = vpack.c.bf16 %v5570_v61, %v5569_v23 }
 0x512   : > { %7853 = vmatpush3.bf16.msra.mxu1 %v8542_v41  ;;  %v5571_v41 = vld [vmem:[#allocation2 + $0x109] sm:$0xff] }
 0x513   : > { %7886 = vmatprep.subr.bf16.mxu1 %v8543_v25 }
 0x515   : > { %7823 = vmatmul.mubr.msk.bf16.gmra.mrb[4].mxu1 %vm257_vm0, %v9986_v29 }
 0x516   : > { %7826 = vmatprep.mubr.msk.bf16.mxu1 %vm257_vm0, %v9992_v62 }
 0x51d   : > { %7827 = vmatmul.mubr.msk.bf16.gmra.mrb[8].mxu1 %vm257_vm0, %v9994_v50 }
 0x51e   : > { %7830 = vmatprep.mubr.msk.bf16.mxu1 %vm257_vm0, %v10000_v48 }
 0x525   : > { %7831 = vmatmul.mubr.msk.bf16.gmra.mrb[12].mxu1 %vm257_vm0, %v10002_v14 }
 0x526   : > { %7834 = vmatprep.mubr.msk.bf16.mxu1 %vm257_vm0, %v10008_v32 }
 0x52d   : > { %7835 = vmatmul.mubr.msk.bf16.gmra.mrb[16].mxu1 %vm257_vm0, %v10010_v1 }
 0x52e   : > { %7838 = vmatprep.mubr.msk.bf16.mxu1 %vm257_vm0, %v10016_v18 }
 0x535   : > { %7839 = vmatmul.mubr.msk.bf16.gmra.mrb[20].mxu1 %vm257_vm0, %v10018_v2 }
 0x536   : > { %7842 = vmatprep.mubr.msk.bf16.mxu1 %vm257_vm0, %v10024_v0 }
 0x53d   : > { %7843 = vmatmul.mubr.msk.bf16.gmra.mrb[24].mxu1 %vm257_vm0, %v10026_v63 }
 0x53e   : > { %7846 = vmatprep.mubr.msk.bf16.mxu1 %vm257_vm0, %v10032_v36 }
 0x545   : > { %7847 = vmatmul.mubr.msk.bf16.gmra.mrb[28].mxu1 %vm257_vm0, %v10152_v22 }
 0x546   : > { %7854 = vmatprep.mubr.msk.bf16.mxu1 %vm257_vm0, %v9903_v33  ;;  %v5585_v33 = vpack.c.bf16 %v5554_v51, %v5553_v55  ;;  %v5576_v55 = vld [vmem:[#allocation2 + $0x141] sm:$0xff]  ;;  %v5577_v51 = vld [vmem:[#allocation2 + $0x151] sm:$0xff] }
 0x54d   : > { %7855 = vmatmul.mubr.msk.bf16.vlgmr.msra.gmra.mrb[0].mxu1 %vm257_vm0, %v9915_v46  ;;  %v5555_v46 = vld [vmem:[#allocation2 + $0x49] sm:$0xff] }
 0x54e   : > { %7887 = vmatpush3.bf16.msra.mxu1 %v8543_v25  ;;  %7858 = vmatprep.mubr.msk.bf16.mxu1 %vm257_vm0, %v9918_v43  ;;  %v5556_v43 = vld [vmem:[#allocation2 + $0x51] sm:$0xff] }
 0x54f   : > { %7888 = vmatprep.subr.bf16.mxu1 %v8544_v17  ;;  %v5572_v25 = vld [vmem:[#allocation2 + $0x111] sm:$0xff] }
 0x552   : > { %7889 = vmatpush3.bf16.msra.mxu1 %v8544_v17  ;;  %v5594_v17 = vpack.c.bf16 %v5572_v25, %v5571_v41 }
 0x553   : > { %7922 = vmatprep.subr.bf16.mxu1 %v8545_v56 }
 0x555   : > { %7859 = vmatmul.mubr.msk.bf16.gmra.mrb[4].mxu1 %vm257_vm0, %v9924_v57  ;;  %v5557_v57 = vld [vmem:[#allocation2 + $0x61] sm:$0xff] }
 0x556   : > { %7862 = vmatprep.mubr.msk.bf16.mxu1 %vm257_vm0, %v9926_v28  ;;  %v5558_v28 = vld [vmem:[#allocation2 + $0x69] sm:$0xff] }
 0x55d   : > { %7863 = vmatmul.mubr.msk.bf16.gmra.mrb[8].mxu1 %vm257_vm0, %v9932_v44  ;;  %v5586_v44 = vpack.c.bf16 %v5556_v43, %v5555_v46  ;;  %v5579_v46 = vld [vmem:[#allocation2 + $0x169] sm:$0xff]  ;;  %v5580_v43 = vld [vmem:[#allocation2 + $0x171] sm:$0xff] }
 0x55e   : > { %7866 = vmatprep.mubr.msk.bf16.mxu1 %vm257_vm0, %v9934_v26  ;;  %v8546_v26 = vld [vmem:[%s10745_s3 + $0x88] sm:$0xff]  }
 0x565   : > { %7867 = vmatmul.mubr.msk.bf16.gmra.mrb[12].mxu1 %vm257_vm0, %v9940_v58  ;;  %v5587_v58 = vpack.c.bf16 %v5558_v28, %v5557_v57  ;;  %v5598_v57 = vpack.c.bf16 %v5580_v43, %v5579_v46  ;;  %v5583_v28 = vld [vmem:[#allocation2 + $0x199] sm:$0xff] }
 0x566   : > { %7870 = vmatprep.mubr.msk.bf16.mxu1 %vm257_vm0, %v9942_v35  ;;  %v5559_v35 = vld [vmem:[#allocation2 + $0x79] sm:$0xff] }
 0x56d   : > { %7871 = vmatmul.mubr.msk.bf16.gmra.mrb[16].mxu1 %vm257_vm0, %v9948_v27  ;;  %v5560_v27 = vld [vmem:[#allocation2 + $0x81] sm:$0xff] }
 0x56e   : > { %7874 = vmatprep.mubr.msk.bf16.mxu1 %vm257_vm0, %v9950_v53  ;;  %v5561_v53 = vld [vmem:[#allocation2 + $0x91] sm:$0xff] }
 0x575   : > { %7875 = vmatmul.mubr.msk.bf16.gmra.mrb[20].mxu1 %vm257_vm0, %v9956_v31  ;;  %v5562_v31 = vld [vmem:[#allocation2 + $0x99] sm:$0xff] }
 0x576   : > { %7878 = vmatprep.mubr.msk.bf16.mxu1 %vm257_vm0, %v9958_v38  ;;  %v5588_v38 = vpack.c.bf16 %v5560_v27, %v5559_v35 }
 0x57d   : > { %7879 = vmatmul.mubr.msk.bf16.gmra.mrb[24].mxu1 %vm257_vm0, %v9964_v40  ;;  %v5589_v40 = vpack.c.bf16 %v5562_v31, %v5561_v53 }
 0x57e   : > { %7882 = vmatprep.mubr.msk.bf16.mxu1 %vm257_vm0, %v10072_v20  ;;  %v5568_v20 = vld [vmem:[#allocation2 + $0xe1] sm:$0xff] }
 0x57f   : > { %v5592_v21 = vpack.c.bf16 %v5568_v20, %v5567_v15 }
 0x585   : > { %7883 = vmatmul.mubr.msk.bf16.gmra.mrb[28].mxu1 %vm257_vm0, %v5294_v19  ;;  %v5596_v19 = vpack.c.bf16 %v5576_v55, %v5575_v34 }
 0x586   : > { %7890 = vmatprep.mubr.msk.bf16.mxu1 %vm257_vm0, %v5585_v33  ;;  %v5597_v33 = vpack.c.bf16 %v5578_v59, %v5577_v51 }
 0x58d   : > { %7891 = vmatmul.mubr.msk.bf16.vlgmr.msra.gmra.mrb[0].mxu1 %vm257_vm0, %v5586_v44  ;;  %v5584_v44 = vld [vmem:[#allocation2 + $0x1a1] sm:$0xff] }
 0x58e   : > { %7923 = vmatpush3.bf16.msra.mxu1 %v8545_v56  ;;  %7894 = vmatprep.mubr.msk.bf16.mxu1 %vm257_vm0, %v5587_v58  ;;  %v5595_v56 = vpack.c.bf16 %v5574_v42, %v5573_v24 }
 0x58f   : > { %7924 = vmatprep.subr.bf16.mxu1 %v8546_v26 }
 0x592   : > { %7925 = vmatpush3.bf16.msra.mxu1 %v8546_v26  ;;  %v5600_v26 = vpack.c.bf16 %v5584_v44, %v5583_v28 }
 0x595   : > { %7895 = vmatmul.mubr.msk.bf16.gmra.mrb[4].mxu1 %vm257_vm0, %v5588_v38 }
 0x596   : > { %7898 = vmatprep.mubr.msk.bf16.mxu1 %vm257_vm0, %v5589_v40 }
 0x59d   : > { %7899 = vmatmul.mubr.msk.bf16.gmra.mrb[8].mxu1 %vm257_vm0, %v5590_v45 }
 0x59e   : > { %7902 = vmatprep.mubr.msk.bf16.mxu1 %vm257_vm0, %v5591_v60 }
 0x5a5   : > { %7903 = vmatmul.mubr.msk.bf16.gmra.mrb[12].mxu1 %vm257_vm0, %v5592_v21 }
 0x5a6   : > { %7906 = vmatprep.mubr.msk.bf16.mxu1 %vm257_vm0, %v5593_v16 }
 0x5ad   : > { %7907 = vmatmul.mubr.msk.bf16.gmra.mrb[16].mxu1 %vm257_vm0, %v5594_v17 }
 0x5ae   : > { %7910 = vmatprep.mubr.msk.bf16.mxu1 %vm257_vm0, %v5595_v56 }
 0x5b5   : > { %7911 = vmatmul.mubr.msk.bf16.gmra.mrb[20].mxu1 %vm257_vm0, %v5596_v19 }
 0x5b6   : > { %7914 = vmatprep.mubr.msk.bf16.mxu1 %vm257_vm0, %v5597_v33 }
 0x5bd   : > { %7915 = vmatmul.mubr.msk.bf16.gmra.mrb[24].mxu1 %vm257_vm0, %v5598_v57 }
 0x5be   : > { %7918 = vmatprep.mubr.msk.bf16.mxu1 %vm257_vm0, %v10112_v30 }
 0x5c5   : > { %7919 = vmatmul.mubr.msk.bf16.gmra.mrb[28].mxu1 %vm257_vm0, %v5600_v26 }
 0x5c6   : > { %7926 = vmatprep.mubr.msk.bf16.mxu1 %vm257_vm0, %v9974_v37  ;;  %v5890_v37 = vld [vmem:[#allocation2 + $0x1a2] sm:$0xff] }
 0x5cd   : > { %7927 = vmatmul.mubr.msk.bf16.vlgmr.msra.gmra.mrb[0].mxu1 %vm257_vm0, %v9984_v13  ;;  %v5889_v13 = vld [vmem:[#allocation2 + $0x19a] sm:$0xff] }
 0x5ce   : > { %7930 = vmatprep.mubr.msk.bf16.mxu1 %vm257_vm0, %v9986_v29  ;;  %v5906_v29 = vpack.c.bf16 %v5890_v37, %v5889_v13 }
 0x5d5   : > { %7931 = vmatmul.mubr.msk.bf16.gmra.mrb[4].mxu1 %vm257_vm0, %v9992_v62  ;;  %v10247_v62 = vld [vmem:[%s10746_s4] ss:$0 sm:$0xff] }
 0x5d6   : > { %7934 = vmatprep.mubr.msk.bf16.mxu1 %vm257_vm0, %v9994_v50 }
 0x5dd   : > { %7935 = vmatmul.mubr.msk.bf16.gmra.mrb[8].mxu1 %vm257_vm0, %v10000_v48 }
 0x5de   : > { %7938 = vmatprep.mubr.msk.bf16.mxu1 %vm257_vm0, %v10002_v14 }
 0x5e5   : > { %7939 = vmatmul.mubr.msk.bf16.gmra.mrb[12].mxu1 %vm257_vm0, %v10008_v32 }
 0x5e6   : > { %7942 = vmatprep.mubr.msk.bf16.mxu1 %vm257_vm0, %v10010_v1 }
 0x5ed   : > { %7943 = vmatmul.mubr.msk.bf16.gmra.mrb[16].mxu1 %vm257_vm0, %v10016_v18 }
 0x5ee   : > { %7946 = vmatprep.mubr.msk.bf16.mxu1 %vm257_vm0, %v10018_v2 }
 0x5f5   : > { %7947 = vmatmul.mubr.msk.bf16.gmra.mrb[20].mxu1 %vm257_vm0, %v10024_v0 }
 0x5f6   : > { %7950 = vmatprep.mubr.msk.bf16.mxu1 %vm257_vm0, %v10026_v63 }
 0x5fd   : > { %7951 = vmatmul.mubr.msk.bf16.gmra.mrb[24].mxu1 %vm257_vm0, %v10032_v36 }
 0x5fe   : > { %7954 = vmatprep.mubr.msk.bf16.mxu1 %vm257_vm0, %v10152_v22 }
 0x605   : > { %7955 = vmatmul.mubr.msk.bf16.gmra.mrb[28].mxu1 %vm257_vm0, %v5906_v29 }
 0x6a0   : > { %v7928_v50 = vpop.f32.mrb[0].mxu1 }
 0x6a1   : > { %v6006_v48 = vpop.f32.mrb[1].mxu1  ;;  %v10253_v18 = vadd.f32 %v7928_v50, %v10247_v62 }
 0x6a2   : > { %v10250_v14 = vadd.f32 %v10247_v62, %v6006_v48  ;;  %v7929_v32 = vpop.f32.mrb[2].mxu1 }
 0x6a3   : > { %v6009_v1 = vpop.f32.mrb[3].mxu1  ;;  %v10261_v63 = vadd.f32 %v7929_v32, %v10247_v62  ;;  %v6207_v22 = vsel %vm257_vm0, %v10253_v18, 0.0 }
 0x6a4   : > { %v10256_v2 = vadd.f32 %v10247_v62, %v6009_v1  ;;  %v6204_v0 = vsel %vm257_vm0, %v10250_v14, 0.0 }
 0x6a5   : > { %v6209_v53 = vsel %vm257_vm0, %v10261_v63, 0.0 }
 0x6a6   : > { %v6205_v36 = vsel %vm257_vm0, %v10256_v2, 0.0 }
 0x6a7   : > { %v6206_v30 = vadd.f32 %v6205_v36, %v6204_v0 }
 0x6a8   : > { %v7932_v58 = vpop.f32.mrb[4].mxu1 }
 0x6a9   : > { %v6208_v35 = vadd.f32 %v6207_v22, %v6206_v30  ;;  %v6022_v27 = vpop.f32.mrb[5].mxu1  ;;  %v10273_v54 = vadd.f32 %v7932_v58, %v10247_v62 }
 0x6aa   : > { %v10270_v31 = vadd.f32 %v10247_v62, %v6022_v27  ;;  %v7933_v38 = vpop.f32.mrb[6].mxu1 }
 0x6ab   : > { %v6210_v40 = vadd.f32 %v6209_v53, %v6208_v35  ;;  %v6025_v39 = vpop.f32.mrb[7].mxu1  ;;  %v10281_v60 = vadd.f32 %v7933_v38, %v10247_v62  ;;  %v6215_v23 = vsel %vm257_vm0, %v10273_v54, 0.0 }
 0x6ac   : > { %v6211_v52 = vsel %vm257_vm0, %v10270_v31, 0.0  ;;  %v10278_v47 = vadd.f32 %v10247_v62, %v6025_v39 }
 0x6ad   : > { %v6212_v45 = vadd.f32 %v6211_v52, %v6210_v40  ;;  %v6217_v41 = vsel %vm257_vm0, %v10281_v60, 0.0 }
 0x6ae   : > { %v6213_v15 = vsel %vm257_vm0, %v10278_v47, 0.0 }
 0x6af   : > { %v6214_v20 = vadd.f32 %v6213_v15, %v6212_v45 }
 0x6b0   : > { %v7936_v61 = vpop.f32.mrb[8].mxu1 }
 0x6b1   : > { %v6216_v21 = vadd.f32 %v6215_v23, %v6214_v20  ;;  %v6038_v16 = vpop.f32.mrb[9].mxu1  ;;  %v10293_v56 = vadd.f32 %v7936_v61, %v10247_v62 }
 0x6b2   : > { %v10290_v25 = vadd.f32 %v10247_v62, %v6038_v16  ;;  %v7937_v24 = vpop.f32.mrb[10].mxu1 }
 0x6b3   : > { %v6218_v42 = vadd.f32 %v6217_v41, %v6216_v21  ;;  %v6041_v17 = vpop.f32.mrb[11].mxu1  ;;  %v10301_v59 = vadd.f32 %v7937_v24, %v10247_v62  ;;  %v6223_v46 = vsel %vm257_vm0, %v10293_v56, 0.0 }
 0x6b4   : > { %v6219_v34 = vsel %vm257_vm0, %v10290_v25, 0.0  ;;  %v10298_v55 = vadd.f32 %v10247_v62, %v6041_v17 }
 0x6b5   : > { %v6220_v51 = vadd.f32 %v6219_v34, %v6218_v42  ;;  %v6225_v44 = vsel %vm257_vm0, %v10301_v59, 0.0 }
 0x6b6   : > { %v6221_v19 = vsel %vm257_vm0, %v10298_v55, 0.0 }
 0x6b7   : > { %v6222_v33 = vadd.f32 %v6221_v19, %v6220_v51 }
 0x6b8   : > { %v7940_v43 = vpop.f32.mrb[12].mxu1 }
 0x6b9   : > { %v6224_v57 = vadd.f32 %v6223_v46, %v6222_v33  ;;  %v6054_v28 = vpop.f32.mrb[13].mxu1  ;;  %v10313_v50 = vadd.f32 %v7940_v43, %v10247_v62 }
 0x6ba   : > { %v10310_v26 = vadd.f32 %v10247_v62, %v6054_v28  ;;  %v7941_v37 = vpop.f32.mrb[14].mxu1 }
 0x6bb   : > { %v6226_v13 = vadd.f32 %v6225_v44, %v6224_v57  ;;  %v6057_v29 = vpop.f32.mrb[15].mxu1  ;;  %v10321_v0 = vadd.f32 %v7941_v37, %v10247_v62  ;;  %v6231_v22 = vsel %vm257_vm0, %v10313_v50, 0.0 }
 0x6bc   : > { %v6227_v48 = vsel %vm257_vm0, %v10310_v26, 0.0  ;;  %v10318_v32 = vadd.f32 %v10247_v62, %v6057_v29 }
 0x6bd   : > { %v6228_v1 = vadd.f32 %v6227_v48, %v6226_v13  ;;  %v6233_v53 = vsel %vm257_vm0, %v10321_v0, 0.0 }
 0x6be   : > { %v6229_v36 = vsel %vm257_vm0, %v10318_v32, 0.0 }
 0x6bf   : > { %v6230_v30 = vadd.f32 %v6229_v36, %v6228_v1 }
 0x6c0   : > { %v7944_v58 = vpop.f32.mrb[16].mxu1 }
 0x6c1   : > { %v6232_v35 = vadd.f32 %v6231_v22, %v6230_v30  ;;  %v6070_v27 = vpop.f32.mrb[17].mxu1  ;;  %v10333_v45 = vadd.f32 %v7944_v58, %v10247_v62 }
 0x6c2   : > { %v10330_v38 = vadd.f32 %v10247_v62, %v6070_v27  ;;  %v7945_v40 = vpop.f32.mrb[18].mxu1 }
 0x6c3   : > { %v6234_v39 = vadd.f32 %v6233_v53, %v6232_v35  ;;  %v6073_v52 = vpop.f32.mrb[19].mxu1  ;;  %v10341_v61 = vadd.f32 %v7945_v40, %v10247_v62  ;;  %v6239_v41 = vsel %vm257_vm0, %v10333_v45, 0.0 }
 0x6c4   : > { %v6235_v15 = vsel %vm257_vm0, %v10330_v38, 0.0  ;;  %v10338_v20 = vadd.f32 %v10247_v62, %v6073_v52 }
 0x6c5   : > { %v6236_v23 = vadd.f32 %v6235_v15, %v6234_v39  ;;  %v6241_v34 = vsel %vm257_vm0, %v10341_v61, 0.0 }
 0x6c6   : > { %v6237_v21 = vsel %vm257_vm0, %v10338_v20, 0.0 }
 0x6c7   : > { %v6238_v16 = vadd.f32 %v6237_v21, %v6236_v23 }
 0x6c8   : > { %v7948_v24 = vpop.f32.mrb[20].mxu1 }
 0x6c9   : > { %v6240_v42 = vadd.f32 %v6239_v41, %v6238_v16  ;;  %v6086_v17 = vpop.f32.mrb[21].mxu1  ;;  %v6194_v43 = vadd.f32 %v7948_v24, %v10247_v62 }
 0x6ca   : > { %v10350_v51 = vadd.f32 %v10247_v62, %v6086_v17  ;;  %v7949_v19 = vpop.f32.mrb[22].mxu1 }
 0x6cb   : > { %v6242_v33 = vadd.f32 %v6241_v34, %v6240_v42  ;;  %v6089_v46 = vpop.f32.mrb[23].mxu1  ;;  %v6195_v37 = vadd.f32 %v7949_v19, %v10247_v62  ;;  %v6247_v48 = vsel %vm257_vm0, %v6194_v43, 0.0 }
 0x6cc   : > { %v6243_v57 = vsel %vm257_vm0, %v10350_v51, 0.0  ;;  %v6193_v28 = vadd.f32 %v10247_v62, %v6089_v46 }
 0x6cd   : > { %v6244_v44 = vadd.f32 %v6243_v57, %v6242_v33  ;;  %v6249_v22 = vsel %vm257_vm0, %v6195_v37, 0.0 }
 0x6ce   : > { %v6245_v13 = vsel %vm257_vm0, %v6193_v28, 0.0 }
 0x6cf   : > { %v6246_v29 = vadd.f32 %v6245_v13, %v6244_v44 }
 0x6d0   : > { %v7952_v1 = vpop.f32.mrb[24].mxu1 }
 0x6d1   : > { %v6248_v36 = vadd.f32 %v6247_v48, %v6246_v29  ;;  %v6102_v30 = vpop.f32.mrb[25].mxu1  ;;  %v6198_v40 = vadd.f32 %v7952_v1, %v10247_v62 }
 0x6d2   : > { %v6196_v58 = vadd.f32 %v10247_v62, %v6102_v30  ;;  %v7953_v35 = vpop.f32.mrb[26].mxu1 }
 0x6d3   : > { %v6250_v27 = vadd.f32 %v6249_v22, %v6248_v36  ;;  %v6105_v53 = vpop.f32.mrb[27].mxu1  ;;  %v6199_v23 = vadd.f32 %v7953_v35, %v10247_v62  ;;  %v6255_v41 = vsel %vm257_vm0, %v6198_v40, 0.0 }
 0x6d4   : > { %v6251_v39 = vsel %vm257_vm0, %v6196_v58, 0.0  ;;  %v6197_v52 = vadd.f32 %v10247_v62, %v6105_v53 }
 0x6d5   : > { %v6252_v15 = vadd.f32 %v6251_v39, %v6250_v27  ;;  %v6257_v34 = vsel %vm257_vm0, %v6199_v23, 0.0 }
 0x6d6   : > { %v6253_v21 = vsel %vm257_vm0, %v6197_v52, 0.0 }
 0x6d7   : > { %v6254_v16 = vadd.f32 %v6253_v21, %v6252_v15 }
 0x6d8   : > { %v7956_v24 = vpop.f32.mrb[28].mxu1 }
 0x6d9   : > { %v6256_v42 = vadd.f32 %v6255_v41, %v6254_v16  ;;  %v6118_v17 = vpop.f32.mrb[29].mxu1  ;;  %v6202_v44 = vadd.f32 %v7956_v24, %v10247_v62 }
 0x6da   : > { %v6200_v19 = vadd.f32 %v10247_v62, %v6118_v17  ;;  %v7957_v33 = vpop.f32.mrb[30].mxu1 }
 0x6db   : > { %v6258_v46 = vadd.f32 %v6257_v34, %v6256_v42  ;;  %v6121_v57 = vpop.f32.mrb[31].mxu1  ;;  %v6203_v1 = vadd.f32 %v7957_v33, %v10247_v62  ;;  %v6263_v22 = vsel %vm257_vm0, %v6202_v44, 0.0 }
 0x6dc   : > { %v6259_v13 = vsel %vm257_vm0, %v6200_v19, 0.0  ;;  %v6201_v29 = vadd.f32 %v10247_v62, %v6121_v57 }
 0x6dd   : > { %v6260_v48 = vadd.f32 %v6259_v13, %v6258_v46  ;;  %v6265_v27 = vsel %vm257_vm0, %v6203_v1, 0.0 }
 0x6de   : > { %v6261_v36 = vsel %vm257_vm0, %v6201_v29, 0.0 }
 0x6df   : > { %v6262_v30 = vadd.f32 %v6261_v36, %v6260_v48 }
 0x6e1   : > { %v6264_v35 = vadd.f32 %v6263_v22, %v6262_v30 }
 0x6e3   : > { %v6266_v53 = vadd.f32 %v6265_v27, %v6264_v35 }
 0x6e5   : > { %v6267_v39 = vrot.slane %v6266_v53, 4 }
 0x6e7   : > { %v6268_v15 = vadd.f32 %v6267_v39, %v6266_v53 }
 0x6e9   : > { %v6269_v21 = vrot.slane %v6268_v15, 2 }
 0x6eb   : > { %v6270_v16 = vadd.f32 %v6269_v21, %v6268_v15 }
 0x6ed   : > { %v6271_v41 = vrot.slane %v6270_v16, 1 }
 0x6ef   : > { %v6272_v24 = vadd.f32 %v6271_v41, %v6270_v16 }
 0x6f1   : > { %v6273_v42 = vmul.f32 0.00390625, %v6272_v24 }
 0x6f3   : > { %v10377_v17 = vsub.f32 %v10298_v55, %v6273_v42  ;;  %v10380_v62 = vsub.f32 %v10301_v59, %v6273_v42  ;;  %v10383_v34 = vsub.f32 %v10310_v26, %v6273_v42  ;;  %v10386_v33 = vsub.f32 %v10318_v32, %v6273_v42 }
 0x6f4   : > { %v10389_v46 = vsub.f32 %v10313_v50, %v6273_v42  ;;  %v10392_v57 = vsub.f32 %v10321_v0, %v6273_v42  ;;  %v10395_v13 = vsub.f32 %v10330_v38, %v6273_v42  ;;  %v10398_v55 = vsub.f32 %v10338_v20, %v6273_v42 }
 0x6f5   : > { %v10401_v59 = vsub.f32 %v10333_v45, %v6273_v42  ;;  %v10404_v26 = vsub.f32 %v10341_v61, %v6273_v42  ;;  %v10407_v32 = vsub.f32 %v10350_v51, %v6273_v42  ;;  %v10409_v50 = vsub.f32 %v6193_v28, %v6273_v42 }
 0x6f6   : > { %v10411_v48 = vsub.f32 %v6194_v43, %v6273_v42  ;;  %v10413_v0 = vsub.f32 %v6195_v37, %v6273_v42  ;;  %v10415_v38 = vsub.f32 %v6196_v58, %v6273_v42  ;;  %v10417_v36 = vsub.f32 %v6197_v52, %v6273_v42 }
 0x6f7   : > { %v10419_v20 = vsub.f32 %v6198_v40, %v6273_v42  ;;  %v10421_v45 = vsub.f32 %v6199_v23, %v6273_v42  ;;  %v10423_v30 = vsub.f32 %v6200_v19, %v6273_v42  ;;  %v10425_v61 = vsub.f32 %v6201_v29, %v6273_v42 }
 0x6f8   : > { %v10427_v51 = vsub.f32 %v6202_v44, %v6273_v42  ;;  %v10429_v28 = vsub.f32 %v6203_v1, %v6273_v42  ;;  %v10432_v43 = vsub.f32 %v10250_v14, %v6273_v42  ;;  %v10435_v37 = vsub.f32 %v10256_v2, %v6273_v42 }
 0x6f9   : > { %v10438_v58 = vsub.f32 %v10253_v18, %v6273_v42  ;;  %v10441_v40 = vsub.f32 %v10261_v63, %v6273_v42  ;;  %v10448_v19 = vsub.f32 %v10270_v31, %v6273_v42  ;;  %v10453_v2 = vsub.f32 %v10278_v47, %v6273_v42 }
 0x6fa   : > { %v6306_v52 = vmul.f32 %v10432_v43, %v10432_v43  ;;  %v6307_v23 = vmul.f32 %v10435_v37, %v10435_v37  ;;  %v10460_v1 = vsub.f32 %v10273_v54, %v6273_v42  ;;  %v10466_v47 = vsub.f32 %v10281_v60, %v6273_v42 }
 0x6fb   : > { %v6308_v14 = vmul.f32 %v10438_v58, %v10438_v58  ;;  %v6309_v18 = vmul.f32 %v10441_v40, %v10441_v40  ;;  %v6310_v31 = vmul.f32 %v10448_v19, %v10448_v19  ;;  %v6311_v27 = vmul.f32 %v10453_v2, %v10453_v2 }
 0x6fc   : > { %v6338_v63 = vsel %vm257_vm0, %v6306_v52, 0.0  ;;  %v6339_v44 = vsel %vm257_vm0, %v6307_v23, 0.0  ;;  %v10472_v15 = vsub.f32 %v10290_v25, %v6273_v42  ;;  %v6312_v54 = vmul.f32 %v10460_v1, %v10460_v1 }
 0x6fd   : > { %v6340_v29 = vadd.f32 %v6339_v44, %v6338_v63  ;;  %v6341_v22 = vsel %vm257_vm0, %v6308_v14, 0.0  ;;  %v6343_v53 = vsel %vm257_vm0, %v6309_v18, 0.0  ;;  %v6345_v21 = vsel %vm257_vm0, %v6310_v31, 0.0 }
 0x6fe   : > { %v6313_v41 = vmul.f32 %v10466_v47, %v10466_v47  ;;  %v6347_v60 = vsel %vm257_vm0, %v6311_v27, 0.0  ;;  %v10481_v52 = vsub.f32 %v10293_v56, %v6273_v42  ;;  %v6314_v23 = vmul.f32 %v10472_v15, %v10472_v15 }
 0x6ff   : > { %v6342_v35 = vadd.f32 %v6341_v22, %v6340_v29  ;;  %v6349_v25 = vsel %vm257_vm0, %v6312_v54, 0.0  ;;  %v6315_v18 = vmul.f32 %v10377_v17, %v10377_v17  ;;  %v6317_v56 = vmul.f32 %v10380_v62, %v10380_v62 }
 0x700   : > { %v6351_v63 = vsel %vm257_vm0, %v6313_v41, 0.0  ;;  %v6316_v29 = vmul.f32 %v10481_v52, %v10481_v52  ;;  %v6353_v31 = vsel %vm257_vm0, %v6314_v23, 0.0  ;;  %v6318_v27 = vmul.f32 %v10383_v34, %v10383_v34 }
 0x701   : > { %v6344_v39 = vadd.f32 %v6343_v53, %v6342_v35  ;;  %v6355_v42 = vsel %vm257_vm0, %v6315_v18, 0.0  ;;  %v6319_v54 = vmul.f32 %v10386_v33, %v10386_v33  ;;  %v6320_v41 = vmul.f32 %v10389_v46, %v10389_v46 }
 0x702   : > { %v6357_v53 = vsel %vm257_vm0, %v6316_v29, 0.0  ;;  %v6321_v23 = vmul.f32 %v10392_v57, %v10392_v57  ;;  %v6322_v18 = vmul.f32 %v10395_v13, %v10395_v13  ;;  %v6323_v29 = vmul.f32 %v10398_v55, %v10398_v55 }
 0x703   : > { %v6346_v16 = vadd.f32 %v6345_v21, %v6344_v39  ;;  %v6359_v21 = vsel %vm257_vm0, %v6317_v56, 0.0  ;;  %v6324_v56 = vmul.f32 %v10401_v59, %v10401_v59 }
 0x705   : > { %v6348_v24 = vadd.f32 %v6347_v60, %v6346_v16  ;;  %v6361_v60 = vsel %vm257_vm0, %v6318_v27, 0.0  ;;  %v6325_v27 = vmul.f32 %v10404_v26, %v10404_v26 }
 0x707   : > { %v6350_v14 = vadd.f32 %v6349_v25, %v6348_v24  ;;  %v6363_v25 = vsel %vm257_vm0, %v6319_v54, 0.0  ;;  %v6326_v54 = vmul.f32 %v10407_v32, %v10407_v32 }
 0x709   : > { %v6352_v44 = vadd.f32 %v6351_v63, %v6350_v14  ;;  %v6365_v63 = vsel %vm257_vm0, %v6320_v41, 0.0  ;;  %v6327_v41 = vmul.f32 %v10409_v50, %v10409_v50 }
 0x70b   : > { %v6354_v22 = vadd.f32 %v6353_v31, %v6352_v44  ;;  %v6367_v31 = vsel %vm257_vm0, %v6321_v23, 0.0  ;;  %v6328_v23 = vmul.f32 %v10411_v48, %v10411_v48 }
 0x70d   : > { %v6356_v35 = vadd.f32 %v6355_v42, %v6354_v22  ;;  %v6369_v42 = vsel %vm257_vm0, %v6322_v18, 0.0  ;;  %v6329_v18 = vmul.f32 %v10413_v0, %v10413_v0 }
 0x70f   : > { %v6358_v39 = vadd.f32 %v6357_v53, %v6356_v35  ;;  %v6371_v53 = vsel %vm257_vm0, %v6323_v29, 0.0  ;;  %v6330_v29 = vmul.f32 %v10415_v38, %v10415_v38 }
 0x711   : > { %v6360_v16 = vadd.f32 %v6359_v21, %v6358_v39  ;;  %v6373_v21 = vsel %vm257_vm0, %v6324_v56, 0.0  ;;  %v6331_v56 = vmul.f32 %v10417_v36, %v10417_v36 }
 0x713   : > { %v6362_v24 = vadd.f32 %v6361_v60, %v6360_v16  ;;  %v6375_v60 = vsel %vm257_vm0, %v6325_v27, 0.0  ;;  %v6332_v27 = vmul.f32 %v10419_v20, %v10419_v20 }
 0x715   : > { %v6364_v14 = vadd.f32 %v6363_v25, %v6362_v24  ;;  %v6377_v25 = vsel %vm257_vm0, %v6326_v54, 0.0  ;;  %v6333_v54 = vmul.f32 %v10421_v45, %v10421_v45 }
 0x717   : > { %v6366_v44 = vadd.f32 %v6365_v63, %v6364_v14  ;;  %v6379_v63 = vsel %vm257_vm0, %v6327_v41, 0.0  ;;  %v6334_v41 = vmul.f32 %v10423_v30, %v10423_v30 }
 0x719   : > { %v6368_v22 = vadd.f32 %v6367_v31, %v6366_v44  ;;  %v6381_v31 = vsel %vm257_vm0, %v6328_v23, 0.0  ;;  %v6335_v23 = vmul.f32 %v10425_v61, %v10425_v61 }
 0x71b   : > { %v6370_v35 = vadd.f32 %v6369_v42, %v6368_v22  ;;  %v6383_v42 = vsel %vm257_vm0, %v6329_v18, 0.0  ;;  %v6336_v18 = vmul.f32 %v10427_v51, %v10427_v51 }
 0x71d   : > { %v6372_v39 = vadd.f32 %v6371_v53, %v6370_v35  ;;  %v6385_v53 = vsel %vm257_vm0, %v6330_v29, 0.0  ;;  %v6337_v29 = vmul.f32 %v10429_v28, %v10429_v28 }
 0x71f   : > { %v6374_v16 = vadd.f32 %v6373_v21, %v6372_v39  ;;  %v6387_v21 = vsel %vm257_vm0, %v6331_v56, 0.0  ;;  %v6397_v56 = vsel %vm257_vm0, %v6336_v18, 0.0 }
 0x721   : > { %v6376_v24 = vadd.f32 %v6375_v60, %v6374_v16  ;;  %v6389_v60 = vsel %vm257_vm0, %v6332_v27, 0.0 }
 0x723   : > { %v6378_v14 = vadd.f32 %v6377_v25, %v6376_v24  ;;  %v6391_v25 = vsel %vm257_vm0, %v6333_v54, 0.0 }
 0x725   : > { %v6380_v44 = vadd.f32 %v6379_v63, %v6378_v14  ;;  %v6393_v63 = vsel %vm257_vm0, %v6334_v41, 0.0 }
 0x727   : > { %v6382_v22 = vadd.f32 %v6381_v31, %v6380_v44  ;;  %v6395_v31 = vsel %vm257_vm0, %v6335_v23, 0.0 }
 0x729   : > { %v6384_v35 = vadd.f32 %v6383_v42, %v6382_v22 }
 0x72b   : > { %v6386_v39 = vadd.f32 %v6385_v53, %v6384_v35  ;;  %v6399_v35 = vsel %vm257_vm0, %v6337_v29, 0.0 }
 0x72d   : > { %v6388_v16 = vadd.f32 %v6387_v21, %v6386_v39 }
 0x72f   : > { %v6390_v24 = vadd.f32 %v6389_v60, %v6388_v16 }
 0x731   : > { %v6392_v14 = vadd.f32 %v6391_v25, %v6390_v24 }
 0x733   : > { %v6394_v44 = vadd.f32 %v6393_v63, %v6392_v14 }
 0x735   : > { %v6396_v22 = vadd.f32 %v6395_v31, %v6394_v44 }
 0x737   : > { %v6398_v42 = vadd.f32 %v6397_v56, %v6396_v22 }
 0x739   : > { %v6400_v27 = vadd.f32 %v6399_v35, %v6398_v42  ;;  %v10797_v35 = vld [vmem:[#allocation11_spill] sm:$0xff] }
 0x73b   : > { %v6401_v53 = vrot.slane %v6400_v27, 4 }
 0x73d   : > { %v6402_v39 = vadd.f32 %v6401_v53, %v6400_v27  ;;  %v10798_v53 = vld [vmem:[#allocation12_spill] sm:$0xff] }
 0x73f   : > { %v6403_v54 = vrot.slane %v6402_v39, 2 }
 0x741   : > { %v6404_v21 = vadd.f32 %v6403_v54, %v6402_v39  ;;  %v10799_v54 = vld [vmem:[#allocation13_spill] sm:$0xff] }
 0x743   : > { %v6405_v16 = vrot.slane %v6404_v21, 1 }
 0x745   : > { %v6406_v41 = vadd.f32 %v6405_v16, %v6404_v21  ;;  %v10800_v16 = vld [vmem:[#allocation14_spill] sm:$0xff] }
 0x747   : > { %v6407_v60 = vmul.f32 0.00390625, %v6406_v41 }
 0x749   : > { %v6408_v24 = vadd.f32 1e-05, %v6407_v60  ;;  %v10801_v60 = vld [vmem:[#allocation15_spill] sm:$0xff] }
 0x74b   : > { %8549 = vrsqrt.f32 %v6408_v24 }
 0x755   : > { %v8550_v23 = vpop.eup %8549 }
 0x756   : > { %v6439_v25 = vmul.f32 %v8550_v23, %v10425_v61  ;;  %v6410_v14 = vmul.f32 %v8550_v23, %v10432_v43  ;;  %v6411_v18 = vmul.f32 %v8550_v23, %v10435_v37  ;;  %v6412_v63 = vmul.f32 %v8550_v23, %v10438_v58 }
 0x757   : > { %v6413_v44 = vmul.f32 %v8550_v23, %v10441_v40  ;;  %v6414_v29 = vmul.f32 %v8550_v23, %v10448_v19  ;;  %v6415_v31 = vmul.f32 %v8550_v23, %v10453_v2  ;;  %v6416_v22 = vmul.f32 %v8550_v23, %v10460_v1 }
 0x758   : > { %v6471_v56 = vadd.f32 %v6439_v25, %v8885_v49  ;;  %v6417_v42 = vmul.f32 %v8550_v23, %v10466_v47  ;;  %v6418_v61 = vmul.f32 %v8550_v23, %v10472_v15  ;;  %v6419_v43 = vmul.f32 %v8550_v23, %v10377_v17 }
 0x759   : > { %v6420_v37 = vmul.f32 %v8550_v23, %v10481_v52  ;;  %v6421_v58 = vmul.f32 %v8550_v23, %v10380_v62  ;;  %v6422_v40 = vmul.f32 %v8550_v23, %v10383_v34  ;;  %v6423_v19 = vmul.f32 %v8550_v23, %v10386_v33 }
 0x75a   : > { %6503 = vst.msk [vmem:[%s10576_s8 + $0xe8] sm:$0xff] %vm257_vm0, %v6471_v56  ;;  %v6424_v49 = vmul.f32 %v8550_v23, %v10389_v46  ;;  %v6425_v2 = vmul.f32 %v8550_v23, %v10392_v57  ;;  %v6426_v1 = vmul.f32 %v8550_v23, %v10395_v13  ;;  %v6427_v17 = vmul.f32 %v8550_v23, %v10398_v55 }
 0x75b   : > { %v6428_v47 = vmul.f32 %v8550_v23, %v10401_v59  ;;  %v6429_v62 = vmul.f32 %v8550_v23, %v10404_v26  ;;  %v6430_v34 = vmul.f32 %v8550_v23, %v10407_v32  ;;  %v6431_v33 = vmul.f32 %v8550_v23, %v10409_v50 }
 0x75c   : > { %v6432_v15 = vmul.f32 %v8550_v23, %v10411_v48  ;;  %v6433_v52 = vmul.f32 %v8550_v23, %v10413_v0  ;;  %v6434_v46 = vmul.f32 %v8550_v23, %v10415_v38  ;;  %v6435_v57 = vmul.f32 %v8550_v23, %v10417_v36 }
 0x75d   : > { %v6436_v13 = vmul.f32 %v8550_v23, %v10419_v20  ;;  %v6437_v55 = vmul.f32 %v8550_v23, %v10421_v45  ;;  %v6438_v59 = vmul.f32 %v8550_v23, %v10423_v30  ;;  %v6440_v26 = vmul.f32 %v8550_v23, %v10427_v51 }
 0x75e   : > { %v6441_v32 = vmul.f32 %v8550_v23, %v10429_v28  ;;  %v6442_v50 = vadd.f32 %v6410_v14, %v8721_v5  ;;  %v6443_v48 = vadd.f32 %v6411_v18, %v8732_v6  ;;  %v6444_v0 = vadd.f32 %v6412_v63, %v8715_v3  ;;  %v10792_v6 = vld [vmem:[#allocation6_spill] sm:$0xff]  ;;  %v10802_v23 = vld [vmem:[#allocation16_spill] sm:$0xff]  ;;  %v10803_v14 = vld [vmem:[#allocation17_spill] sm:$0xff] }
 0x75f   : > { %v6445_v38 = vadd.f32 %v6413_v44, %v8718_v4  ;;  %v6446_v36 = vadd.f32 %v6414_v29, %v8737_v7  ;;  %v6447_v20 = vadd.f32 %v6415_v31, %v8740_v8  ;;  %v6448_v45 = vadd.f32 %v6416_v22, %v8750_v9  ;;  %v10793_v4 = vld [vmem:[#allocation7_spill] sm:$0xff]  ;;  %v10794_v8 = vld [vmem:[#allocation8_spill] sm:$0xff]  ;;  %v10796_v28 = vld [vmem:[#allocation10_spill] sm:$0xff] }
 0x760   : > { %v6449_v30 = vadd.f32 %v6417_v42, %v8753_v10  ;;  %v6450_v5 = vadd.f32 %v6418_v61, %v8756_v11  ;;  %v6451_v3 = vadd.f32 %v6419_v43, %v8763_v12  ;;  %v6452_v51 = vadd.f32 %v6420_v37, %v10792_v6  ;;  %6474 = vst.msk [vmem:[%s10576_s8] sm:$0xff] %vm257_vm0, %v6442_v50  ;;  %v10795_v10 = vld [vmem:[#allocation9_spill] sm:$0xff]  ;;  %v10804_v63 = vld [vmem:[#allocation18_spill] sm:$0xff]  ;;  %v10805_v29 = vld [vmem:[#allocation19_spill] sm:$0xff] }
 0x761   : > { %6475 = vst.msk [vmem:[%s10576_s8 + $0x8] sm:$0xff] %vm257_vm0, %v6443_v48  ;;  %6476 = vst.msk [vmem:[%s10576_s8 + $0x10] sm:$0xff] %vm257_vm0, %v6444_v0  ;;  %v6453_v7 = vadd.f32 %v6421_v58, %v10793_v4  ;;  %v6454_v9 = vadd.f32 %v6422_v40, %v10794_v8  ;;  %v6455_v11 = vadd.f32 %v6423_v19, %v10795_v10  ;;  %v10806_v22 = vld [vmem:[#allocation20_spill] sm:$0xff]  ;;  %v10807_v42 = vld [vmem:[#allocation21_spill] sm:$0xff] }
 0x762   : > { %v6456_v12 = vadd.f32 %v6424_v49, %v10796_v28  ;;  %6477 = vst.msk [vmem:[%s10576_s8 + $0x18] sm:$0xff] %vm257_vm0, %v6445_v38  ;;  %6478 = vst.msk [vmem:[%s10576_s8 + $0x20] sm:$0xff] %vm257_vm0, %v6446_v36  ;;  %v6457_v27 = vadd.f32 %v6425_v2, %v10797_v35  ;;  %v6458_v39 = vadd.f32 %v6426_v1, %v10798_v53  ;;  %v10808_v43 = vld [vmem:[#allocation22_spill] sm:$0xff]  ;;  %v10809_v58 = vld [vmem:[#allocation23_spill] sm:$0xff] }
 0x763   : > { %6479 = vst.msk [vmem:[%s10576_s8 + $0x28] sm:$0xff] %vm257_vm0, %v6447_v20  ;;  %6480 = vst.msk [vmem:[%s10576_s8 + $0x30] sm:$0xff] %vm257_vm0, %v6448_v45  ;;  %v6459_v21 = vadd.f32 %v6427_v17, %v10799_v54  ;;  %v6460_v41 = vadd.f32 %v6428_v47, %v10800_v16  ;;  %v6461_v24 = vadd.f32 %v6429_v62, %v10801_v60  ;;  %v10810_v19 = vld [vmem:[#allocation24_spill] sm:$0xff]  ;;  %v10811_v2 = vld [vmem:[#allocation25_spill] sm:$0xff] }
 0x764   : > { %6481 = vst.msk [vmem:[%s10576_s8 + $0x38] sm:$0xff] %vm257_vm0, %v6449_v30  ;;  %6482 = vst.msk [vmem:[%s10576_s8 + $0x40] sm:$0xff] %vm257_vm0, %v6450_v5  ;;  %v6462_v25 = vadd.f32 %v6430_v34, %v10802_v23  ;;  %v6463_v18 = vadd.f32 %v6431_v33, %v10803_v14  ;;  %v6464_v44 = vadd.f32 %v6432_v15, %v10804_v63  ;;  %v10812_v17 = vld [vmem:[#allocation26_spill] sm:$0xff] }
 0x765   : > { %6483 = vst.msk [vmem:[%s10576_s8 + $0x48] sm:$0xff] %vm257_vm0, %v6451_v3  ;;  %6484 = vst.msk [vmem:[%s10576_s8 + $0x50] sm:$0xff] %vm257_vm0, %v6452_v51  ;;  %v6465_v31 = vadd.f32 %v6433_v52, %v10805_v29  ;;  %v6466_v56 = vadd.f32 %v6434_v46, %v10806_v22  ;;  %v6467_v61 = vadd.f32 %v6435_v57, %v10807_v42 }
 0x766   : > { %6485 = vst.msk [vmem:[%s10576_s8 + $0x58] sm:$0xff] %vm257_vm0, %v6453_v7  ;;  %6486 = vst.msk [vmem:[%s10576_s8 + $0x60] sm:$0xff] %vm257_vm0, %v6454_v9  ;;  %v6468_v37 = vadd.f32 %v6436_v13, %v10808_v43  ;;  %v6469_v40 = vadd.f32 %v6437_v55, %v10809_v58  ;;  %v6470_v49 = vadd.f32 %v6438_v59, %v10810_v19 }
 0x767   : > { %6487 = vst.msk [vmem:[%s10576_s8 + $0x68] sm:$0xff] %vm257_vm0, %v6455_v11  ;;  %6488 = vst.msk [vmem:[%s10576_s8 + $0x70] sm:$0xff] %vm257_vm0, %v6456_v12  ;;  %v6472_v1 = vadd.f32 %v6440_v26, %v10811_v2  ;;  %v6473_v47 = vadd.f32 %v6441_v32, %v10812_v17 }
 0x768   : > { %6489 = vst.msk [vmem:[%s10576_s8 + $0x78] sm:$0xff] %vm257_vm0, %v6457_v27  ;;  %6490 = vst.msk [vmem:[%s10576_s8 + $0x80] sm:$0xff] %vm257_vm0, %v6458_v39 }
 0x769   : > { %6491 = vst.msk [vmem:[%s10576_s8 + $0x88] sm:$0xff] %vm257_vm0, %v6459_v21  ;;  %6492 = vst.msk [vmem:[%s10576_s8 + $0x90] sm:$0xff] %vm257_vm0, %v6460_v41 }
 0x76a   : > { %6493 = vst.msk [vmem:[%s10576_s8 + $0x98] sm:$0xff] %vm257_vm0, %v6461_v24  ;;  %6494 = vst.msk [vmem:[%s10576_s8 + $0xa0] sm:$0xff] %vm257_vm0, %v6462_v25 }
 0x76b   : > { %6495 = vst.msk [vmem:[%s10576_s8 + $0xa8] sm:$0xff] %vm257_vm0, %v6463_v18  ;;  %6496 = vst.msk [vmem:[%s10576_s8 + $0xb0] sm:$0xff] %vm257_vm0, %v6464_v44 }
 0x76c   : > { %6497 = vst.msk [vmem:[%s10576_s8 + $0xb8] sm:$0xff] %vm257_vm0, %v6465_v31  ;;  %6498 = vst.msk [vmem:[%s10576_s8 + $0xc0] sm:$0xff] %vm257_vm0, %v6466_v56 }
 0x76d   : > { %6499 = vst.msk [vmem:[%s10576_s8 + $0xc8] sm:$0xff] %vm257_vm0, %v6467_v61  ;;  %6500 = vst.msk [vmem:[%s10576_s8 + $0xd0] sm:$0xff] %vm257_vm0, %v6468_v37 }
 0x76e   : > { %6501 = vst.msk [vmem:[%s10576_s8 + $0xd8] sm:$0xff] %vm257_vm0, %v6469_v40  ;;  %6502 = vst.msk [vmem:[%s10576_s8 + $0xe0] sm:$0xff] %vm257_vm0, %v6470_v49 }
 0x76f   : > { %6504 = vst.msk [vmem:[%s10576_s8 + $0xf0] sm:$0xff] %vm257_vm0, %v6472_v1  ;;  %6505 = vst.msk [vmem:[%s10576_s8 + $0xf8] sm:$0xff] %vm257_vm0, %v6473_v47 }
 0x770   : > { %8564 = shalt.err (!%p8561_p3)
}
 0x771   : > { %s8565_s23 = scalar_lea.hbm %s10667_s12, 4096  ;;  %s8569_s30 = scalar_lea.hbm %s10747_s5, 8192 }
 0x772   : > { %p8566_p4 = scmp.ne.s32.totalorder %s10667_s12, %s8565_s23  ;;  %p8570_p9 = scmp.lt.u32.totalorder %s10667_s12, %s10747_s5 }
 0x773   : > { %p8571_p10 = scmp.lt.u32.totalorder %s8569_s30, %s8565_s23  ;;  %p8573_p12 = scmp.lt.u32.totalorder %s8565_s23, %s10667_s12 }
 0x774   : > { %p8567_p7 = pnand %p8566_p4, %p8686_p5 }
 0x775   : > { %p8572_p11 = por %p8571_p10, %p8570_p9 }
 0x776   : > { %p8568_p8 = pneg %p8567_p7 }
 0x777   : > { %p8574_p13 = por %p8573_p12, %p8572_p11 }
 0x779   : > { %p8575_p0 = pnand %p8574_p13, %p8568_p8 }
 0x77b   : > { %8578 = shalt.err (!%p8575_p0)
}
 0x77c   : > { %s8616_s8 = smov 128   ;;  %s8617_s9 = smov 8  }
 0x77d   : > { %8470 = dma.vmem_to_hbm [thread:$0]  (%p8686_p5), %s10669_s10, 4096, %s10667_s12, %s10701_s13, %s8616_s8, %s8616_s8, %s8617_s9  }
 0x77e PF: > { %p8476_p1 = scmp.ge.s32.totalorder %s8613_s21, 2  ;;  %s6535_s22 = sand.u32 1, %s8601_s18  }
 0x77f   : > { %s6536_s11 = scalar_lea.sflag [#allocation4], %s6535_s22 }
 0x780   : > { %p8473_p2 = pnand %p8476_p1, %p8690_p6 }
 0x782   : > { %8596 = dma.done.wait (!%p8473_p2), %s6536_s11, 4096  }
 0x783   : > { %8598 = vsyncadd (!%p8473_p2), %s6536_s11, 4294963200  ;;  %p15_p3 = scmp.ge.s32.totalorder %s8673_s24, 4   ;;  %s10813_s18 = smov %s8605_s19 }
 0x784   : > { %s10814_s19 = smov %s8609_s20  ;;  %s10815_s20 = smov %s8684_s27 }
 0x785   : > { %s10816_s21 = smov %s8673_s24  ;;  %17 = sbr.rel (!%p15_p3) target bundleno = 3 (0x3), region = 94 }
 0x78c   :  { %6541 = vsyncpa [#allocation4], 1 }
 0x78d   :  { %6543 = vsyncpa [#allocation4 + $0x1], 1 }

</bundles_post_ra>
